<compile_context>
chip_gen: v6e
topology: v6e:2x2x1
jax: 0.10.0
libtpu: 0.0.40
codegen_flags: <defaults>
</compile_context>

<pallas_src>
from functools import partial

import jax
import jax.numpy as jnp
from jax.experimental import pallas as pl
from jax.experimental.pallas import tpu as pltpu


def _mnas_kernel(x_ref, w1_ref, b1_ref, wdw_ref, b2_ref, w3_ref, b3_ref, *rest,
                 H, W, K, stride, TH_out, Wo, residual):
    if residual:
        idn_ref, o_ref = rest
    else:
        (o_ref,) = rest

    pad = K // 2
    TH_in = (TH_out - 1) * stride + K
    Cin = x_ref.shape[-1]
    Cmid = w1_ref.shape[-1]
    Cout = w3_ref.shape[-1]

    s = pl.program_id(1)
    row_start = pl.multiple_of(s * (TH_out * stride), TH_out * stride)

    # Halo'd strip of the row-padded bf16 input: (TH_in, W, Cin).
    xs = x_ref[pl.ds(row_start, TH_in), :, :]

    # ---- conv1: 1x1 (BN scale folded into w1), bf16 MXU, f32 accumulate ----
    # Input is padded in rows only, so only interior columns are computed: no
    # wasted MXU rows / bias+ReLU work on column padding.
    t = jnp.dot(xs.reshape(TH_in * W, Cin), w1_ref[...],
                preferred_element_type=jnp.float32)
    t = jnp.maximum(t + b1_ref[...], 0.0).reshape(TH_in, W, Cmid)

    # Row-pad positions carry relu(b1) (their input rows are zero); zero them
    # with a cheap (TH_in,1,1)-broadcast row mask instead of a full interior
    # mask over (TH_in, Wp, Cmid).
    rows = jax.lax.broadcasted_iota(jnp.int32, (TH_in, 1, 1), 0) + row_start
    row_ok = (rows >= pad) & (rows < pad + H)
    t = jnp.where(row_ok, t, 0.0)

    # Re-introduce the zero pad columns once (single copy), so every depthwise
    # tap below is a plain slice of a correctly zero-padded tensor.
    zc = jnp.zeros((TH_in, pad, Cmid), jnp.float32)
    t = jnp.concatenate([zc, t, zc], axis=1)                  # (TH_in, Wp, Cmid)

    # ---- conv2: depthwise KxK (BN scale folded into wdw), f32 VPU MACs ----
    # Deinterleave the (sublane) column axis once so strided taps become
    # unit-stride slices (avoids K*K sublane-strided relayouts when stride>1).
    wdw = wdw_ref[...]                                        # (K*K, Cmid)
    planes = [t[:, r::stride, :] for r in range(stride)]
    row_span = (TH_out - 1) * stride + 1
    acc = jnp.zeros((TH_out, Wo, Cmid), jnp.float32)
    # TODO(synk): run the taps in bf16 on v6e/v7x (bf16-native VPU, ~2x VALU
    # throughput) once re-validated against the f32 reference; keep f32 on v5e.
    for dy in range(K):
        for dx in range(K):
            win = planes[dx % stride][dy:dy + row_span:stride,
                                      dx // stride:dx // stride + Wo, :]
            acc = acc + win * wdw[dy * K + dx:dy * K + dx + 1, :]
    acc = jnp.maximum(acc + b2_ref[...], 0.0)

    # ---- conv3: 1x1 (BN scale folded into w3), no activation ----
    y = jnp.dot(acc.reshape(TH_out * Wo, Cmid).astype(jnp.bfloat16), w3_ref[...],
                preferred_element_type=jnp.float32)
    y = (y + b3_ref[...]).reshape(TH_out, Wo, Cout)

    if residual:
        # f32 identity delivered via its own aligned, pipelined input block.
        y = y + idn_ref[...]

    # TODO(synk): a channels-major (N, Cout, Ho*Wo) output would make the store
    # lane-dense, but needs either a channels-major depthwise (lane-shift taps)
    # or a large in-kernel transpose before conv3; kept NHWC for now.
    o_ref[...] = y


def _vmem_budgets():
    """(vmem_limit_bytes, per-strip working-set budget), generation-aware."""
    mib = 1024 * 1024
    cap = None
    try:
        cap = int(getattr(pltpu.get_tpu_info(), "vmem_capacity_bytes", 0)) or None
    except Exception:
        cap = None
    if cap is None:
        kind = ""
        try:
            kind = jax.devices()[0].device_kind.lower()
        except Exception:
            pass
        if "v7" in kind:
            cap = 64 * mib            # 64 MiB per TensorCore on v7x
        elif "v2" in kind or "v3" in kind:
            cap = 16 * mib
        elif kind:
            cap = 128 * mib           # v4 / v5e / v6e
        else:
            cap = 64 * mib            # unknown: be conservative
    vmem_limit = max(min(3 * cap // 4, cap - 16 * mib), cap // 2)
    strip_budget = max(vmem_limit * 5 // 12, 4 * mib)
    return vmem_limit, strip_budget


def _multi_tensorcore_hint():
    """True when one JAX device exposes >1 TensorCore (v4 megacore, v7x)."""
    try:
        kind = jax.devices()[0].device_kind.lower()
    except Exception:
        return False
    return ("v7" in kind) or ("v4" in kind)


def _pick_tile_rows(H, W, Wo, Cin, Cmid, Cout, K, stride, residual, budget_bytes):
    """Largest divisor of Ho whose per-strip working set fits `budget_bytes`.

    Counts the double-buffered resident bf16 input, the conv1 intermediate
    (interior + column-padded copies, deinterleave planes), depthwise windows
    and accumulator, the double-buffered output strip and the f32 residual
    identity block."""
    pad = K // 2
    Hp, Wp = H + 2 * pad, W + 2 * pad
    Ho = (Hp - K) // stride + 1

    const = 2 * Hp * W * Cin * 2                              # resident bf16 input x2
    const += 2 * (Cin * Cmid * 2 + K * K * Cmid * 4 + Cmid * Cout * 2
                  + (2 * Cmid + Cout) * 4)                    # weights / biases x2

    def per_strip(tr):
        th_in = tr * stride + (K - stride)
        b = th_in * W * Cin * 2                               # bf16 slice into MXU
        b += th_in * W * Cmid * 4                             # conv1 output (interior)
        b += th_in * Wp * Cmid * 4                            # column-padded t
        if stride > 1:
            b += th_in * Wp * Cmid * 4                        # deinterleaved planes
        b += 3 * tr * Wo * Cmid * 4                           # tap window + accumulator
        b += 3 * tr * Wo * Cout * 4                           # conv3 out + out strip x2
        if residual:
            b += 2 * tr * W * Cin * 4                         # f32 identity x2
        return b

    best = 1
    for d in range(1, Ho + 1):
        if Ho % d == 0 and const + per_strip(d) <= budget_bytes:
            best = d
    return best


def mnas_unit_pallas_nhwc(x_nhwc, params, *, kernel_size, stride, tile_rows=None):
    """Fused MnasUnit forward. x_nhwc: (N, H, W, Cin) f32 -> (N, Ho, Wo, Cout) f32."""
    w1, b1, wdw, b2, w3, b3 = params       # BN-folded; w1/w3 already bf16
    x = x_nhwc.astype(jnp.float32)
    N, H, W, Cin = x.shape
    Cmid, Cout = w1.shape[1], w3.shape[1]
    K = kernel_size
    pad = K // 2
    residual = (Cin == Cout) and (stride == 1)
    Ho = (H + 2 * pad - K) // stride + 1
    Wo = (W + 2 * pad - K) // stride + 1
    Hp = H + 2 * pad

    # Row-only zero pad on the host, stored in bf16 (it only feeds the bf16
    # conv1 matmul): halves the resident footprint / HBM DMA vs f32 + col pad.
    xp = jnp.pad(x, ((0, 0), (pad, pad), (0, 0), (0, 0))).astype(jnp.bfloat16)

    vmem_limit, strip_budget = _vmem_budgets()
    if tile_rows is None:
        tile_rows = _pick_tile_rows(H, W, Wo, Cin, Cmid, Cout, K, stride,
                                    residual, strip_budget)
        if (N == 1 and _multi_tensorcore_hint()
                and tile_rows == Ho and Ho % 2 == 0):
            tile_rows = Ho // 2      # keep both TensorCores busy at N == 1
    assert Ho % tile_rows == 0, (Ho, tile_rows)  # TODO(synk): ragged last strip
    n_strips = Ho // tile_rows

    kern = partial(_mnas_kernel, H=H, W=W, K=K, stride=stride,
                   TH_out=tile_rows, Wo=Wo, residual=residual)

    const = lambda n, s: (0, 0)
    in_specs = [
        # full row-padded bf16 image per batch element; block index constant
        # across the strip axis so it is DMA'd once per n and stays resident.
        pl.BlockSpec((None, Hp, W, Cin), lambda n, s: (n, 0, 0, 0)),
        pl.BlockSpec((Cin, Cmid), const),    # w1  (bf16, BN scale folded)
        pl.BlockSpec((1, Cmid), const),      # b1
        pl.BlockSpec((K * K, Cmid), const),  # wdw (f32, BN scale folded)
        pl.BlockSpec((1, Cmid), const),      # b2
        pl.BlockSpec((Cmid, Cout), const),   # w3  (bf16, BN scale folded)
        pl.BlockSpec((1, Cout), const),      # b3
    ]
    args = [xp, w1, b1, wdw, b2, w3, b3]
    if residual:
        in_specs.append(pl.BlockSpec((None, tile_rows, W, Cin),
                                     lambda n, s: (n, s, 0, 0)))
        args.append(x)                       # f32 identity, tiled per strip

    flops = N * (2 * Hp * W * Cin * Cmid
                 + 2 * K * K * Ho * Wo * Cmid
                 + 2 * Ho * Wo * Cmid * Cout)
    bytes_accessed = (N * (Hp * W * Cin * 2 + Ho * Wo * Cout * 4
                           + (H * W * Cin * 4 if residual else 0))
                      + Cin * Cmid * 2 + K * K * Cmid * 4 + Cmid * Cout * 2
                      + (2 * Cmid + Cout) * 4)

    out = pl.pallas_call(
        kern,
        out_shape=jax.ShapeDtypeStruct((N, Ho, Wo, Cout), jnp.float32),
        grid=(N, n_strips),
        in_specs=in_specs,
        out_specs=pl.BlockSpec((None, tile_rows, Wo, Cout),
                               lambda n, s: (n, s, 0, 0)),
        compiler_params=pltpu.CompilerParams(
            dimension_semantics=("parallel", "parallel"),
            vmem_limit_bytes=vmem_limit),
        cost_estimate=pl.CostEstimate(flops=flops, transcendentals=0,
                                      bytes_accessed=bytes_accessed),
    )(*args)
    return out


def mnas_unit_pallas(x_nchw, params, *, kernel_size, stride, tile_rows=None):
    """NCHW convenience wrapper matching the PyTorch module interface."""
    x = jnp.transpose(x_nchw, (0, 2, 3, 1))
    y = mnas_unit_pallas_nhwc(x, params, kernel_size=kernel_size,
                              stride=stride, tile_rows=tile_rows)
    return jnp.transpose(y, (0, 3, 1, 2))


# ---------------- deterministic parameter construction ----------------
def make_params(key, in_channels, out_channels, kernel_size, expansion_factor):
    """Random conv + BN(eval) parameters; BN scales folded into the weights."""
    Cin, Cout, K = in_channels, out_channels, kernel_size
    Cmid = Cin * expansion_factor
    eps = 1e-5
    ks = jax.random.split(key, 15)

    def bn_fold(kg, kb, km, kv, C):
        gamma = jax.random.uniform(kg, (C,), minval=0.8, maxval=1.2)
        beta = 0.1 * jax.random.normal(kb, (C,))
        mean = 0.1 * jax.random.normal(km, (C,))
        var = jax.random.uniform(kv, (C,), minval=0.5, maxval=1.5)
        scale = gamma / jnp.sqrt(var + eps)
        bias = beta - mean * scale
        return (scale.reshape(1, C).astype(jnp.float32),
                bias.reshape(1, C).astype(jnp.float32))

    # conv1: PyTorch weight (Cmid, Cin, 1, 1) -> (Cin, Cmid) for x @ W
    w1 = (0.3 * jax.random.normal(ks[0], (Cin, Cmid))).astype(jnp.float32)
    s1, b1 = bn_fold(ks[1], ks[2], ks[3], ks[4], Cmid)
    # depthwise: PyTorch weight (Cmid, 1, K, K) -> (K*K, Cmid)
    wdw = (0.3 * jax.random.normal(ks[5], (K * K, Cmid))).astype(jnp.float32)
    s2, b2 = bn_fold(ks[6], ks[7], ks[8], ks[9], Cmid)
    # conv3: PyTorch weight (Cout, Cmid, 1, 1) -> (Cmid, Cout)
    w3 = (0.3 * jax.random.normal(ks[10], (Cmid, Cout))).astype(jnp.float32)
    s3, b3 = bn_fold(ks[11], ks[12], ks[13], ks[14], Cout)

    # Fold BN scales into the conv weights (exact host-side f32 algebra);
    # matmul weights pre-cast to bf16 for the MXU, depthwise weights stay f32.
    w1f = (w1 * s1).astype(jnp.bfloat16)
    wdwf = (wdw * s2).astype(jnp.float32)
    w3f = (w3 * s3).astype(jnp.bfloat16)
    return (w1f, b1, wdwf, b2, w3f, b3)


# ---------------- pure-JAX reference (mirrors kernel precision) ----------------
def mnas_unit_ref(x_nchw, params, *, kernel_size, stride):
    w1, b1, wdw, b2, w3, b3 = params
    x = jnp.transpose(x_nchw, (0, 2, 3, 1)).astype(jnp.float32)
    N, H, W, Cin = x.shape
    Cmid, Cout = w1.shape[1], w3.shape[1]
    K = kernel_size
    pad = K // 2
    residual = (Cin == Cout) and (stride == 1)
    Ho = (H + 2 * pad - K) // stride + 1
    Wo = (W + 2 * pad - K) // stride + 1

    t = jnp.einsum('nhwi,io->nhwo', x.astype(jnp.bfloat16), w1,
                   preferred_element_type=jnp.float32)
    t = jnp.maximum(t + b1, 0.0)
    tp = jnp.pad(t, ((0, 0), (pad, pad), (pad, pad), (0, 0)))
    acc = jnp.zeros((N, Ho, Wo, Cmid), jnp.float32)
    for dy in range(K):
        for dx in range(K):
            win = tp[:, dy:dy + (Ho - 1) * stride + 1:stride,
                     dx:dx + (Wo - 1) * stride + 1:stride, :]
            acc = acc + win * wdw[dy * K + dx]
    acc = jnp.maximum(acc + b2, 0.0)
    y = jnp.einsum('nhwi,io->nhwo', acc.astype(jnp.bfloat16), w3,
                   preferred_element_type=jnp.float32) + b3
    if residual:
        y = y + x
    return jnp.transpose(y, (0, 3, 1, 2))


if __name__ == "__main__":
    key = jax.random.PRNGKey(0)

    configs = [
        # (N, Cin, H, W, Cout, K, stride, expansion, tile_rows)
        (2, 32, 16, 16, 32, 3, 1, 4, None),  # residual; auto strip (whole image)
        (2, 16, 16, 16, 24, 5, 2, 3, None),  # 5x5 dw, stride 2; auto strip
        (2, 32, 16, 16, 32, 3, 1, 4, 4),     # forced multi-strip: halo + residual
        (1, 16, 16, 16, 24, 5, 2, 3, 2),     # forced multi-strip, stride 2, N=1
    ]
    for cfg_i, (N, Cin, H, W, Cout, K, stride, exp, tr) in enumerate(configs):
        kx, kp, key = jax.random.split(key, 3)
        x = jax.random.normal(kx, (N, Cin, H, W), dtype=jnp.float32)
        params = make_params(kp, Cin, Cout, K, exp)

        out = mnas_unit_pallas(x, params, kernel_size=K, stride=stride,
                               tile_rows=tr)
        out = jax.block_until_ready(out)

        ref = mnas_unit_ref(x, params, kernel_size=K, stride=stride)
        assert out.shape == ref.shape, (cfg_i, out.shape, ref.shape)
        max_err = float(jnp.max(jnp.abs(out - ref)))
        assert jnp.allclose(out, ref, rtol=2e-2, atol=2e-2), (cfg_i, max_err)

    print("KERNEL_OK")
</pallas_src>

<mosaic_0001>
module attributes {stable_mosaic.version = 11 : i64} {
  func.func @_mnas_kernel(%arg0: i32, %arg1: i32, %arg2: memref<1x18x16x32xbf16, #tpu.memory_space<vmem>>, %arg3: memref<32x128xbf16, #tpu.memory_space<vmem>>, %arg4: memref<1x128xf32, #tpu.memory_space<vmem>>, %arg5: memref<9x128xf32, #tpu.memory_space<vmem>>, %arg6: memref<1x128xf32, #tpu.memory_space<vmem>>, %arg7: memref<128x32xbf16, #tpu.memory_space<vmem>>, %arg8: memref<1x32xf32, #tpu.memory_space<vmem>>, %arg9: memref<1x16x16x32xf32, #tpu.memory_space<vmem>>, %arg10: memref<1x16x16x32xf32, #tpu.memory_space<vmem>>) attributes {dimension_semantics = [#tpu.dimension_semantics<parallel>, #tpu.dimension_semantics<parallel>], iteration_bounds = array<i64: 2, 1>, scalar_prefetch = 0 : i64, scratch_operands = 0 : i64, tpu.core_type = #tpu.core_type<tc>, window_params = [{transform_indices = @transform_0, window_bounds = array<i64: 1, 18, 16, 32>}, {pipeline_mode = #tpu.pipeline_mode<synchronous>, transform_indices = @transform_1, window_bounds = array<i64: 32, 128>}, {pipeline_mode = #tpu.pipeline_mode<synchronous>, transform_indices = @transform_2, window_bounds = array<i64: 1, 128>}, {pipeline_mode = #tpu.pipeline_mode<synchronous>, transform_indices = @transform_3, window_bounds = array<i64: 9, 128>}, {pipeline_mode = #tpu.pipeline_mode<synchronous>, transform_indices = @transform_4, window_bounds = array<i64: 1, 128>}, {pipeline_mode = #tpu.pipeline_mode<synchronous>, transform_indices = @transform_5, window_bounds = array<i64: 128, 32>}, {pipeline_mode = #tpu.pipeline_mode<synchronous>, transform_indices = @transform_6, window_bounds = array<i64: 1, 32>}, {transform_indices = @transform_7, window_bounds = array<i64: 1, 16, 16, 32>}, {transform_indices = @transform_8, window_bounds = array<i64: 1, 16, 16, 32>}]} {
    %c16_i32 = arith.constant 16 : i32
    %0 = arith.muli %arg1, %c16_i32 : i32
    %1 = tpu.assume_multiple %0, 16 : i32
    %c0 = arith.constant 0 : index
    %2 = arith.index_cast %1 : i32 to index
    %c0_0 = arith.constant 0 : index
    %c0_1 = arith.constant 0 : index
    %3 = vector.load %arg2[%c0, %2, %c0_0, %c0_1] : memref<1x18x16x32xbf16, #tpu.memory_space<vmem>>, vector<1x18x16x32xbf16>
    %4 = vector.shape_cast %3 : vector<1x18x16x32xbf16> to vector<18x16x32xbf16>
    %5 = vector.shape_cast %4 : vector<18x16x32xbf16> to vector<288x32xbf16>
    %c0_2 = arith.constant 0 : index
    %c0_3 = arith.constant 0 : index
    %6 = vector.load %arg3[%c0_2, %c0_3] : memref<32x128xbf16, #tpu.memory_space<vmem>>, vector<32x128xbf16>
    %cst = arith.constant dense<0.000000e+00> : vector<288x128xf32>
    %7 = tpu.matmul %5, %6, %cst {dimension_numbers = #tpu.dot_dimension_numbers<[1], [0], [0], [1], [0, 0, 1, 1], [], []>} : vector<288x32xbf16>, vector<32x128xbf16>, vector<288x128xf32> -> vector<288x128xf32>
    %c0_4 = arith.constant 0 : index
    %c0_5 = arith.constant 0 : index
    %8 = vector.load %arg4[%c0_4, %c0_5] : memref<1x128xf32, #tpu.memory_space<vmem>>, vector<1x128xf32>
    %9 = vector.broadcast %8 : vector<1x128xf32> to vector<288x128xf32>
    %10 = arith.addf %7, %9 : vector<288x128xf32>
    %cst_6 = arith.constant 0.000000e+00 : f32
    %11 = vector.broadcast %cst_6 : f32 to vector<288x128xf32>
    %12 = arith.maximumf %10, %11 : vector<288x128xf32>
    %13 = vector.shape_cast %12 : vector<288x128xf32> to vector<18x16x128xf32>
    %14 = tpu.iota {dimensions = array<i32: 0>} : vector<18x1x1xi32>
    %15 = vector.broadcast %1 : i32 to vector<18x1x1xi32>
    %16 = arith.addi %14, %15 : vector<18x1x1xi32>
    %c1_i32 = arith.constant 1 : i32
    %17 = vector.broadcast %c1_i32 : i32 to vector<18x1x1xi32>
    %18 = arith.cmpi sge, %16, %17 : vector<18x1x1xi32>
    %c17_i32 = arith.constant 17 : i32
    %19 = vector.broadcast %c17_i32 : i32 to vector<18x1x1xi32>
    %20 = arith.cmpi slt, %16, %19 : vector<18x1x1xi32>
    %21 = arith.andi %18, %20 : vector<18x1x1xi1>
    %cst_7 = arith.constant 0.000000e+00 : f32
    %22 = vector.shape_cast %21 : vector<18x1x1xi1> to vector<18x1x1xi1>
    %23 = vector.broadcast %22 : vector<18x1x1xi1> to vector<18x16x128xi1>
    %24 = vector.broadcast %cst_7 : f32 to vector<18x16x128xf32>
    %25 = arith.select %23, %13, %24 : vector<18x16x128xi1>, vector<18x16x128xf32>
    %cst_8 = arith.constant 0.000000e+00 : f32
    %26 = vector.broadcast %cst_8 : f32 to vector<18x1x128xf32>
    %27 = tpu.concatenate %26, %25, %26 in 1 : vector<18x1x128xf32>, vector<18x16x128xf32>, vector<18x1x128xf32> -> vector<18x18x128xf32>
    %c0_9 = arith.constant 0 : index
    %c0_10 = arith.constant 0 : index
    %28 = vector.load %arg5[%c0_9, %c0_10] : memref<9x128xf32, #tpu.memory_space<vmem>>, vector<9x128xf32>
    %cst_11 = arith.constant 0.000000e+00 : f32
    %29 = vector.broadcast %cst_11 : f32 to vector<16x16x128xf32>
    %30 = vector.extract_strided_slice %27 {offsets = [0, 0, 0], sizes = [16, 16, 128], strides = [1, 1, 1]} : vector<18x18x128xf32> to vector<16x16x128xf32>
    %31 = vector.extract_strided_slice %28 {offsets = [0, 0], sizes = [1, 128], strides = [1, 1]} : vector<9x128xf32> to vector<1x128xf32>
    %32 = vector.shape_cast %31 : vector<1x128xf32> to vector<1x1x128xf32>
    %33 = vector.broadcast %32 : vector<1x1x128xf32> to vector<16x16x128xf32>
    %34 = arith.mulf %30, %33 : vector<16x16x128xf32>
    %35 = arith.addf %29, %34 : vector<16x16x128xf32>
    %36 = vector.extract_strided_slice %27 {offsets = [0, 1, 0], sizes = [16, 16, 128], strides = [1, 1, 1]} : vector<18x18x128xf32> to vector<16x16x128xf32>
    %37 = vector.extract_strided_slice %28 {offsets = [1, 0], sizes = [1, 128], strides = [1, 1]} : vector<9x128xf32> to vector<1x128xf32>
    %38 = vector.shape_cast %37 : vector<1x128xf32> to vector<1x1x128xf32>
    %39 = vector.broadcast %38 : vector<1x1x128xf32> to vector<16x16x128xf32>
    %40 = arith.mulf %36, %39 : vector<16x16x128xf32>
    %41 = arith.addf %35, %40 : vector<16x16x128xf32>
    %42 = vector.extract_strided_slice %27 {offsets = [0, 2, 0], sizes = [16, 16, 128], strides = [1, 1, 1]} : vector<18x18x128xf32> to vector<16x16x128xf32>
    %43 = vector.extract_strided_slice %28 {offsets = [2, 0], sizes = [1, 128], strides = [1, 1]} : vector<9x128xf32> to vector<1x128xf32>
    %44 = vector.shape_cast %43 : vector<1x128xf32> to vector<1x1x128xf32>
    %45 = vector.broadcast %44 : vector<1x1x128xf32> to vector<16x16x128xf32>
    %46 = arith.mulf %42, %45 : vector<16x16x128xf32>
    %47 = arith.addf %41, %46 : vector<16x16x128xf32>
    %48 = vector.extract_strided_slice %27 {offsets = [1, 0, 0], sizes = [16, 16, 128], strides = [1, 1, 1]} : vector<18x18x128xf32> to vector<16x16x128xf32>
    %49 = vector.extract_strided_slice %28 {offsets = [3, 0], sizes = [1, 128], strides = [1, 1]} : vector<9x128xf32> to vector<1x128xf32>
    %50 = vector.shape_cast %49 : vector<1x128xf32> to vector<1x1x128xf32>
    %51 = vector.broadcast %50 : vector<1x1x128xf32> to vector<16x16x128xf32>
    %52 = arith.mulf %48, %51 : vector<16x16x128xf32>
    %53 = arith.addf %47, %52 : vector<16x16x128xf32>
    %54 = vector.extract_strided_slice %27 {offsets = [1, 1, 0], sizes = [16, 16, 128], strides = [1, 1, 1]} : vector<18x18x128xf32> to vector<16x16x128xf32>
    %55 = vector.extract_strided_slice %28 {offsets = [4, 0], sizes = [1, 128], strides = [1, 1]} : vector<9x128xf32> to vector<1x128xf32>
    %56 = vector.shape_cast %55 : vector<1x128xf32> to vector<1x1x128xf32>
    %57 = vector.broadcast %56 : vector<1x1x128xf32> to vector<16x16x128xf32>
    %58 = arith.mulf %54, %57 : vector<16x16x128xf32>
    %59 = arith.addf %53, %58 : vector<16x16x128xf32>
    %60 = vector.extract_strided_slice %27 {offsets = [1, 2, 0], sizes = [16, 16, 128], strides = [1, 1, 1]} : vector<18x18x128xf32> to vector<16x16x128xf32>
    %61 = vector.extract_strided_slice %28 {offsets = [5, 0], sizes = [1, 128], strides = [1, 1]} : vector<9x128xf32> to vector<1x128xf32>
    %62 = vector.shape_cast %61 : vector<1x128xf32> to vector<1x1x128xf32>
    %63 = vector.broadcast %62 : vector<1x1x128xf32> to vector<16x16x128xf32>
    %64 = arith.mulf %60, %63 : vector<16x16x128xf32>
    %65 = arith.addf %59, %64 : vector<16x16x128xf32>
    %66 = vector.extract_strided_slice %27 {offsets = [2, 0, 0], sizes = [16, 16, 128], strides = [1, 1, 1]} : vector<18x18x128xf32> to vector<16x16x128xf32>
    %67 = vector.extract_strided_slice %28 {offsets = [6, 0], sizes = [1, 128], strides = [1, 1]} : vector<9x128xf32> to vector<1x128xf32>
    %68 = vector.shape_cast %67 : vector<1x128xf32> to vector<1x1x128xf32>
    %69 = vector.broadcast %68 : vector<1x1x128xf32> to vector<16x16x128xf32>
    %70 = arith.mulf %66, %69 : vector<16x16x128xf32>
    %71 = arith.addf %65, %70 : vector<16x16x128xf32>
    %72 = vector.extract_strided_slice %27 {offsets = [2, 1, 0], sizes = [16, 16, 128], strides = [1, 1, 1]} : vector<18x18x128xf32> to vector<16x16x128xf32>
    %73 = vector.extract_strided_slice %28 {offsets = [7, 0], sizes = [1, 128], strides = [1, 1]} : vector<9x128xf32> to vector<1x128xf32>
    %74 = vector.shape_cast %73 : vector<1x128xf32> to vector<1x1x128xf32>
    %75 = vector.broadcast %74 : vector<1x1x128xf32> to vector<16x16x128xf32>
    %76 = arith.mulf %72, %75 : vector<16x16x128xf32>
    %77 = arith.addf %71, %76 : vector<16x16x128xf32>
    %78 = vector.extract_strided_slice %27 {offsets = [2, 2, 0], sizes = [16, 16, 128], strides = [1, 1, 1]} : vector<18x18x128xf32> to vector<16x16x128xf32>
    %79 = vector.extract_strided_slice %28 {offsets = [8, 0], sizes = [1, 128], strides = [1, 1]} : vector<9x128xf32> to vector<1x128xf32>
    %80 = vector.shape_cast %79 : vector<1x128xf32> to vector<1x1x128xf32>
    %81 = vector.broadcast %80 : vector<1x1x128xf32> to vector<16x16x128xf32>
    %82 = arith.mulf %78, %81 : vector<16x16x128xf32>
    %83 = arith.addf %77, %82 : vector<16x16x128xf32>
    %c0_12 = arith.constant 0 : index
    %c0_13 = arith.constant 0 : index
    %84 = vector.load %arg6[%c0_12, %c0_13] : memref<1x128xf32, #tpu.memory_space<vmem>>, vector<1x128xf32>
    %85 = vector.shape_cast %84 : vector<1x128xf32> to vector<1x1x128xf32>
    %86 = vector.broadcast %85 : vector<1x1x128xf32> to vector<16x16x128xf32>
    %87 = arith.addf %83, %86 : vector<16x16x128xf32>
    %cst_14 = arith.constant 0.000000e+00 : f32
    %88 = vector.broadcast %cst_14 : f32 to vector<16x16x128xf32>
    %89 = arith.maximumf %87, %88 : vector<16x16x128xf32>
    %90 = vector.shape_cast %89 : vector<16x16x128xf32> to vector<256x128xf32>
    %91 = arith.truncf %90 : vector<256x128xf32> to vector<256x128xbf16>
    %c0_15 = arith.constant 0 : index
    %c0_16 = arith.constant 0 : index
    %92 = vector.load %arg7[%c0_15, %c0_16] : memref<128x32xbf16, #tpu.memory_space<vmem>>, vector<128x32xbf16>
    %cst_17 = arith.constant dense<0.000000e+00> : vector<256x32xf32>
    %93 = tpu.matmul %91, %92, %cst_17 {dimension_numbers = #tpu.dot_dimension_numbers<[1], [0], [0], [1], [0, 0, 1, 1], [], []>} : vector<256x128xbf16>, vector<128x32xbf16>, vector<256x32xf32> -> vector<256x32xf32>
    %c0_18 = arith.constant 0 : index
    %c0_19 = arith.constant 0 : index
    %94 = vector.load %arg8[%c0_18, %c0_19] : memref<1x32xf32, #tpu.memory_space<vmem>>, vector<1x32xf32>
    %95 = vector.broadcast %94 : vector<1x32xf32> to vector<256x32xf32>
    %96 = arith.addf %93, %95 : vector<256x32xf32>
    %97 = vector.shape_cast %96 : vector<256x32xf32> to vector<16x16x32xf32>
    %c0_20 = arith.constant 0 : index
    %c0_21 = arith.constant 0 : index
    %c0_22 = arith.constant 0 : index
    %c0_23 = arith.constant 0 : index
    %98 = vector.load %arg9[%c0_20, %c0_21, %c0_22, %c0_23] : memref<1x16x16x32xf32, #tpu.memory_space<vmem>>, vector<1x16x16x32xf32>
    %99 = vector.shape_cast %98 : vector<1x16x16x32xf32> to vector<16x16x32xf32>
    %100 = arith.addf %97, %99 : vector<16x16x32xf32>
    %c0_24 = arith.constant 0 : index
    %c0_25 = arith.constant 0 : index
    %c0_26 = arith.constant 0 : index
    %c0_27 = arith.constant 0 : index
    %101 = vector.load %arg10[%c0_24, %c0_25, %c0_26, %c0_27] : memref<1x16x16x32xf32, #tpu.memory_space<vmem>>, vector<1x16x16x32xf32>
    %102 = vector.shape_cast %101 : vector<1x16x16x32xf32> to vector<16x16x32xf32>
    %103 = vector.shape_cast %100 : vector<16x16x32xf32> to vector<1x16x16x32xf32>
    tpu.vector_store %arg10[%c0_24, %c0_25, %c0_26, %c0_27], %103 {strides = array<i32>} : memref<1x16x16x32xf32, #tpu.memory_space<vmem>>, vector<1x16x16x32xf32>,
    return
  }
  func.func @transform_0(%arg0: i32, %arg1: i32) -> (i32, i32, i32, i32) {
    %c0_i32 = arith.constant 0 : i32
    %c0_i32_0 = arith.constant 0 : i32
    %c0_i32_1 = arith.constant 0 : i32
    %c0_i32_2 = arith.constant 0 : i32
    return %arg0, %c0_i32, %c0_i32_0, %c0_i32_1 : i32, i32, i32, i32
  }
  func.func @transform_1(%arg0: i32, %arg1: i32) -> (i32, i32) {
    %c0_i32 = arith.constant 0 : i32
    %c0_i32_0 = arith.constant 0 : i32
    %c0_i32_1 = arith.constant 0 : i32
    return %c0_i32, %c0_i32_0 : i32, i32
  }
  func.func @transform_2(%arg0: i32, %arg1: i32) -> (i32, i32) {
    %c0_i32 = arith.constant 0 : i32
    %c0_i32_0 = arith.constant 0 : i32
    %c0_i32_1 = arith.constant 0 : i32
    return %c0_i32, %c0_i32_0 : i32, i32
  }
  func.func @transform_3(%arg0: i32, %arg1: i32) -> (i32, i32) {
    %c0_i32 = arith.constant 0 : i32
    %c0_i32_0 = arith.constant 0 : i32
    %c0_i32_1 = arith.constant 0 : i32
    return %c0_i32, %c0_i32_0 : i32, i32
  }
  func.func @transform_4(%arg0: i32, %arg1: i32) -> (i32, i32) {
    %c0_i32 = arith.constant 0 : i32
    %c0_i32_0 = arith.constant 0 : i32
    %c0_i32_1 = arith.constant 0 : i32
    return %c0_i32, %c0_i32_0 : i32, i32
  }
  func.func @transform_5(%arg0: i32, %arg1: i32) -> (i32, i32) {
    %c0_i32 = arith.constant 0 : i32
    %c0_i32_0 = arith.constant 0 : i32
    %c0_i32_1 = arith.constant 0 : i32
    return %c0_i32, %c0_i32_0 : i32, i32
  }
  func.func @transform_6(%arg0: i32, %arg1: i32) -> (i32, i32) {
    %c0_i32 = arith.constant 0 : i32
    %c0_i32_0 = arith.constant 0 : i32
    %c0_i32_1 = arith.constant 0 : i32
    return %c0_i32, %c0_i32_0 : i32, i32
  }
  func.func @transform_7(%arg0: i32, %arg1: i32) -> (i32, i32, i32, i32) {
    %c0_i32 = arith.constant 0 : i32
    %c0_i32_0 = arith.constant 0 : i32
    %c0_i32_1 = arith.constant 0 : i32
    return %arg0, %arg1, %c0_i32, %c0_i32_0 : i32, i32, i32, i32
  }
  func.func @transform_8(%arg0: i32, %arg1: i32) -> (i32, i32, i32, i32) {
    %c0_i32 = arith.constant 0 : i32
    %c0_i32_0 = arith.constant 0 : i32
    %c0_i32_1 = arith.constant 0 : i32
    return %arg0, %arg1, %c0_i32, %c0_i32_0 : i32, i32, i32, i32
  }
}

</mosaic_0001>

<bundles_post_ra>
// kernel: tpu_custom_call.1
= control target key start
LH: loop header
LB: loop body
LE: loop exit
PB: predicated region body
PF: predicated region fallthrough
CT: control target
= control target key end

     0   :  { %s6276_s0 = inlined_call_operand.hbm [shape: bf16[2,18,16,32], index: 0, kind: input, shape index: {}]   ;;  %s6277_s1 = inlined_call_operand.vmem [shape: bf16[32,128], index: 1, kind: input, shape index: {}]   ;;  %s6278_s2 = inlined_call_operand.vmem [shape: f32[1,128], index: 2, kind: input, shape index: {}]   ;;  %s6279_s3 = inlined_call_operand.vmem [shape: f32[9,128], index: 3, kind: input, shape index: {}]   ;;  %s6280_s4 = inlined_call_operand.vmem [shape: f32[1,128], index: 4, kind: input, shape index: {}]   ;;  %s6281_s5 = inlined_call_operand.vmem [shape: bf16[128,32], index: 5, kind: input, shape index: {}]   ;;  %s6282_s6 = inlined_call_operand.vmem [shape: f32[1,32], index: 6, kind: input, shape index: {}]   ;;  %s6283_s7 = inlined_call_operand.hbm [shape: f32[2,16,16,32], index: 7, kind: input, shape index: {}]   ;;  %s6284_s8 = inlined_call_operand.hbm [shape: f32[2,16,16,32], index: 8, kind: output, shape index: {}]  }
   0x1   :  { %6442 = sst [smem:[#allocation115_spill]] %s6276_s0 }
   0x2   :  { %13 = vsyncpa [#allocation3], 0 }
   0x3   :  { %15 = vsyncpa [#allocation3 + $0x1], 0 }
   0x4   :  { %16 = vsyncpa [#allocation6], 0 }
   0x5   :  { %18 = vsyncpa [#allocation6 + $0x1], 0 }
   0x6   :  { %19 = vsyncpa [#allocation4], 0 }
   0x7   :  { %21 = vsyncpa [#allocation4 + $0x1], 0  ;;  %s3870_s27 = smov 0   ;;  %s3872_s28 = smov 0  }
   0x8   :  { %s3874_s29 = smov 0   ;;  %s3876_s30 = smov 0  }
   0x9   :  { %s3878_s9 = smov 0   ;;  %s3880_s10 = smov 0  }
   0xa LB: > { %6443 = sst [smem:[#allocation11_spill]] %s3793_s27  ;;  %s3348_s11 = sadd.s32 4294967295, %s3813_s10   ;;  %s3813_s10 = sphi %s3880_s10, %s27_s10   ;;  %s3809_s9 = sphi %s3878_s9, %s6854_s9   ;;  %s3805_s30 = sphi %s3876_s30, %s6853_s30   ;;  %s3801_s29 = sphi %s3874_s29, %s6849_s29   ;;  %s3797_s28 = sphi %s3872_s28, %s6852_s28   ;;  %s3793_s27 = sphi %s3870_s27, %s6851_s27  }
   0xb   : > { %6444 = sst [smem:[#allocation12_spill]] %s3801_s29  ;;  %s3349_s12 = sadd.s32 4294967294, %s3813_s10  }
   0xc   : > { %s39_s13 = sadd.s32 1, %s3809_s9  ;;  %s46_s14 = sadd.s32 1, %s3801_s29 }
   0xd   : > { %p41_p0 = scmp.ge.s32.totalorder %s39_s13, 2  ;;  %p53_p1 = scmp.ne.s32.totalorder %s3801_s29, %s3797_s28 }
   0xe   : > { %p54_p2 = scmp.eq.s32.totalorder %s3813_s10, 0  ;;  %p59_p3 = scmp.ne.s32.totalorder %s3797_s28, %s3793_s27 }
   0xf   : > { %s6856_s13 = smov (%p41_p0, %s39_s13), 0  ;;  %p60_p5 = scmp.eq.s32.totalorder %s3348_s11, 0 }
  0x10   : > { %6445 = sst [smem:[#allocation13_spill]] %s6856_s13  ;;  %p3911_p4 = por %p54_p2, %p53_p1 }
  0x11   : > { %s43_s16 = ssub.s32 %s3809_s9, %s6856_s13  ;;  %p239_p6 = scmp.eq.s32.totalorder %s3348_s11, 1 }
  0x12   : > { %p44_p7 = scmp.eq.s32.totalorder %s43_s16, 0  ;;  %p3917_p8 = por %p60_p5, %p59_p3 }
  0x13   : > { %p3921_p9 = por %p239_p6, %p53_p1  ;;  %p245_p10 = scmp.eq.s32.totalorder %s3349_s12, 1 }
  0x14   : > { %s3926_s19 = scalar_select %p44_p7, %s3801_s29, %s46_s14  }
  0x15   : > { %p3928_p11 = por %p245_p10, %p59_p3  ;;  %p3351_p12 = scmp.ge.s32.totalorder %s3813_s10, 2 }
  0x16   : > { %6449 = sst [smem:[#allocation14_spill]] %s3926_s19  ;;  %p3584_p13 = scmp.lt.s32.totalorder %s3813_s10, 2 }
  0x17   : > { %s6450_s20 = scalar_select %p3928_p11, 1, 0 }
  0x18   : > { %s3935_s21 = sand.u32 1, %s3801_s29   ;;  %s3565_s23 = smul.u32 2304, %s3809_s9 }
  0x19   : > { %6451 = sst [smem:[#allocation15_spill]] %s6450_s20  ;;  %s3564_s22 = smul.u32 144, %s3935_s21 }
  0x1a   : > { %p3941_p0 = pnand %p3584_p13, %p3911_p4  ;;  %s6453_s0 = sld [smem:[#allocation115_spill]] }
  0x1b   : > { %s287_s12 = scalar_lea.vmem [#allocation2], %s3564_s22  ;;  %p3356_p1 = scmp.ge.s32.totalorder %s3813_s10, 1 }
  0x1c   : > { %s294_s14 = sshll.u32 %s287_s12, 4  ;;  %s284_s16 = scalar_lea.sflag [#allocation3], %s3935_s21  ;;  %s295_s14 = int_to_ptr.vmem [resolvable:$true] %s294_s14 }
  0x1d   : > { %p3675_p2 = pneg %p3941_p0  ;;  %s3686_s13 = scalar_lea.vmem %s295_s14, 2304 }
  0x1e   : > { %p3687_p3 = scmp.ne.s32.totalorder %s295_s14, %s3686_s13  ;;  %s3815_s15 = smov [#allocation2]  }
  0x1f   : > { %s3691_s19 = sshll.u32 %s3815_s15, 4  ;;  %s3692_s19 = int_to_ptr.vmem [resolvable:$false] %s3691_s19 }
  0x20   : > { %s293_s11 = scalar_lea.hbm %s6453_s0, %s3565_s23  ;;  %p3689_p4 = pnand %p3687_p3, %p3675_p2 }
  0x21   : > { %s3693_s25 = scalar_lea.vmem %s3692_s19, 4608  ;;  %p3694_p6 = scmp.lt.s32.totalorder %s295_s14, %s3692_s19 }
  0x22   : > { %p3690_p5 = pneg %p3689_p4  ;;  %p3695_p7 = scmp.lt.s32.totalorder %s3693_s25, %s3686_s13 }
  0x24   : > { %p3696_p10 = por %p3695_p7, %p3694_p6 }
  0x26   : > { %p3697_p13 = pnand %p3696_p10, %p3690_p5 }
  0x28   : > { %3700 = shalt.err (!%p3697_p13)
}
  0x29   : > { %s3816_s22 = smov 64   ;;  %s3817_s23 = smov 4  }
  0x2a   : > { %3576 = dma.hbm_to_vmem [thread:$0]  (!%p3941_p0), %s293_s11, 2304, %s295_s14, %s284_s16, %s3816_s22, %s3816_s22, %s3817_s23  }
  0x2b   : > { %p326_p3 = scmp.lt.s32.totalorder %s3813_s10, 3  ;;  %s3353_s26 = sshll.u32 %s3935_s21, 8 }
  0x2c   : > { %s3414_s12 = sshll.u32 %s3809_s9, 12  ;;  %s308_s0 = scalar_lea.vmem [#allocation5], %s3353_s26 }
  0x2d   : > { %p3962_p4 = pnand %p3356_p1, %p326_p3  ;;  %s317_s25 = scalar_lea.hbm %s6283_s7, %s3414_s12 }
  0x2e   : > { %s318_s29 = sshll.u32 %s308_s0, 4  ;;  %s305_s20 = scalar_lea.sflag [#allocation6], %s3935_s21  ;;  %s319_s29 = int_to_ptr.vmem [resolvable:$true] %s318_s29 }
  0x2f   : > { %s3714_s27 = scalar_lea.vmem %s319_s29, 4096  ;;  %s3818_s11 = smov [#allocation5]  }
  0x30   : > { %p3715_p5 = scmp.ne.s32.totalorder %s319_s29, %s3714_s27  ;;  %s3719_s14 = sshll.u32 %s3818_s11, 4  ;;  %s3720_s14 = int_to_ptr.vmem [resolvable:$false] %s3719_s14 }
  0x31   : > { %s3721_s16 = scalar_lea.vmem %s3720_s14, 8192  ;;  %p3722_p1 = scmp.lt.s32.totalorder %s319_s29, %s3720_s14 }
  0x32   : > { %p3717_p6 = pnand %p3715_p5, %p3675_p2  ;;  %p3723_p10 = scmp.lt.s32.totalorder %s3721_s16, %s3714_s27 }
  0x34   : > { %p3718_p7 = pneg %p3717_p6  ;;  %p3724_p13 = por %p3723_p10, %p3722_p1 }
  0x36   : > { %p3725_p3 = pnand %p3724_p13, %p3718_p7 }
  0x38   : > { %3728 = shalt.err (!%p3725_p3)
}
  0x39   : > { %s3819_s22 = smov 128   ;;  %s3820_s0 = smov 8  }
  0x3a   : > { %3579 = dma.hbm_to_vmem [thread:$0]  (!%p3941_p0), %s317_s25, 4096, %s319_s29, %s305_s20, %s3819_s22, %s3819_s22, %s3820_s0  }
  0x3b   : > { %330 = sbr.rel (%p3962_p4) target bundleno = 847 (0x34f), region = 52 }
  0x40   : > { %s3978_s21 = sand.u32 1, %s3797_s28  }
  0x41   : > { %s3566_s23 = smul.u32 144, %s3978_s21  ;;  %s333_s26 = scalar_lea.sflag [#allocation3], %s3978_s21 }
  0x43   : > { %s3982_s27 = scalar_lea.vmem [#allocation2], %s3566_s23 }
  0x44   : > { %3780 = dma.done.wait (%p3917_p8), %s333_s26, 2304  }
  0x45   : > { %3782 = vsyncadd (%p3917_p8), %s333_s26, 4294964992  ;;  %s3357_s29 = sshll.u32 %s3978_s21, 8  ;;  %s342_s20 = scalar_lea.sflag [#allocation6], %s3978_s21 }
  0x46   : > { %s3992_s24 = scalar_lea.vmem [#allocation5], %s3357_s29 }
  0x47   : > { %3784 = dma.done.wait (%p3917_p8), %s342_s20, 4096  }
  0x48   : > { %3786 = vsyncadd (%p3917_p8), %s342_s20, 4294963200  ;;  %v3641_v0 = vld [vmem:[%s6277_s1 + $0x8] sm:$0xff]   ;;  %v3642_v1 = vld [vmem:[%s6277_s1] sm:$0xff]   ;;  %vm539_vm0 = vcmask 261120   ;;  %v1134_v28 = vlaneseq  ;;  %v3821_v31 = vmov 0.0   ;;  %vm987_vm1 = vcmask 1040384  }
  0x49   : > { %3460 = vmatprep.subr.bf16.mxu0 %v3641_v0  ;;  %v3643_v2 = vld [vmem:[%s3982_s27] sm:$0xff]   ;;  %v3644_v3 = vld [vmem:[%s3982_s27 + $0x8] sm:$0xff]   ;;  %v3645_v4 = vld [vmem:[%s3982_s27 + $0x10] sm:$0xff]   ;;  %v4064_v32 = vrot.slane %v3821_v31, 7  ;;  %vm1302_vm2 = vcmask 1046528   ;;  %vm1547_vm3 = vcmask 1045504  }
  0x4a   : > { %3461 = vmatpush3.bf16.msra.mxu0 %v3641_v0  ;;  %3464 = vmatprep.mubr.msk.bf16.mxu0 %vm539_vm0, %v3643_v2  ;;  %v3646_v5 = vld [vmem:[%s3982_s27 + $0x18] sm:$0xff]   ;;  %v3647_v6 = vld [vmem:[%s3982_s27 + $0x20] sm:$0xff]   ;;  %v3648_v7 = vld [vmem:[%s3982_s27 + $0x28] sm:$0xff]   ;;  %v1135_v29 = vshrl.u32 %v1134_v28, 7  ;;  %s6095_s16 = scalar_lea.vmem [#allocation7], %s3357_s29  ;;  %s3415_s29 = sshll.u32 %s3805_s30, 12 }
  0x4b   : > { %3462 = vmatprep.subr.bf16.mxu0 %v3642_v1  ;;  %v3649_v8 = vld [vmem:[%s3982_s27 + $0x30] sm:$0xff]   ;;  %v3650_v9 = vld [vmem:[%s3982_s27 + $0x38] sm:$0xff]   ;;  %v3651_v10 = vld [vmem:[%s3982_s27 + $0x40] sm:$0xff]   ;;  %6455 = vst [vmem:[#allocation16_spill] sm:$0xff] %v4064_v32  ;;  %v4073_v36 = vsel %vm987_vm1, 0.0, %v4064_v32  ;;  %v4077_v37 = vsel %vm987_vm1, %v4064_v32, 0.0  ;;  %s6222_s26 = scalar_lea.hbm %s6284_s8, %s3415_s29 }
  0x4c   : > { %v3652_v11 = vld [vmem:[%s3982_s27 + $0x48] sm:$0xff]   ;;  %v3653_v12 = vld [vmem:[%s3982_s27 + $0x50] sm:$0xff]   ;;  %v3654_v13 = vld [vmem:[%s3982_s27 + $0x58] sm:$0xff]   ;;  %v1204_v30 = vsub.s32 1, %v1135_v29  ;;  %v1449_v35 = vsub.s32 2, %v1135_v29  ;;  %6456 = vst [vmem:[#allocation17_spill] sm:$0xff] %v4073_v36 }
  0x4d   : > { %v3655_v14 = vld [vmem:[%s3982_s27 + $0x60] sm:$0xff]   ;;  %v3656_v15 = vld [vmem:[%s3982_s27 + $0x68] sm:$0xff]   ;;  %v3657_v16 = vld [vmem:[%s3982_s27 + $0x70] sm:$0xff]   ;;  %6457 = vst [vmem:[#allocation18_spill] sm:$0xff] %v4077_v37  ;;  %v1136_v38 = vsub.s32 0, %v1135_v29  ;;  %v1694_v57 = vsub.s32 3, %v1135_v29 }
  0x4e   : > { %3463 = vmatpush3.bf16.msra.mxu0 %v3642_v1  ;;  %v3658_v17 = vld [vmem:[%s3982_s27 + $0x78] sm:$0xff]   ;;  %v3659_v18 = vld [vmem:[%s3982_s27 + $0x80] sm:$0xff]   ;;  %v3660_v19 = vld [vmem:[%s3982_s27 + $0x88] sm:$0xff]   ;;  %v1762_v61 = vsub.s32 4, %v1135_v29  ;;  %v2006_v62 = vsub.s32 5, %v1135_v29  ;;  %s3236_s22 = sshll.u32 %s6095_s16, 4  ;;  %s6224_s22 = int_to_ptr.vmem [resolvable:$true] %s3236_s22 }
  0x4f   : > { %v3661_v20 = vld [vmem:[%s6281_s5 + $0x38] sm:$0xff]   ;;  %v3662_v21 = vld [vmem:[%s6281_s5 + $0x30] sm:$0xff]   ;;  %v3663_v22 = vld [vmem:[%s6281_s5 + $0x28] sm:$0xff]   ;;  %s3220_s30 = scalar_lea.sflag [#allocation4], %s3978_s21  ;;  %s3822_s27 = smov [#allocation7]  }
  0x50   : > { %3500 = vmatprep.subr.bf16.mxu0 %v3661_v20  ;;  %3548 = vmatprep.subr.bf16.mxu1 %v3661_v20  ;;  %v3664_v23 = vld [vmem:[%s6281_s5 + $0x20] sm:$0xff]   ;;  %v3665_v24 = vld [vmem:[%s6281_s5 + $0x18] sm:$0xff]   ;;  %v3666_v25 = vld [vmem:[%s6281_s5 + $0x10] sm:$0xff]   ;;  %s3733_s20 = sshll.u32 %s3822_s27, 4  ;;  %s3734_s20 = int_to_ptr.vmem [resolvable:$false] %s3733_s20 }
  0x51   : > { %3465 = vmatmul.mubr.msk.bf16.vlgmr.msra.gmra.mxu0 %vm539_vm0, %v3644_v3  ;;  %3556 = vmatpush3.bf16.msra.mxu1 %v3661_v20  ;;  %v3667_v26 = vld [vmem:[%s6281_s5 + $0x8] sm:$0xff]   ;;  %v3668_v27 = vld [vmem:[%s6281_s5] sm:$0xff]   ;;  %s3735_s12 = scalar_lea.vmem %s3734_s20, 8192  ;;  %p3736_p4 = scmp.lt.s32.totalorder %s6224_s22, %s3734_s20 }
  0x52   : > { %3468 = vmatprep.mubr.msk.bf16.mxu0 %vm539_vm0, %v3645_v4  ;;  %3501 = vmatpush3.bf16.msra.mxu0 %v3661_v20  ;;  %v1132_v33 = vld [vmem:[%s6279_s3] sm:$0xff]  ;;  %v2318_v4 = vsub.s32 7, %v1135_v29 }
  0x53   : > { %3502 = vmatprep.subr.bf16.mxu0 %v3662_v21  ;;  %3549 = vmatprep.subr.bf16.mxu1 %v3662_v21  ;;  %v4069_v34 = vrot.slane %v1132_v33, %v1204_v30  ;;  %v4083_v41 = vrot.slane %v1132_v33, %v1449_v35  ;;  %v4087_v43 = vrot.slane %v1132_v33, %v1136_v38  ;;  %v4098_v50 = vld [vmem:[%s6278_s2] ss:$0 sm:$0xff] }
  0x55   : > { %3557 = vmatpush3.bf16.msra.mxu1 %v3662_v21  ;;  %v1206_v39 = vmul.f32 %v4069_v34, %v4073_v36  ;;  %v1207_v40 = vmul.f32 %v4069_v34, %v4064_v32  ;;  %v1208_v42 = vmul.f32 %v4069_v34, %v4077_v37  ;;  %v1451_v46 = vmul.f32 %v4083_v41, %v4073_v36 }
  0x56   : > { %3503 = vmatpush3.bf16.msra.mxu0 %v3662_v21  ;;  %3550 = vmatprep.subr.bf16.mxu1 %v3663_v22  ;;  %v1452_v47 = vmul.f32 %v4083_v41, %v4064_v32  ;;  %v1453_v49 = vmul.f32 %v4083_v41, %v4077_v37  ;;  %v1138_v51 = vmul.f32 %v4087_v43, %v4073_v36 }
  0x57   : > { %3504 = vmatprep.subr.bf16.mxu0 %v3663_v22  ;;  %v1303_v44 = vrot.slane %v1206_v39, 1  ;;  %v1304_v45 = vrot.slane %v1207_v40, 1  ;;  %v1306_v48 = vrot.slane %v1208_v42, 1  ;;  %v1548_v53 = vrot.slane %v1451_v46, 2 }
  0x58   : > { %v1549_v54 = vrot.slane %v1452_v47, 2  ;;  %v1139_v55 = vmul.f32 %v4087_v43, %v4064_v32  ;;  %v1551_v59 = vrot.slane %v1453_v49, 2 }
  0x59   : > { %3469 = vmatmul.mubr.msk.bf16.gmra.mxu0 %vm539_vm0, %v3646_v5  ;;  %3558 = vmatpush3.bf16.msra.mxu1 %v3663_v22  ;;  %v1305_v52 = vsel %vm1302_vm2, %v1303_v44, %v1304_v45  ;;  %v1307_v58 = vsel %vm1302_vm2, %v1304_v45, %v1306_v48  ;;  %v4108_v5 = vrot.slane %v1132_v33, %v1694_v57 }
  0x5a   : > { %3472 = vmatprep.mubr.msk.bf16.mxu0 %vm539_vm0, %v3647_v6  ;;  %3505 = vmatpush3.bf16.msra.mxu0 %v3663_v22  ;;  %v1415_v63 = vadd.f32 %v1305_v52, %v1138_v51  ;;  %v1550_v2 = vsel %vm1547_vm3, %v1548_v53, %v1549_v54  ;;  %v1416_v3 = vadd.f32 %v1307_v58, %v1139_v55 }
  0x5b   : > { %3506 = vmatprep.subr.bf16.mxu0 %v3664_v23  ;;  %3551 = vmatprep.subr.bf16.mxu1 %v3664_v23  ;;  %6458 = vst [vmem:[#allocation19_spill] sm:$0xff] %v4108_v5 }
  0x5d   : > { %3559 = vmatpush3.bf16.msra.mxu1 %v3664_v23 }
  0x5e   : > { %3507 = vmatpush3.bf16.msra.mxu0 %v3664_v23  ;;  %3552 = vmatprep.subr.bf16.mxu1 %v3665_v24 }
  0x5f   : > { %3508 = vmatprep.subr.bf16.mxu0 %v3665_v24 }
  0x61   : > { %3473 = vmatmul.mubr.msk.bf16.gmra.mxu0 %vm539_vm0, %v3648_v7  ;;  %3560 = vmatpush3.bf16.msra.mxu1 %v3665_v24  ;;  %v1552_v7 = vsel %vm1547_vm3, %v1549_v54, %v1551_v59 }
  0x62   : > { %3476 = vmatprep.mubr.msk.bf16.mxu0 %vm539_vm0, %v3649_v8  ;;  %3509 = vmatpush3.bf16.msra.mxu0 %v3665_v24  ;;  %v2250_v8 = vsub.s32 6, %v1135_v29 }
  0x63   : > { %3510 = vmatprep.subr.bf16.mxu0 %v3666_v25  ;;  %3553 = vmatprep.subr.bf16.mxu1 %v3666_v25 }
  0x64   : > { %v4122_v23 = vrot.slane %v1132_v33, %v2250_v8 }
  0x65   : > { %3561 = vmatpush3.bf16.msra.mxu1 %v3666_v25 }
  0x66   : > { %3511 = vmatpush3.bf16.msra.mxu0 %v3666_v25  ;;  %3554 = vmatprep.subr.bf16.mxu1 %v3667_v26 }
  0x67   : > { %3512 = vmatprep.subr.bf16.mxu0 %v3667_v26 }
  0x69   : > { %3477 = vmatmul.mubr.msk.bf16.gmra.mxu0 %vm539_vm0, %v3650_v9  ;;  %3562 = vmatpush3.bf16.msra.mxu1 %v3667_v26 }
  0x6a   : > { %3480 = vmatprep.mubr.msk.bf16.mxu0 %vm539_vm0, %v3651_v10  ;;  %3513 = vmatpush3.bf16.msra.mxu0 %v3667_v26  ;;  %v4111_v10 = vrot.slane %v1132_v33, %v1762_v61 }
  0x6b   : > { %3514 = vmatprep.subr.bf16.mxu0 %v3668_v27  ;;  %3555 = vmatprep.subr.bf16.mxu1 %v3668_v27 }
  0x6d   : > { %3563 = vmatpush3.bf16.msra.mxu1 %v3668_v27 }
  0x6e   : > { %3515 = vmatpush3.bf16.msra.mxu0 %v3668_v27 }
  0x71   : > { %3481 = vmatmul.mubr.msk.bf16.gmra.mxu0 %vm539_vm0, %v3652_v11  ;;  %v4113_v11 = vrot.slane %v1132_v33, %v2006_v62 }
  0x72   : > { %3484 = vmatprep.mubr.msk.bf16.mxu0 %vm539_vm0, %v3653_v12 }
  0x79   : > { %3485 = vmatmul.mubr.msk.bf16.gmra.mxu0 %vm539_vm0, %v3654_v13  ;;  %v1660_v13 = vadd.f32 %v1550_v2, %v1415_v63 }
  0x7a   : > { %3488 = vmatprep.mubr.msk.bf16.mxu0 %vm539_vm0, %v3655_v14 }
  0x81   : > { %3489 = vmatmul.mubr.msk.bf16.gmra.mxu0 %vm539_vm0, %v3656_v15 }
  0x82   : > { %3492 = vmatprep.mubr.msk.bf16.mxu0 %vm539_vm0, %v3657_v16 }
  0x89   : > { %3493 = vmatmul.mubr.msk.bf16.gmra.mxu0 %vm539_vm0, %v3658_v17  ;;  %v1661_v17 = vadd.f32 %v1552_v7, %v1416_v3 }
  0x8a   : > { %3496 = vmatprep.mubr.msk.bf16.mxu0 %vm539_vm0, %v3659_v18  ;;  %v4117_v18 = vrot.slane %v1132_v33, %v2318_v4 }
  0x91   : > { %3497 = vmatmul.mubr.msk.bf16.gmra.mxu0 %vm539_vm0, %v3660_v19 }
 0x111   : > { %v3466_v56 = vpop.f32.mrf.mxu0 }
 0x112   : > { %v637_v60 = vadd.f32 %v3466_v56, %v4098_v50 }
 0x113   : > { %v628_v0 = vpop.f32.mrf.mxu0 }
 0x114   : > { %v773_v1 = vmax.f32 %v637_v60, 0.0 }
 0x115   : > { %v3467_v6 = vpop.f32.mrf.mxu0 }
 0x116   : > { %v991_v9 = vrot.slane %v773_v1, 7  ;;  %v640_v12 = vadd.f32 %v3467_v6, %v4098_v50 }
 0x117   : > { %v631_v14 = vpop.f32.mrf.mxu0 }
 0x118   : > { %v1097_v15 = vsel %vm987_vm1, 0.0, %v991_v9  ;;  %v774_v16 = vmax.f32 %v640_v12, 0.0 }
 0x119   : > { %v1209_v19 = vmul.f32 %v4069_v34, %v1097_v15  ;;  %v1454_v20 = vmul.f32 %v4083_v41, %v1097_v15  ;;  %v1696_v21 = vmul.f32 %v4108_v5, %v1097_v15  ;;  %v3470_v22 = vpop.f32.mrf.mxu0  ;;  %v1140_v24 = vmul.f32 %v4087_v43, %v1097_v15 }
 0x11a   : > { %v4126_v25 = vmul.f32 %v4111_v10, %v1097_v15  ;;  %v4129_v26 = vmul.f32 %v4113_v11, %v1097_v15  ;;  %v992_v27 = vrot.slane %v774_v16, 7  ;;  %v653_v31 = vadd.f32 %v3470_v22, %v4098_v50 }
 0x11b   : > { %v1308_v28 = vrot.slane %v1209_v19, 1  ;;  %v1553_v29 = vrot.slane %v1454_v20, 2  ;;  %v4131_v30 = vadd.f32 %v1696_v21, %v1660_v13  ;;  %v644_v35 = vpop.f32.mrf.mxu0 }
 0x11c   : > { %v993_v39 = vsel %vm987_vm1, %v991_v9, %v992_v27  ;;  %v1115_v40 = vsel %vm987_vm1, %v992_v27, 0.0  ;;  %v777_v13 = vmax.f32 %v653_v31, 0.0 }
 0x11d   : > { %v1141_v42 = vmul.f32 %v4087_v43, %v993_v39  ;;  %v1210_v44 = vmul.f32 %v4069_v34, %v993_v39  ;;  %v1211_v45 = vmul.f32 %v4069_v34, %v1115_v40  ;;  %v1455_v46 = vmul.f32 %v4083_v41, %v993_v39  ;;  %v3471_v47 = vpop.f32.mrf.mxu0 }
 0x11e   : > { %v1456_v48 = vmul.f32 %v4083_v41, %v1115_v40  ;;  %v1697_v49 = vmul.f32 %v4108_v5, %v993_v39  ;;  %v4145_v51 = vmul.f32 %v4111_v10, %v993_v39  ;;  %v1766_v52 = vmul.f32 %v4111_v10, %v1115_v40 }
 0x11f   : > { %v1309_v53 = vrot.slane %v1210_v44, 1  ;;  %v1311_v54 = vrot.slane %v1211_v45, 1  ;;  %v1554_v55 = vrot.slane %v1455_v46, 2  ;;  %v4149_v56 = vmul.f32 %v4113_v11, %v993_v39  ;;  %v647_v57 = vpop.f32.mrf.mxu0 }
 0x120   : > { %v1556_v58 = vrot.slane %v1456_v48, 2  ;;  %v1729_v59 = vadd.f32 %v1697_v49, %v1661_v17  ;;  %v6290_v60 = vrot.slane %v4145_v51, 1  ;;  %v1863_v61 = vrot.slane %v1766_v52, 1 }
 0x121   : > { %v1310_v62 = vsel %vm1302_vm2, %v1308_v28, %v1309_v53  ;;  %v1312_v63 = vsel %vm1302_vm2, %v1309_v53, %v1311_v54  ;;  %v1555_v0 = vsel %vm1547_vm3, %v1553_v29, %v1554_v55  ;;  %v2010_v1 = vmul.f32 %v4113_v11, %v1115_v40  ;;  %v3474_v2 = vpop.f32.mrf.mxu0 }
 0x122   : > { %v1417_v3 = vadd.f32 %v1310_v62, %v1140_v24  ;;  %v1418_v4 = vadd.f32 %v1312_v63, %v1141_v42  ;;  %v1557_v6 = vsel %vm1547_vm3, %v1554_v55, %v1556_v58  ;;  %v1864_v7 = vsel %vm1302_vm2, %v6290_v60, %v1863_v61 }
 0x123   : > { %v1973_v8 = vadd.f32 %v1864_v7, %v1729_v59  ;;  %v6289_v9 = vrot.slane %v4149_v56, 2  ;;  %v2107_v12 = vrot.slane %v2010_v1, 2  ;;  %v660_v14 = vpop.f32.mrf.mxu0  ;;  %v645_v17 = vadd.f32 %v4098_v50, %v644_v35 }
 0x124   : > { %v1662_v15 = vadd.f32 %v1555_v0, %v1417_v3  ;;  %v4161_v16 = vadd.f32 %v1557_v6, %v1418_v4  ;;  %v656_v19 = vadd.f32 %v3471_v47, %v4098_v50  ;;  %v997_v21 = vrot.slane %v777_v13, 7 }
 0x125   : > { %v2108_v20 = vsel %vm1547_vm3, %v6289_v9, %v2107_v12  ;;  %v648_v22 = vadd.f32 %v4098_v50, %v647_v57  ;;  %v669_v24 = vadd.f32 %v3474_v2, %v4098_v50  ;;  %v3475_v27 = vpop.f32.mrf.mxu0  ;;  %v775_v29 = vmax.f32 %v645_v17, 0.0 }
 0x126   : > { %v4170_v28 = vadd.f32 %v2108_v20, %v1973_v8  ;;  %v778_v31 = vmax.f32 %v656_v19, 0.0  ;;  %v4173_v39 = vadd.f32 %v4098_v50, %v660_v14  ;;  %v4176_v35 = vsel %vm987_vm1, 0.0, %v997_v21 }
 0x127   : > { %v776_v40 = vmax.f32 %v648_v22, 0.0  ;;  %v781_v42 = vmax.f32 %v669_v24, 0.0  ;;  %v4179_v44 = vadd.f32 %v3475_v27, %v4098_v50  ;;  %v4181_v45 = vpop.f32.mrf.mxu0  ;;  %v4185_v46 = vmul.f32 %v4087_v43, %v4176_v35 }
 0x128   : > { %v4189_v47 = vmul.f32 %v4069_v34, %v4176_v35  ;;  %v4193_v48 = vmul.f32 %v4083_v41, %v4176_v35  ;;  %v4197_v49 = vmul.f32 %v4117_v18, %v4176_v35  ;;  %v994_v52 = vrot.slane %v775_v29, 7 }
 0x129   : > { %6459 = vst [vmem:[#allocation20_spill] sm:$0xff] %v4185_v46  ;;  %v998_v53 = vrot.slane %v778_v31, 7  ;;  %v995_v54 = vrot.slane %v776_v40, 7  ;;  %v4199_v55 = vrot.slane %v781_v42, 7  ;;  %v4201_v57 = vpop.f32.mrf.mxu0 }
 0x12a   : > { %6460 = vst [vmem:[#allocation21_spill] sm:$0xff] %v4189_v47  ;;  %6461 = vst [vmem:[#allocation22_spill] sm:$0xff] %v4193_v48  ;;  %v4208_v63 = vsel %vm987_vm1, 0.0, %v994_v52 }
 0x12b   : > { %v4211_v0 = vsel %vm987_vm1, %v997_v21, %v998_v53  ;;  %v1117_v1 = vsel %vm987_vm1, %v998_v53, 0.0  ;;  %v4215_v2 = vsel %vm987_vm1, %v994_v52, %v995_v54  ;;  %v4217_v3 = vpop.f32.mrf.mxu0  ;;  %v4221_v4 = vmul.f32 %v4069_v34, %v4208_v63 }
 0x12c   : > { %v1698_v6 = vmul.f32 %v4108_v5, %v4208_v63  ;;  %v4227_v7 = vmul.f32 %v4111_v10, %v4208_v63  ;;  %v4231_v8 = vmul.f32 %v4113_v11, %v4208_v63  ;;  %v1145_v12 = vmul.f32 %v4087_v43, %v4211_v0 }
 0x12d   : > { %v4237_v13 = vmul.f32 %v4069_v34, %v4211_v0  ;;  %v1217_v14 = vmul.f32 %v4069_v34, %v1117_v1  ;;  %v4242_v17 = vmul.f32 %v4083_v41, %v4211_v0  ;;  %v4244_v19 = vpop.f32.mrf.mxu0  ;;  %v1462_v24 = vmul.f32 %v4083_v41, %v1117_v1 }
 0x12e   : > { %v4246_v20 = vadd.f32 %v1698_v6, %v1662_v15  ;;  %v4254_v40 = vmul.f32 %v4111_v10, %v1117_v1  ;;  %v4261_v15 = vld [vmem:[%s6279_s3 + $0x8] ss:$0 sm:$0xff]  ;;  %v4264_v53 = vmul.f32 %v4113_v11, %v1117_v1  ;;  %v4268_v6 = vmul.f32 %v4117_v18, %v4211_v0 }
 0x12f   : > { %6462 = vst [vmem:[#allocation23_spill] sm:$0xff] %v4237_v13  ;;  %6463 = vst [vmem:[#allocation24_spill] sm:$0xff] %v4242_v17  ;;  %v6291_v27 = vrot.slane %v4237_v13, 1  ;;  %v1321_v29 = vrot.slane %v1217_v14, 1  ;;  %v6292_v31 = vrot.slane %v4242_v17, 2  ;;  %v4256_v42 = vpop.f32.mrf.mxu0  ;;  %v1566_v52 = vrot.slane %v1462_v24, 2 }
 0x130   : > { %6464 = vst [vmem:[#allocation25_spill] sm:$0xff] %v4254_v40  ;;  %6465 = vst [vmem:[#allocation26_spill] sm:$0xff] %v4264_v53  ;;  %v2325_v14 = vmul.f32 %v4117_v18, %v1117_v1  ;;  %v4276_v22 = vmul.f32 %v4261_v15, %v1117_v1  ;;  %v1116_v24 = vsel %vm987_vm1, %v995_v54, 0.0  ;;  %v6297_v60 = vrot.slane %v4268_v6, 1 }
 0x131   : > { %v1322_v59 = vsel %vm1302_vm2, %v6291_v27, %v1321_v29  ;;  %v4279_v21 = vpop.f32.mrf.mxu0  ;;  %v1567_v9 = vsel %vm1547_vm3, %v6292_v31, %v1566_v52  ;;  %v4289_v1 = vmul.f32 %v4069_v34, %v4215_v2  ;;  %v1214_v54 = vmul.f32 %v4069_v34, %v1116_v24 }
 0x132   : > { %6466 = vst [vmem:[#allocation27_spill] sm:$0xff] %v4276_v22  ;;  %v1422_v33 = vadd.f32 %v1322_v59, %v1145_v12  ;;  %v2424_v62 = vrot.slane %v2325_v14, 1  ;;  %v4297_v12 = vmul.f32 %v4083_v41, %v1116_v24  ;;  %v1699_v52 = vmul.f32 %v4108_v5, %v4215_v2 }
 0x133   : > { %6467 = vst [vmem:[#allocation28_spill] sm:$0xff] %v4289_v1  ;;  %v4292_v27 = vpop.f32.mrf.mxu0  ;;  %v4303_v14 = vmul.f32 %v4111_v10, %v4215_v2  ;;  %v6300_v38 = vrot.slane %v4289_v1, 1  ;;  %v1316_v58 = vrot.slane %v1214_v54, 1  ;;  %v4319_v32 = vmul.f32 %v4113_v11, %v4215_v2 }
 0x134   : > { %v4294_v59 = vadd.f32 %v1567_v9, %v1422_v33  ;;  %6469 = vst [vmem:[#allocation30_spill] sm:$0xff] %v4297_v12  ;;  %v4308_v31 = vsel %vm1302_vm2, %v6297_v60, %v2424_v62  ;;  %v1769_v33 = vmul.f32 %v4111_v10, %v1116_v24  ;;  %v1731_v61 = vadd.f32 %v1699_v52, %v4161_v16 }
 0x135   : > { %v4312_v9 = vpop.f32.mrf.mxu0  ;;  %v4324_v62 = vsel %vm1302_vm2, %v6300_v38, %v1316_v58  ;;  %v2013_v60 = vmul.f32 %v4113_v11, %v1116_v24  ;;  %v4328_v36 = vmul.f32 %v4117_v18, %v1116_v24  ;;  %v4334_v52 = vmul.f32 %v4261_v15, %v1116_v24 }
 0x136   : > { %6468 = vst [vmem:[#allocation29_spill] sm:$0xff] %v4294_v59  ;;  %6470 = vst [vmem:[#allocation31_spill] sm:$0xff] %v4324_v62  ;;  %v1868_v54 = vrot.slane %v1769_v33, 1  ;;  %v4338_v37 = vsel %vm987_vm1, 0.0, %v4199_v55  ;;  %v6472_v58 = vmax.f32 %v4173_v39, 0.0  ;;  %v6473_v33 = vrot.slane %v4303_v14, 1 }
 0x137   : > { %v4330_v29 = vpop.f32.mrf.mxu0  ;;  %6471 = vst [vmem:[#allocation32_spill] sm:$0xff] %v4338_v37  ;;  %v2112_v48 = vrot.slane %v2013_v60, 2  ;;  %v4348_v16 = vmul.f32 %v4087_v43, %v4338_v37  ;;  %v4355_v39 = vmul.f32 %v4069_v34, %v4338_v37  ;;  %v6477_v60 = vrot.slane %v4319_v32, 2 }
 0x138   : > { %v1000_v38 = vrot.slane %v6472_v58, 7  ;;  %v1869_v59 = vsel %vm1302_vm2, %v6473_v33, %v1868_v54  ;;  %v4359_v58 = vmul.f32 %v4083_v41, %v4338_v37  ;;  %v6479_v17 = vmax.f32 %v4179_v44, 0.0 }
 0x139   : > { %6474 = vst [vmem:[#allocation33_spill] sm:$0xff] %v4348_v16  ;;  %v4350_v24 = vpop.f32.mrf.mxu0  ;;  %v1975_v46 = vadd.f32 %v1869_v59, %v1731_v61  ;;  %6475 = vst [vmem:[#allocation34_spill] sm:$0xff] %v4355_v39  ;;  %v2113_v54 = vsel %vm1547_vm3, %v6477_v60, %v2112_v48  ;;  %v664_v59 = vadd.f32 %v4098_v50, %v4181_v45 }
 0x13a   : > { %6476 = vst [vmem:[#allocation35_spill] sm:$0xff] %v4359_v58  ;;  %v4365_v33 = vsel %vm987_vm1, 0.0, %v1000_v38  ;;  %v1004_v61 = vrot.slane %v6479_v17, 7 }
 0x13b   : > { %6478 = vst [vmem:[#allocation36_spill] sm:$0xff] %v4365_v33  ;;  %v4371_v47 = vpop.f32.mrf.mxu0  ;;  %v4373_v16 = vadd.f32 %v2113_v54, %v1975_v46  ;;  %v4379_v48 = vmul.f32 %v4087_v43, %v4365_v33  ;;  %v4383_v60 = vmul.f32 %v4069_v34, %v4365_v33  ;;  %v4387_v44 = vmul.f32 %v4083_v41, %v4365_v33 }
 0x13c   : > { %v4391_v45 = vsel %vm987_vm1, %v4199_v55, %v1004_v61  ;;  %v1119_v46 = vsel %vm987_vm1, %v1004_v61, 0.0  ;;  %v685_v33 = vadd.f32 %v4201_v57, %v4098_v50 }
 0x13d   : > { %6480 = vst [vmem:[#allocation37_spill] sm:$0xff] %v4379_v48  ;;  %6481 = vst [vmem:[#allocation38_spill] sm:$0xff] %v4383_v60  ;;  %v1149_v17 = vmul.f32 %v4087_v43, %v4391_v45  ;;  %v4398_v54 = vmul.f32 %v4069_v34, %v4391_v45  ;;  %v1223_v13 = vmul.f32 %v4069_v34, %v1119_v46  ;;  %v4405_v58 = vpop.f32.mrf.mxu0  ;;  %v780_v60 = vmax.f32 %v664_v59, 0.0 }
 0x13e   : > { %6482 = vst [vmem:[#allocation39_spill] sm:$0xff] %v4387_v44  ;;  %6483 = vst [vmem:[#allocation40_spill] sm:$0xff] %v4391_v45  ;;  %v4403_v37 = vmul.f32 %v4083_v41, %v4391_v45  ;;  %v1468_v61 = vmul.f32 %v4083_v41, %v1119_v46  ;;  %v4411_v48 = vmul.f32 %v4111_v10, %v1119_v46  ;;  %v785_v22 = vmax.f32 %v685_v33, 0.0 }
 0x13f   : > { %6484 = vst [vmem:[#allocation41_spill] sm:$0xff] %v4398_v54  ;;  %v6324_v53 = vrot.slane %v4398_v54, 1  ;;  %v1331_v40 = vrot.slane %v1223_v13, 1  ;;  %v4416_v12 = vmul.f32 %v4113_v11, %v1119_v46  ;;  %v4420_v55 = vmul.f32 %v4117_v18, %v1119_v46  ;;  %v4431_v1 = vpop.f32.mrf.mxu0 }
 0x140   : > { %6485 = vst [vmem:[#allocation42_spill] sm:$0xff] %v4403_v37  ;;  %6486 = vst [vmem:[#allocation43_spill] sm:$0xff] %v4411_v48  ;;  %v1576_v45 = vrot.slane %v1468_v61, 2  ;;  %v4423_v39 = vmul.f32 %v4261_v15, %v1119_v46  ;;  %v6490_v5 = vrot.slane %v4403_v37, 2  ;;  %v1001_v54 = vrot.slane %v780_v60, 7 }
 0x141   : > { %6487 = vst [vmem:[#allocation44_spill] sm:$0xff] %v4416_v12  ;;  %6488 = vst [vmem:[#allocation45_spill] sm:$0xff] %v4420_v55  ;;  %v1332_v44 = vsel %vm1302_vm2, %v6324_v53, %v1331_v40  ;;  %v677_v40 = vadd.f32 %v4098_v50, %v4217_v3  ;;  %v688_v59 = vadd.f32 %v4244_v19, %v4098_v50  ;;  %v1009_v60 = vrot.slane %v785_v22, 7 }
 0x142   : > { %6489 = vst [vmem:[#allocation46_spill] sm:$0xff] %v4423_v39  ;;  %v1426_v61 = vadd.f32 %v1332_v44, %v1149_v17  ;;  %v1577_v48 = vsel %vm1547_vm3, %v6490_v5, %v1576_v45  ;;  %v680_v44 = vadd.f32 %v4098_v50, %v4256_v42  ;;  %v701_v5 = vadd.f32 %v4279_v21, %v4098_v50 }
 0x143   : > { %v4450_v45 = vadd.f32 %v4098_v50, %v4292_v27  ;;  %v4453_v33 = vsel %vm987_vm1, %v1000_v38, %v1001_v54  ;;  %v4456_v3 = vsel %vm987_vm1, %v1001_v54, 0.0  ;;  %v783_v19 = vmax.f32 %v677_v40, 0.0 }
 0x144   : > { %v4442_v57 = vadd.f32 %v1577_v48, %v1426_v61  ;;  %6492 = vst [vmem:[#allocation48_spill] sm:$0xff] %v4456_v3  ;;  %v4458_v48 = vpop.f32.mrf.mxu0  ;;  %v1147_v42 = vmul.f32 %v4087_v43, %v4453_v33  ;;  %v4464_v21 = vmul.f32 %v4069_v34, %v4453_v33  ;;  %v1220_v27 = vmul.f32 %v4069_v34, %v4456_v3 }
 0x145   : > { %v4470_v38 = vmul.f32 %v4083_v41, %v4453_v33  ;;  %v1465_v22 = vmul.f32 %v4083_v41, %v4456_v3  ;;  %v4476_v17 = vmul.f32 %v4111_v10, %v4456_v3  ;;  %v4480_v54 = vmul.f32 %v4113_v11, %v4456_v3 }
 0x146   : > { %6491 = vst [vmem:[#allocation47_spill] sm:$0xff] %v4442_v57  ;;  %6493 = vst [vmem:[#allocation49_spill] sm:$0xff] %v4464_v21  ;;  %v4483_v61 = vsel %vm987_vm1, 0.0, %v1009_v60  ;;  %v6332_v40 = vrot.slane %v4464_v21, 1  ;;  %v1326_v53 = vrot.slane %v1220_v27, 1  ;;  %v4497_v39 = vpop.f32.mrf.mxu0 }
 0x147   : > { %6494 = vst [vmem:[#allocation50_spill] sm:$0xff] %v4470_v38  ;;  %6495 = vst [vmem:[#allocation51_spill] sm:$0xff] %v4476_v17  ;;  %v4489_v62 = vmul.f32 %v4087_v43, %v4483_v61  ;;  %v1571_v46 = vrot.slane %v1465_v22, 2  ;;  %v4495_v12 = vmul.f32 %v4069_v34, %v4483_v61  ;;  %v4504_v13 = vmul.f32 %v4083_v41, %v4483_v61 }
 0x148   : > { %6496 = vst [vmem:[#allocation52_spill] sm:$0xff] %v4480_v54  ;;  %6497 = vst [vmem:[#allocation53_spill] sm:$0xff] %v4483_v61  ;;  %v1327_v27 = vsel %vm1302_vm2, %v6332_v40, %v1326_v53  ;;  %v786_v22 = vmax.f32 %v688_v59, 0.0  ;;  %v6502_v57 = vrot.slane %v4470_v38, 2  ;;  %v784_v17 = vmax.f32 %v680_v44, 0.0 }
 0x149   : > { %6498 = vst [vmem:[#allocation54_spill] sm:$0xff] %v4489_v62  ;;  %6499 = vst [vmem:[#allocation55_spill] sm:$0xff] %v4495_v12  ;;  %v1006_v62 = vrot.slane %v783_v19, 7  ;;  %v1424_v55 = vadd.f32 %v1327_v27, %v1147_v42  ;;  %v789_v40 = vmax.f32 %v701_v5, 0.0 }
 0x14a   : > { %6500 = vst [vmem:[#allocation56_spill] sm:$0xff] %v4497_v39  ;;  %6501 = vst [vmem:[#allocation57_spill] sm:$0xff] %v4504_v13  ;;  %v1572_v37 = vsel %vm1547_vm3, %v6502_v57, %v1571_v46  ;;  %v1010_v53 = vrot.slane %v786_v22, 7  ;;  %v4528_v57 = vpop.f32.mrf.mxu0 }
 0x14b   : > { %v4512_v21 = vsel %vm987_vm1, 0.0, %v1006_v62  ;;  %v4514_v3 = vadd.f32 %v1572_v37, %v1424_v55  ;;  %v1007_v55 = vrot.slane %v784_v17, 7  ;;  %v4534_v5 = vrot.slane %v789_v40, 7 }
 0x14c   : > { %6503 = vst [vmem:[#allocation58_spill] sm:$0xff] %v4512_v21  ;;  %v4518_v59 = vmul.f32 %v4087_v43, %v4512_v21  ;;  %v4522_v19 = vmul.f32 %v4069_v34, %v4512_v21  ;;  %v4526_v46 = vmul.f32 %v4083_v41, %v4512_v21  ;;  %v4531_v44 = vsel %vm987_vm1, %v1009_v60, %v1010_v53  ;;  %v4563_v12 = vpop.f32.mrf.mxu0 }
 0x14d   : > { %6504 = vst [vmem:[#allocation59_spill] sm:$0xff] %v4514_v3  ;;  %6508 = vst [vmem:[#allocation63_spill] sm:$0xff] %v4531_v44  ;;  %v1121_v37 = vsel %vm987_vm1, %v1010_v53, 0.0  ;;  %v1153_v22 = vmul.f32 %v4087_v43, %v4531_v44  ;;  %v4542_v39 = vmul.f32 %v4069_v34, %v4531_v44  ;;  %v4547_v60 = vmul.f32 %v4083_v41, %v4531_v44 }
 0x14e   : > { %6505 = vst [vmem:[#allocation60_spill] sm:$0xff] %v4518_v59  ;;  %6506 = vst [vmem:[#allocation61_spill] sm:$0xff] %v4522_v19  ;;  %v1229_v54 = vmul.f32 %v4069_v34, %v1121_v37  ;;  %v1474_v17 = vmul.f32 %v4083_v41, %v1121_v37  ;;  %v4551_v40 = vmul.f32 %v4111_v10, %v1121_v37 }
 0x14f   : > { %6507 = vst [vmem:[#allocation62_spill] sm:$0xff] %v4526_v46  ;;  %6509 = vst [vmem:[#allocation64_spill] sm:$0xff] %v4542_v39  ;;  %v4555_v27 = vmul.f32 %v4113_v11, %v1121_v37  ;;  %v4558_v42 = vmul.f32 %v4117_v18, %v1121_v37  ;;  %v4561_v13 = vmul.f32 %v4261_v15, %v1121_v37  ;;  %v6346_v46 = vrot.slane %v4547_v60, 2 }
 0x150   : > { %6510 = vst [vmem:[#allocation65_spill] sm:$0xff] %v4547_v60  ;;  %6511 = vst [vmem:[#allocation66_spill] sm:$0xff] %v4551_v40  ;;  %v1341_v59 = vrot.slane %v1229_v54, 1  ;;  %v1586_v19 = vrot.slane %v1474_v17, 2  ;;  %v4571_v3 = vsel %vm987_vm1, %v1006_v62, %v1007_v55  ;;  %v6516_v37 = vrot.slane %v4542_v39, 1 }
 0x151   : > { %6512 = vst [vmem:[#allocation67_spill] sm:$0xff] %v4555_v27  ;;  %6513 = vst [vmem:[#allocation68_spill] sm:$0xff] %v4558_v42  ;;  %v1120_v17 = vsel %vm987_vm1, %v1007_v55, 0.0  ;;  %v1151_v61 = vmul.f32 %v4087_v43, %v4571_v3  ;;  %v4584_v21 = vmul.f32 %v4069_v34, %v4571_v3  ;;  %v4589_v53 = vmul.f32 %v4083_v41, %v4571_v3 }
 0x152   : > { %6514 = vst [vmem:[#allocation69_spill] sm:$0xff] %v4561_v13  ;;  %6515 = vst [vmem:[#allocation70_spill] sm:$0xff] %v4571_v3  ;;  %v1342_v38 = vsel %vm1302_vm2, %v6516_v37, %v1341_v59  ;;  %v1587_v54 = vsel %vm1547_vm3, %v6346_v46, %v1586_v19  ;;  %v1226_v62 = vmul.f32 %v4069_v34, %v1120_v17  ;;  %v4591_v59 = vpop.f32.mrf.mxu0  ;;  %v6529_v42 = vrot.slane %v4126_v25, 1 }
 0x153   : > { %v1430_v44 = vadd.f32 %v1342_v38, %v1153_v22  ;;  %6517 = vst [vmem:[#allocation71_spill] sm:$0xff] %v4584_v21  ;;  %6518 = vst [vmem:[#allocation72_spill] sm:$0xff] %v4589_v53  ;;  %v1471_v19 = vmul.f32 %v4083_v41, %v1120_v17  ;;  %v4595_v55 = vmul.f32 %v4111_v10, %v1120_v17  ;;  %v6355_v46 = vrot.slane %v4584_v21, 1 }
 0x154   : > { %6519 = vst [vmem:[#allocation73_spill] sm:$0xff] %v4591_v59  ;;  %v4598_v37 = vmul.f32 %v4113_v11, %v1120_v17  ;;  %v4601_v38 = vmul.f32 %v4117_v18, %v1120_v17  ;;  %v1336_v60 = vrot.slane %v1226_v62, 1  ;;  %v6356_v39 = vrot.slane %v4589_v53, 2  ;;  %v4621_v62 = vpop.f32.mrf.mxu0 }
 0x155   : > { %6520 = vst [vmem:[#allocation74_spill] sm:$0xff] %v4595_v55  ;;  %v4603_v22 = vadd.f32 %v1587_v54, %v1430_v44  ;;  %v1581_v27 = vrot.slane %v1471_v19, 2  ;;  %v4614_v59 = vmul.f32 %v4261_v15, %v1120_v17  ;;  %v4618_v44 = vsel %vm987_vm1, 0.0, %v4534_v5 }
 0x156   : > { %6521 = vst [vmem:[#allocation75_spill] sm:$0xff] %v4598_v37  ;;  %v1337_v3 = vsel %vm1302_vm2, %v6355_v46, %v1336_v60  ;;  %6523 = vst [vmem:[#allocation77_spill] sm:$0xff] %v4618_v44  ;;  %v787_v54 = vmax.f32 %v4450_v45, 0.0  ;;  %v4628_v40 = vmul.f32 %v4087_v43, %v4618_v44  ;;  %v4632_v60 = vmul.f32 %v4069_v34, %v4618_v44 }
 0x157   : > { %6522 = vst [vmem:[#allocation76_spill] sm:$0xff] %v4603_v22  ;;  %v1428_v19 = vadd.f32 %v1337_v3, %v1151_v61  ;;  %v1582_v13 = vsel %vm1547_vm3, %v6356_v39, %v1581_v27  ;;  %v4637_v45 = vmul.f32 %v4083_v41, %v4618_v44  ;;  %v704_v3 = vadd.f32 %v4312_v9, %v4098_v50 }
 0x158   : > { %6524 = vst [vmem:[#allocation78_spill] sm:$0xff] %v4628_v40  ;;  %6525 = vst [vmem:[#allocation79_spill] sm:$0xff] %v4632_v60  ;;  %v4639_v46 = vrot.slane %v787_v54, 7  ;;  %v6528_v39 = vrot.slane %v4145_v51, 1  ;;  %v6530_v17 = vrot.slane %v4149_v56, 2  ;;  %v6531_v44 = vrot.slane %v4129_v26, 2  ;;  %v4662_v51 = vpop.f32.mrf.mxu0 }
 0x159   : > { %6526 = vst [vmem:[#allocation80_spill] sm:$0xff] %v4637_v45  ;;  %v4643_v61 = vadd.f32 %v1582_v13, %v1428_v19  ;;  %v790_v13 = vmax.f32 %v704_v3, 0.0  ;;  %6533 = vst [vmem:[#allocation83_spill] sm:$0xff] %v4662_v51  ;;  %v2321_v27 = vmul.f32 %v4117_v18, %v4215_v2  ;;  %v2564_v45 = vmul.f32 %v4261_v15, %v4208_v63 }
 0x15a   : > { %v1862_v40 = vsel %vm1302_vm2, %v6529_v42, %v6528_v39  ;;  %v2106_v54 = vsel %vm1547_vm3, %v6531_v44, %v6530_v17  ;;  %v4659_v9 = vsel %vm987_vm1, 0.0, %v4639_v46  ;;  %v2252_v39 = vmul.f32 %v4122_v23, %v4208_v63  ;;  %v4682_v17 = vpop.f32.mrf.mxu0 }
 0x15b   : > { %6527 = vst [vmem:[#allocation81_spill] sm:$0xff] %v4643_v61  ;;  %6532 = vst [vmem:[#allocation82_spill] sm:$0xff] %v4659_v9  ;;  %v1972_v19 = vadd.f32 %v1862_v40, %v4131_v30  ;;  %v4666_v25 = vmul.f32 %v4087_v43, %v4659_v9  ;;  %v4670_v26 = vmul.f32 %v4069_v34, %v4659_v9  ;;  %v1016_v42 = vrot.slane %v790_v13, 7 }
 0x15c   : > { %v4674_v56 = vmul.f32 %v4083_v41, %v4659_v9  ;;  %v2253_v30 = vmul.f32 %v4122_v23, %v4215_v2  ;;  %v2320_v40 = vmul.f32 %v4117_v18, %v4208_v63  ;;  %6537 = vst [vmem:[#allocation87_spill] sm:$0xff] %v4682_v17  ;;  %v2660_v61 = vrot.slane %v2564_v45, 2 }
 0x15d   : > { %6534 = vst [vmem:[#allocation84_spill] sm:$0xff] %v4666_v25  ;;  %6535 = vst [vmem:[#allocation85_spill] sm:$0xff] %v4670_v26  ;;  %v2216_v44 = vadd.f32 %v2106_v54, %v1972_v19  ;;  %v4692_v54 = vsel %vm987_vm1, %v4534_v5, %v1016_v42  ;;  %v1123_v13 = vsel %vm987_vm1, %v1016_v42, 0.0  ;;  %v3498_v25 = vpop.f32.mrf.mxu0  ;;  %v6541_v21 = vrot.slane %v4328_v36, 1 }
 0x15e   : > { %6536 = vst [vmem:[#allocation86_spill] sm:$0xff] %v4674_v56  ;;  %6538 = vst [vmem:[#allocation88_spill] sm:$0xff] %v4692_v54  ;;  %v2285_v60 = vadd.f32 %v2253_v30, %v4170_v28  ;;  %v1157_v3 = vmul.f32 %v4087_v43, %v4692_v54  ;;  %v4700_v22 = vmul.f32 %v4069_v34, %v4692_v54  ;;  %v2416_v37 = vrot.slane %v2320_v40, 1 }
 0x15f   : > { %v2284_v19 = vadd.f32 %v2252_v39, %v2216_v44  ;;  %v1235_v56 = vmul.f32 %v4069_v34, %v1123_v13  ;;  %v4705_v26 = vmul.f32 %v4083_v41, %v4692_v54  ;;  %v1480_v5 = vmul.f32 %v4083_v41, %v1123_v13 }
 0x160   : > { %v4709_v39 = vmul.f32 %v4111_v10, %v1123_v13  ;;  %v4712_v28 = vmul.f32 %v4113_v11, %v1123_v13  ;;  %v4715_v25 = vmul.f32 %v4117_v18, %v1123_v13  ;;  %v6373_v42 = vrot.slane %v4700_v22, 1 }
 0x161   : > { %6539 = vst [vmem:[#allocation89_spill] sm:$0xff] %v4705_v26  ;;  %v1351_v44 = vrot.slane %v1235_v56, 1  ;;  %v6372_v30 = vrot.slane %v4705_v26, 2  ;;  %v4720_v9 = vmul.f32 %v4261_v15, %v1123_v13  ;;  %v1596_v54 = vrot.slane %v1480_v5, 2  ;;  %v6651_v26 = vld [vmem:[#allocation34_spill] sm:$0xff] }
 0x162   : > { %6540 = vst [vmem:[#allocation90_spill] sm:$0xff] %v4712_v28  ;;  %v2417_v56 = vrot.slane %v2321_v27, 1  ;;  %v2565_v5 = vmul.f32 %v4261_v15, %v4215_v2  ;;  %v717_v27 = vadd.f32 %v4350_v24, %v4098_v50  ;;  %v6543_v36 = vrot.slane %v4303_v14, 1 }
 0x163   : > { %v1352_v17 = vsel %vm1302_vm2, %v6373_v42, %v1351_v44  ;;  %v1597_v13 = vsel %vm1547_vm3, %v6372_v30, %v1596_v54  ;;  %v696_v44 = vadd.f32 %v4098_v50, %v4330_v29  ;;  %v6545_v24 = vrot.slane %v4334_v52, 2 }
 0x164   : > { %v1434_v55 = vadd.f32 %v1352_v17, %v1157_v3  ;;  %v2418_v53 = vsel %vm1302_vm2, %v2416_v37, %v2417_v56  ;;  %v2420_v28 = vsel %vm1302_vm2, %v2417_v56, %v6541_v21  ;;  %v2661_v54 = vrot.slane %v2565_v5, 2 }
 0x165   : > { %v2528_v17 = vadd.f32 %v2418_v53, %v2284_v19  ;;  %v2529_v3 = vadd.f32 %v2420_v28, %v2285_v60  ;;  %v788_v30 = vmax.f32 %v696_v44, 0.0  ;;  %v793_v42 = vmax.f32 %v717_v27, 0.0  ;;  %v4758_v53 = vld [vmem:[%s6280_s4] ss:$0 sm:$0xff] }
 0x166   : > { %v4742_v40 = vadd.f32 %v1597_v13, %v1434_v55  ;;  %v709_v37 = vadd.f32 %v4098_v50, %v4371_v47  ;;  %v6544_v21 = vrot.slane %v4227_v7, 1  ;;  %v2662_v29 = vsel %vm1547_vm3, %v2660_v61, %v2661_v54 }
 0x167   : > { %v2664_v55 = vsel %vm1547_vm3, %v2661_v54, %v6545_v24  ;;  %v6546_v47 = vrot.slane %v4319_v32, 2  ;;  %v6547_v14 = vrot.slane %v4231_v8, 2  ;;  %v2772_v19 = vadd.f32 %v2662_v29, %v2528_v17 }
 0x168   : > { %6542 = vst [vmem:[#allocation91_spill] sm:$0xff] %v4742_v40  ;;  %v1867_v45 = vsel %vm1302_vm2, %v6544_v21, %v6543_v36  ;;  %v2773_v28 = vadd.f32 %v2664_v55, %v2529_v3  ;;  %v1013_v61 = vrot.slane %v788_v30, 7  ;;  %v4766_v56 = vrot.slane %v793_v42, 7 }
 0x169   : > { %v1974_v60 = vadd.f32 %v1867_v45, %v4246_v20  ;;  %v2111_v7 = vsel %vm1547_vm3, %v6547_v14, %v6546_v47  ;;  %v791_v52 = vmax.f32 %v709_v37, 0.0  ;;  %v2254_v5 = vmul.f32 %v4122_v23, %v4176_v35 }
 0x16a   : > { %v2255_v44 = vmul.f32 %v4122_v23, %v4211_v0  ;;  %v2811_v20 = vadd.f32 %v4758_v53, %v2772_v19  ;;  %v2812_v32 = vadd.f32 %v4758_v53, %v2773_v28  ;;  %v4776_v8 = vsel %vm987_vm1, %v4639_v46, %v1013_v61 }
 0x16b   : > { %v2218_v13 = vadd.f32 %v2111_v7, %v1974_v60  ;;  %v1122_v30 = vsel %vm987_vm1, %v1013_v61, 0.0  ;;  %v1155_v42 = vmul.f32 %v4087_v43, %v4776_v8  ;;  %v4783_v27 = vmul.f32 %v4069_v34, %v4776_v8 }
 0x16c   : > { %v1232_v17 = vmul.f32 %v4069_v34, %v1122_v30  ;;  %v4788_v3 = vmul.f32 %v4083_v41, %v4776_v8  ;;  %v2843_v54 = vmax.f32 %v2811_v20, 0.0  ;;  %v2844_v37 = vmax.f32 %v2812_v32, 0.0 }
 0x16d   : > { %v1477_v46 = vmul.f32 %v4083_v41, %v1122_v30  ;;  %v4792_v36 = vmul.f32 %v4111_v10, %v1122_v30  ;;  %v6375_v21 = vrot.slane %v4783_v27, 1  ;;  %v4797_v24 = vmul.f32 %v4113_v11, %v1122_v30 }
 0x16e   : > { %v1346_v45 = vrot.slane %v1232_v17, 1  ;;  %v6374_v29 = vrot.slane %v4788_v3, 2  ;;  %v2875_v55 = vpack.c.bf16 %v2844_v37, %v2843_v54  ;;  %v4801_v14 = vmul.f32 %v4117_v18, %v1122_v30 }
 0x16f   : > { %v1591_v60 = vrot.slane %v1477_v46, 2  ;;  %v4808_v28 = vmul.f32 %v4261_v15, %v1122_v30  ;;  %v4812_v61 = vsel %vm987_vm1, 0.0, %v4766_v56  ;;  %v2567_v19 = vmul.f32 %v4261_v15, %v4176_v35 }
 0x170   : > { %v1347_v7 = vsel %vm1302_vm2, %v6375_v21, %v1346_v45  ;;  %6548 = vst [vmem:[#allocation92_spill] sm:$0xff] %v4812_v61  ;;  %3516 = vmatprep.mubr.bf16.mxu0 %v2875_v55  ;;  %v4820_v54 = vmul.f32 %v4087_v43, %v4812_v61  ;;  %v4825_v30 = vmul.f32 %v4069_v34, %v4812_v61 }
 0x171   : > { %v1432_v20 = vadd.f32 %v1347_v7, %v1155_v42  ;;  %v1592_v32 = vsel %vm1547_vm3, %v6374_v29, %v1591_v60  ;;  %v4829_v46 = vmul.f32 %v4083_v41, %v4812_v61  ;;  %v4831_v42 = vrot.slane %v791_v52, 7  ;;  %v4845_v52 = vpop.f32.mrf.mxu0 }
 0x172   : > { %6549 = vst [vmem:[#allocation93_spill] sm:$0xff] %v4820_v54  ;;  %6550 = vst [vmem:[#allocation94_spill] sm:$0xff] %v4825_v30  ;;  %v2286_v55 = vadd.f32 %v2254_v5, %v2218_v13  ;;  %v2287_v60 = vadd.f32 %v2255_v44, %v4373_v16  ;;  %v2421_v7 = vrot.slane %v4197_v49, 1  ;;  %v6555_v5 = vrot.slane %v4268_v6, 1 }
 0x173   : > { %6551 = vst [vmem:[#allocation95_spill] sm:$0xff] %v4829_v46  ;;  %v4833_v45 = vadd.f32 %v1592_v32, %v1432_v20  ;;  %v4841_v21 = vsel %vm987_vm1, 0.0, %v4831_v42  ;;  %v2568_v51 = vmul.f32 %v4261_v15, %v4211_v0  ;;  %v2665_v29 = vrot.slane %v2567_v19, 2  ;;  %v3499_v47 = vpop.f32.mrf.mxu0 }
 0x174   : > { %v4849_v13 = vmul.f32 %v4087_v43, %v4841_v21  ;;  %v4853_v49 = vmul.f32 %v4069_v34, %v4841_v21  ;;  %v4857_v16 = vmul.f32 %v4083_v41, %v4841_v21  ;;  %v2423_v44 = vsel %vm1302_vm2, %v2421_v7, %v6555_v5 }
 0x175   : > { %v2530_v20 = vadd.f32 %v2423_v44, %v2286_v55  ;;  %v2531_v32 = vadd.f32 %v4308_v31, %v2287_v60  ;;  %v720_v46 = vadd.f32 %v4405_v58, %v4098_v50  ;;  %v712_v6 = vadd.f32 %v4098_v50, %v4431_v1  ;;  %v6558_v44 = vld [vmem:[#allocation31_spill] sm:$0xff] }
 0x176   : > { %6552 = vst [vmem:[#allocation96_spill] sm:$0xff] %v4849_v13  ;;  %6553 = vst [vmem:[#allocation97_spill] sm:$0xff] %v4853_v49  ;;  %v2666_v54 = vrot.slane %v2568_v51, 2  ;;  %v733_v55 = vadd.f32 %v4458_v48, %v4098_v50  ;;  %v4875_v31 = vmul.f32 %v4087_v43, %v4208_v63  ;;  %v1143_v47 = vmul.f32 %v4087_v43, %v4215_v2  ;;  %v6556_v51 = vld [vmem:[#allocation27_spill] sm:$0xff] }
 0x177   : > { %6554 = vst [vmem:[#allocation98_spill] sm:$0xff] %v4857_v16  ;;  %v794_v19 = vmax.f32 %v720_v46, 0.0  ;;  %v792_v60 = vmax.f32 %v712_v6, 0.0  ;;  %v1313_v7 = vrot.slane %v4221_v4, 1  ;;  %v4882_v58 = vmul.f32 %v4083_v41, %v4208_v63  ;;  %v6559_v4 = vld [vmem:[#allocation28_spill] sm:$0xff] }
 0x178   : > { %v2667_v1 = vsel %vm1547_vm3, %v2665_v29, %v2666_v54  ;;  %v6557_v5 = vrot.slane %v6556_v51, 2  ;;  %v797_v48 = vmax.f32 %v733_v55, 0.0  ;;  %v4889_v17 = vadd.f32 %v6558_v44, %v1143_v47 }
 0x179   : > { %v2774_v37 = vadd.f32 %v2667_v1, %v2530_v20  ;;  %v1022_v46 = vrot.slane %v794_v19, 7  ;;  %v1019_v6 = vrot.slane %v792_v60, 7  ;;  %v6560_v13 = vrot.slane %v6559_v4, 1 }
 0x17a   : > { %v2669_v50 = vsel %vm1547_vm3, %v2666_v54, %v6557_v5  ;;  %v4891_v16 = vrot.slane %v797_v48, 7  ;;  %v4898_v29 = vmul.f32 %v4083_v41, %v4215_v2 }
 0x17b   : > { %v2775_v30 = vadd.f32 %v2669_v50, %v2531_v32  ;;  %v1315_v63 = vsel %vm1302_vm2, %v1313_v7, %v6560_v13  ;;  %v2813_v55 = vadd.f32 %v4758_v53, %v2774_v37  ;;  %v4905_v20 = vsel %vm987_vm1, %v4766_v56, %v1022_v46 }
 0x17c   : > { %6561 = vst [vmem:[#allocation27_spill] sm:$0xff] %v4905_v20  ;;  %v1125_v32 = vsel %vm987_vm1, %v1022_v46, 0.0  ;;  %v1161_v19 = vmul.f32 %v4087_v43, %v4905_v20  ;;  %v4912_v13 = vmul.f32 %v4069_v34, %v4905_v20  ;;  %v4917_v37 = vmul.f32 %v4083_v41, %v4905_v20 }
 0x17d   : > { %v2814_v47 = vadd.f32 %v4758_v53, %v2775_v30  ;;  %v1241_v2 = vmul.f32 %v4069_v34, %v1125_v32  ;;  %v2845_v30 = vmax.f32 %v2813_v55, 0.0  ;;  %v1486_v56 = vmul.f32 %v4083_v41, %v1125_v32 }
 0x17e   : > { %6562 = vst [vmem:[#allocation31_spill] sm:$0xff] %v4912_v13  ;;  %6563 = vst [vmem:[#allocation28_spill] sm:$0xff] %v4917_v37  ;;  %v4921_v7 = vmul.f32 %v4111_v10, %v1125_v32  ;;  %v6379_v1 = vrot.slane %v4912_v13, 1  ;;  %v6380_v5 = vrot.slane %v4917_v37, 2  ;;  %v4926_v50 = vmul.f32 %v4113_v11, %v1125_v32 }
 0x17f   : > { %v2846_v60 = vmax.f32 %v2814_v47, 0.0  ;;  %v1361_v51 = vrot.slane %v1241_v2, 1  ;;  %v1606_v44 = vrot.slane %v1486_v56, 2  ;;  %v4930_v4 = vmul.f32 %v4117_v18, %v1125_v32 }
 0x180   : > { %6564 = vst [vmem:[#allocation99_spill] sm:$0xff] %v4921_v7  ;;  %6565 = vst [vmem:[#allocation100_spill] sm:$0xff] %v4926_v50  ;;  %v4937_v2 = vmul.f32 %v4261_v15, %v1125_v32  ;;  %v4941_v54 = vsel %vm987_vm1, %v4831_v42, %v1019_v6  ;;  %v1124_v46 = vsel %vm987_vm1, %v1019_v6, 0.0  ;;  %v4985_v50 = vsel %vm987_vm1, 0.0, %v4891_v16 }
 0x181   : > { %v2876_v48 = vpack.c.bf16 %v2846_v60, %v2845_v30  ;;  %6566 = vst [vmem:[#allocation101_spill] sm:$0xff] %v4930_v4  ;;  %v1362_v55 = vsel %vm1302_vm2, %v6379_v1, %v1361_v51  ;;  %v1607_v60 = vsel %vm1547_vm3, %v6380_v5, %v1606_v44  ;;  %v1159_v32 = vmul.f32 %v4087_v43, %v4941_v54 }
 0x182   : > { %6567 = vst [vmem:[#allocation102_spill] sm:$0xff] %v4937_v2  ;;  %v1438_v30 = vadd.f32 %v1362_v55, %v1161_v19  ;;  %v4953_v1 = vmul.f32 %v4069_v34, %v4941_v54  ;;  %v1238_v42 = vmul.f32 %v4069_v34, %v1124_v46  ;;  %v1483_v44 = vmul.f32 %v4083_v41, %v1124_v46 }
 0x183   : > { %3517 = vmatmul.mubr.bf16.vlgmr.msra.gmra.mxu0 %v2876_v48  ;;  %v4960_v48 = vmul.f32 %v4083_v41, %v4941_v54  ;;  %v4964_v6 = vmul.f32 %v4111_v10, %v1124_v46  ;;  %v4968_v47 = vmul.f32 %v4113_v11, %v1124_v46  ;;  %v4971_v51 = vmul.f32 %v4117_v18, %v1124_v46 }
 0x184   : > { %6568 = vst [vmem:[#allocation103_spill] sm:$0xff] %v4953_v1  ;;  %v4956_v19 = vadd.f32 %v1607_v60, %v1438_v30  ;;  %v6385_v55 = vrot.slane %v4953_v1, 1  ;;  %v1356_v5 = vrot.slane %v1238_v42, 1  ;;  %v1601_v60 = vrot.slane %v1483_v44, 2  ;;  %6575 = vst [vmem:[#allocation110_spill] sm:$0xff] %v4985_v50 }
 0x185   : > { %6570 = vst [vmem:[#allocation105_spill] sm:$0xff] %v4960_v48  ;;  %6571 = vst [vmem:[#allocation106_spill] sm:$0xff] %v4964_v6  ;;  %v6386_v30 = vrot.slane %v4960_v48, 2  ;;  %v4993_v56 = vmul.f32 %v4087_v43, %v4985_v50  ;;  %v1770_v13 = vmul.f32 %v4111_v10, %v4176_v35  ;;  %v6581_v2 = vrot.slane %v4882_v58, 2  ;;  %v6584_v58 = vld [vmem:[#allocation36_spill] sm:$0xff] }
 0x186   : > { %6569 = vst [vmem:[#allocation104_spill] sm:$0xff] %v4956_v19  ;;  %6572 = vst [vmem:[#allocation107_spill] sm:$0xff] %v4968_v47  ;;  %v4976_v19 = vmul.f32 %v4261_v15, %v1124_v46  ;;  %v1357_v37 = vsel %vm1302_vm2, %v6385_v55, %v1356_v5  ;;  %v4997_v5 = vmul.f32 %v4069_v34, %v4985_v50 }
 0x187   : > { %6573 = vst [vmem:[#allocation108_spill] sm:$0xff] %v4971_v51  ;;  %v1436_v7 = vadd.f32 %v1357_v37, %v1159_v32  ;;  %v1602_v44 = vsel %vm1547_vm3, %v6386_v30, %v1601_v60  ;;  %6576 = vst [vmem:[#allocation111_spill] sm:$0xff] %v4993_v56  ;;  %v5001_v55 = vmul.f32 %v4083_v41, %v4985_v50  ;;  %v1559_v32 = vrot.slane %v4898_v29, 2  ;;  %v6580_v60 = vld [vmem:[#allocation19_spill] sm:$0xff] }
 0x188   : > { %6574 = vst [vmem:[#allocation109_spill] sm:$0xff] %v4976_v19  ;;  %6577 = vst [vmem:[#allocation112_spill] sm:$0xff] %v4997_v5  ;;  %v1419_v37 = vadd.f32 %v1315_v63, %v4875_v31  ;;  %v1700_v30 = vmul.f32 %v6580_v60, %v4176_v35  ;;  %v1701_v46 = vmul.f32 %v6580_v60, %v4211_v0  ;;  %v6582_v63 = vld [vmem:[#allocation30_spill] sm:$0xff]  ;;  %v1870_v4 = vrot.slane %v1770_v13, 1  ;;  %v6586_v5 = vld [vmem:[#allocation25_spill] sm:$0xff] }
 0x189   : > { %6578 = vst [vmem:[#allocation113_spill] sm:$0xff] %v5001_v55  ;;  %v5005_v42 = vadd.f32 %v1602_v44, %v1436_v7  ;;  %v1560_v31 = vsel %vm1547_vm3, %v6581_v2, %v1559_v32  ;;  %v6583_v29 = vrot.slane %v6582_v63, 2  ;;  %v1771_v48 = vmul.f32 %v4111_v10, %v4211_v0 }
 0x18a   : > { %v1664_v44 = vadd.f32 %v1560_v31, %v1419_v37  ;;  %v2014_v56 = vmul.f32 %v4113_v11, %v4176_v35  ;;  %v2015_v50 = vmul.f32 %v4113_v11, %v4211_v0  ;;  %v2256_v2 = vmul.f32 %v4122_v23, %v6584_v58 }
 0x18b   : > { %6579 = vst [vmem:[#allocation114_spill] sm:$0xff] %v5005_v42  ;;  %v1562_v7 = vsel %vm1547_vm3, %v1559_v32, %v6583_v29  ;;  %v2257_v63 = vmul.f32 %v4122_v23, %v4453_v33  ;;  %v1871_v31 = vrot.slane %v1771_v48, 1  ;;  %v2327_v35 = vmul.f32 %v4117_v18, %v4453_v33 }
 0x18c   : > { %v1665_v42 = vadd.f32 %v1562_v7, %v4889_v17  ;;  %v1732_v32 = vadd.f32 %v1700_v30, %v1664_v44  ;;  %v2326_v17 = vmul.f32 %v4117_v18, %v6584_v58  ;;  %v2114_v29 = vrot.slane %v2014_v56, 2  ;;  %v6585_v7 = vld [vmem:[#allocation48_spill] sm:$0xff]  ;;  %v6588_v56 = vld [vmem:[#allocation26_spill] sm:$0xff] }
 0x18d   : > { %v2115_v13 = vrot.slane %v2015_v50, 2  ;;  %v2328_v0 = vmul.f32 %v4117_v18, %v6585_v7  ;;  %v1872_v55 = vsel %vm1302_vm2, %v1870_v4, %v1871_v31  ;;  %v6587_v49 = vrot.slane %v6586_v5, 1 }
 0x18e   : > { %v1733_v37 = vadd.f32 %v1701_v46, %v1665_v42  ;;  %v2426_v30 = vrot.slane %v2326_v17, 1  ;;  %v2570_v48 = vmul.f32 %v4261_v15, %v6584_v58  ;;  %v1976_v42 = vadd.f32 %v1872_v55, %v1732_v32  ;;  %v6590_v55 = vld [vmem:[#allocation56_spill] sm:$0xff] }
 0x18f   : > { %v1874_v1 = vsel %vm1302_vm2, %v1871_v31, %v6587_v49  ;;  %v2116_v50 = vsel %vm1547_vm3, %v2114_v29, %v2115_v13  ;;  %v6589_v44 = vrot.slane %v6588_v56, 2  ;;  %v2427_v20 = vrot.slane %v2327_v35, 1 }
 0x190   : > { %v1977_v46 = vadd.f32 %v1874_v1, %v1733_v37  ;;  %v2429_v61 = vrot.slane %v2328_v0, 1  ;;  %v2571_v4 = vmul.f32 %v4261_v15, %v4453_v33  ;;  %v2572_v49 = vmul.f32 %v4261_v15, %v6585_v7  ;;  %v5055_v1 = vld [vmem:[%s6278_s2] ss:$0 sm:$0xff] }
 0x191   : > { %v2118_v47 = vsel %vm1547_vm3, %v2115_v13, %v6589_v44  ;;  %v2220_v5 = vadd.f32 %v2116_v50, %v1976_v42  ;;  %v2670_v17 = vrot.slane %v2570_v48, 2  ;;  %v725_v32 = vadd.f32 %v5055_v1, %v6590_v55  ;;  %v6591_v42 = vld [vmem:[#allocation23_spill] sm:$0xff]  ;;  %v6593_v48 = vld [vmem:[#allocation21_spill] sm:$0xff]  ;;  %v6595_v55 = vld [vmem:[#allocation20_spill] sm:$0xff] }
 0x192   : > { %v2221_v31 = vadd.f32 %v2118_v47, %v1977_v46  ;;  %v2428_v37 = vsel %vm1302_vm2, %v2426_v30, %v2427_v20  ;;  %v2430_v29 = vsel %vm1302_vm2, %v2427_v20, %v2429_v61  ;;  %v2671_v13 = vrot.slane %v2571_v4, 2  ;;  %v6596_v30 = vld [vmem:[#allocation24_spill] sm:$0xff]  ;;  %v6598_v61 = vld [vmem:[#allocation22_spill] sm:$0xff] }
 0x193   : > { %v2673_v35 = vrot.slane %v2572_v49, 2  ;;  %v2288_v0 = vadd.f32 %v2256_v2, %v2220_v5  ;;  %v795_v7 = vmax.f32 %v725_v32, 0.0  ;;  %v6592_v47 = vrot.slane %v6591_v42, 1 }
 0x194   : > { %v2289_v56 = vadd.f32 %v2257_v63, %v2221_v31  ;;  %v6594_v46 = vrot.slane %v6593_v48, 1  ;;  %v2672_v44 = vsel %vm1547_vm3, %v2670_v17, %v2671_v13  ;;  %v6597_v19 = vrot.slane %v6596_v30, 2 }
 0x195   : > { %v2674_v6 = vsel %vm1547_vm3, %v2671_v13, %v2673_v35  ;;  %v6599_v20 = vrot.slane %v6598_v61, 2  ;;  %v2532_v63 = vadd.f32 %v2428_v37, %v2288_v0  ;;  %v5074_v49 = vrot.slane %v795_v7, 7 }
 0x196   : > { %v1320_v50 = vsel %vm1302_vm2, %v6594_v46, %v6592_v47  ;;  %v2533_v4 = vadd.f32 %v2430_v29, %v2289_v56  ;;  %v1702_v5 = vmul.f32 %v6580_v60, %v6584_v58  ;;  %v1703_v17 = vmul.f32 %v6580_v60, %v4453_v33  ;;  %v6604_v47 = vld [vmem:[#allocation29_spill] sm:$0xff]  ;;  %v6618_v46 = vld [vmem:[#allocation38_spill] sm:$0xff] }
 0x197   : > { %v1421_v40 = vadd.f32 %v1320_v50, %v6595_v55  ;;  %v1565_v2 = vsel %vm1547_vm3, %v6599_v20, %v6597_v19  ;;  %v1773_v32 = vmul.f32 %v4111_v10, %v6584_v58  ;;  %v1774_v13 = vmul.f32 %v4111_v10, %v4453_v33 }
 0x198   : > { %v2776_v35 = vadd.f32 %v2672_v44, %v2532_v63  ;;  %v2777_v42 = vadd.f32 %v2674_v6, %v2533_v4  ;;  %v5086_v19 = vsel %vm987_vm1, 0.0, %v5074_v49  ;;  %v2017_v37 = vmul.f32 %v4113_v11, %v6584_v58 }
 0x199   : > { %v1666_v31 = vadd.f32 %v1565_v2, %v1421_v40  ;;  %6600 = vst [vmem:[#allocation19_spill] sm:$0xff] %v5086_v19  ;;  %v5092_v40 = vmul.f32 %v4087_v43, %v5086_v19  ;;  %v5096_v29 = vmul.f32 %v4069_v34, %v5086_v19  ;;  %v5100_v0 = vmul.f32 %v4083_v41, %v5086_v19  ;;  %v6605_v2 = vld [vmem:[#allocation32_spill] sm:$0xff] }
 0x19a   : > { %v2815_v56 = vadd.f32 %v4758_v53, %v2776_v35  ;;  %v2816_v7 = vadd.f32 %v4758_v53, %v2777_v42  ;;  %v1735_v48 = vadd.f32 %v1703_v17, %v6604_v47  ;;  %v1875_v58 = vrot.slane %v1773_v32, 1  ;;  %v6608_v35 = vld [vmem:[#allocation40_spill] sm:$0xff] }
 0x19b   : > { %6601 = vst [vmem:[#allocation30_spill] sm:$0xff] %v5092_v40  ;;  %6602 = vst [vmem:[#allocation36_spill] sm:$0xff] %v5096_v29  ;;  %v1734_v6 = vadd.f32 %v1702_v5, %v1666_v31  ;;  %v1876_v44 = vrot.slane %v1774_v13, 1  ;;  %v2018_v55 = vmul.f32 %v4113_v11, %v4453_v33  ;;  %v2119_v20 = vrot.slane %v2017_v37, 2  ;;  %v6606_v5 = vld [vmem:[#allocation51_spill] sm:$0xff] }
 0x19c   : > { %6603 = vst [vmem:[#allocation48_spill] sm:$0xff] %v5100_v0  ;;  %v2847_v30 = vmax.f32 %v2815_v56, 0.0  ;;  %v2848_v61 = vmax.f32 %v2816_v7, 0.0  ;;  %v2258_v63 = vmul.f32 %v4122_v23, %v6605_v2  ;;  %v6607_v31 = vrot.slane %v6606_v5, 1  ;;  %v6609_v56 = vld [vmem:[#allocation52_spill] sm:$0xff]  ;;  %v6644_v0 = vld [vmem:[#allocation70_spill] sm:$0xff] }
 0x19d   : > { %v1877_v4 = vsel %vm1302_vm2, %v1875_v58, %v1876_v44  ;;  %v2120_v32 = vrot.slane %v2018_v55, 2  ;;  %v2259_v42 = vmul.f32 %v4122_v23, %v6608_v35  ;;  %v2329_v33 = vmul.f32 %v4117_v18, %v6605_v2 }
 0x19e   : > { %v1879_v17 = vsel %vm1302_vm2, %v1876_v44, %v6607_v31  ;;  %v2877_v13 = vpack.c.bf16 %v2848_v61, %v2847_v30  ;;  %v1978_v47 = vadd.f32 %v1877_v4, %v1734_v6  ;;  %v6610_v7 = vrot.slane %v6609_v56, 2 }
 0x19f   : > { %v1979_v50 = vadd.f32 %v1879_v17, %v1735_v48  ;;  %v2121_v37 = vsel %vm1547_vm3, %v2119_v20, %v2120_v32  ;;  %v2330_v5 = vmul.f32 %v4117_v18, %v6608_v35  ;;  %v2573_v44 = vmul.f32 %v4261_v15, %v6605_v2 }
 0x1a0   : > { %v2123_v58 = vsel %vm1547_vm3, %v2120_v32, %v6610_v7  ;;  %3520 = vmatprep.mubr.bf16.mxu1 %v2877_v13  ;;  %v2222_v55 = vadd.f32 %v2121_v37, %v1978_v47  ;;  %v2431_v6 = vrot.slane %v2329_v33, 1  ;;  %v2574_v48 = vmul.f32 %v4261_v15, %v6608_v35  ;;  %v6611_v7 = vld [vmem:[#allocation73_spill] sm:$0xff] }
 0x1a1   : > { %v2223_v30 = vadd.f32 %v2123_v58, %v1979_v50  ;;  %v2432_v61 = vrot.slane %v2330_v5, 1  ;;  %v2675_v4 = vrot.slane %v2573_v44, 2  ;;  %v736_v20 = vadd.f32 %v5055_v1, %v4528_v57  ;;  %v6612_v47 = vld [vmem:[#allocation45_spill] sm:$0xff] }
 0x1a2   : > { %v728_v31 = vadd.f32 %v5055_v1, %v4563_v12  ;;  %v2290_v17 = vadd.f32 %v2258_v63, %v2222_v55  ;;  %v2676_v56 = vrot.slane %v2574_v48, 2  ;;  %v5135_v13 = vadd.f32 %v5055_v1, %v6611_v7  ;;  %v6614_v12 = vld [vmem:[#allocation46_spill] sm:$0xff]  ;;  %v6616_v7 = vld [vmem:[#allocation49_spill] sm:$0xff] }
 0x1a3   : > { %v2291_v32 = vadd.f32 %v2259_v42, %v2223_v30  ;;  %v2433_v50 = vsel %vm1302_vm2, %v2431_v6, %v2432_v61  ;;  %v6613_v33 = vrot.slane %v6612_v47, 1  ;;  %v798_v37 = vmax.f32 %v736_v20, 0.0 }
 0x1a4   : > { %v796_v58 = vmax.f32 %v728_v31, 0.0  ;;  %v2534_v5 = vadd.f32 %v2433_v50, %v2290_v17  ;;  %v2677_v44 = vsel %vm1547_vm3, %v2675_v4, %v2676_v56  ;;  %v6615_v63 = vrot.slane %v6614_v12, 2  ;;  %v6620_v17 = vld [vmem:[#allocation37_spill] sm:$0xff]  ;;  %v6621_v50 = vld [vmem:[#allocation50_spill] sm:$0xff] }
 0x1a5   : > { %v2435_v15 = vsel %vm1302_vm2, %v2432_v61, %v6613_v33  ;;  %v1028_v55 = vrot.slane %v798_v37, 7  ;;  %v801_v48 = vmax.f32 %v5135_v13, 0.0  ;;  %v6617_v6 = vrot.slane %v6616_v7, 1  ;;  %v6623_v33 = vld [vmem:[#allocation39_spill] sm:$0xff] }
 0x1a6   : > { %v2535_v57 = vadd.f32 %v2435_v15, %v2291_v32  ;;  %v2679_v42 = vsel %vm1547_vm3, %v2676_v56, %v6615_v63  ;;  %v1025_v30 = vrot.slane %v796_v58, 7  ;;  %v6619_v47 = vrot.slane %v6618_v46, 1 }
 0x1a7   : > { %v2778_v20 = vadd.f32 %v2677_v44, %v2534_v5  ;;  %v6622_v4 = vrot.slane %v6621_v50, 2  ;;  %v6624_v15 = vrot.slane %v6623_v33, 2  ;;  %v5159_v37 = vsel %vm987_vm1, %v4891_v16, %v1028_v55  ;;  %v5197_v33 = vld [vmem:[%s6279_s3 + $0x8] ss:$0 sm:$0xff] }
 0x1a8   : > { %v1325_v61 = vsel %vm1302_vm2, %v6619_v47, %v6617_v6  ;;  %v2779_v31 = vadd.f32 %v2679_v42, %v2535_v57  ;;  %6625 = vst [vmem:[#allocation25_spill] sm:$0xff] %v5159_v37  ;;  %v1127_v13 = vsel %vm987_vm1, %v1028_v55, 0.0  ;;  %v5164_v46 = vsel %vm987_vm1, %v5074_v49, %v1025_v30 }
 0x1a9   : > { %v1423_v32 = vadd.f32 %v1325_v61, %v6620_v17  ;;  %v1570_v56 = vsel %vm1547_vm3, %v6624_v15, %v6622_v4  ;;  %6626 = vst [vmem:[#allocation26_spill] sm:$0xff] %v5164_v46  ;;  %v1126_v58 = vsel %vm987_vm1, %v1025_v30, 0.0  ;;  %v2817_v5 = vadd.f32 %v4758_v53, %v2778_v20 }
 0x1aa   : > { %v2818_v57 = vadd.f32 %v4758_v53, %v2779_v31  ;;  %v1165_v44 = vmul.f32 %v4087_v43, %v5159_v37  ;;  %v5173_v12 = vmul.f32 %v4069_v34, %v5159_v37  ;;  %v1247_v16 = vmul.f32 %v4069_v34, %v1127_v13 }
 0x1ab   : > { %v5178_v63 = vmul.f32 %v4083_v41, %v5159_v37  ;;  %v1492_v49 = vmul.f32 %v4083_v41, %v1127_v13  ;;  %v5182_v42 = vmul.f32 %v4111_v10, %v1127_v13  ;;  %v2849_v55 = vmax.f32 %v2817_v5, 0.0 }
 0x1ac   : > { %6627 = vst [vmem:[#allocation56_spill] sm:$0xff] %v5173_v12  ;;  %v2850_v30 = vmax.f32 %v2818_v57, 0.0  ;;  %v6404_v7 = vrot.slane %v5173_v12, 1  ;;  %v5186_v6 = vmul.f32 %v4113_v11, %v1127_v13  ;;  %v1371_v47 = vrot.slane %v1247_v16, 1 }
 0x1ad   : > { %6628 = vst [vmem:[#allocation23_spill] sm:$0xff] %v5178_v63  ;;  %6629 = vst [vmem:[#allocation21_spill] sm:$0xff] %v5182_v42  ;;  %v6403_v61 = vrot.slane %v5178_v63, 2  ;;  %v1616_v20 = vrot.slane %v1492_v49, 2  ;;  %v5192_v4 = vmul.f32 %v4117_v18, %v1127_v13  ;;  %v5200_v15 = vmul.f32 %v5197_v33, %v1127_v13 }
 0x1ae   : > { %6630 = vst [vmem:[#allocation20_spill] sm:$0xff] %v5186_v6  ;;  %v2878_v17 = vpack.c.bf16 %v2850_v30, %v2849_v55  ;;  %v1372_v5 = vsel %vm1302_vm2, %v6404_v7, %v1371_v47  ;;  %v1163_v16 = vmul.f32 %v4087_v43, %v5164_v46  ;;  %v5212_v49 = vmul.f32 %v4069_v34, %v5164_v46 }
 0x1af   : > { %6631 = vst [vmem:[#allocation24_spill] sm:$0xff] %v5192_v4  ;;  %6632 = vst [vmem:[#allocation22_spill] sm:$0xff] %v5200_v15  ;;  %v1617_v57 = vsel %vm1547_vm3, %v6403_v61, %v1616_v20  ;;  %v1442_v55 = vadd.f32 %v1372_v5, %v1165_v44  ;;  %v1244_v50 = vmul.f32 %v4069_v34, %v1126_v58  ;;  %v6652_v51 = vrot.slane %v6651_v26, 1 }
 0x1b0   : > { %6633 = vst [vmem:[#allocation29_spill] sm:$0xff] %v5212_v49  ;;  %3521 = vmatmul.mubr.bf16.vlgmr.msra.gmra.mxu1 %v2878_v17  ;;  %v5220_v20 = vmul.f32 %v4083_v41, %v5164_v46  ;;  %v1489_v61 = vmul.f32 %v4083_v41, %v1126_v58  ;;  %v5224_v7 = vmul.f32 %v4111_v10, %v1126_v58  ;;  %v6640_v12 = vrot.slane %v5212_v49, 1  ;;  %v6647_v49 = vld [vmem:[#allocation44_spill] sm:$0xff]  ;;  %v6649_v46 = vld [vmem:[#allocation41_spill] sm:$0xff] }
 0x1b1   : > { %v5226_v31 = vadd.f32 %v1617_v57, %v1442_v55  ;;  %v1366_v44 = vrot.slane %v1244_v50, 1  ;;  %v5229_v17 = vmul.f32 %v4113_v11, %v1126_v58  ;;  %v5232_v5 = vmul.f32 %v4117_v18, %v1126_v58 }
 0x1b2   : > { %6634 = vst [vmem:[#allocation32_spill] sm:$0xff] %v5220_v20  ;;  %6635 = vst [vmem:[#allocation51_spill] sm:$0xff] %v5224_v7  ;;  %v6409_v30 = vrot.slane %v5220_v20, 2  ;;  %v1611_v13 = vrot.slane %v1489_v61, 2  ;;  %v5237_v63 = vmul.f32 %v5197_v33, %v1126_v58  ;;  %v1668_v42 = vadd.f32 %v1570_v56, %v1423_v32 }
 0x1b3   : > { %6636 = vst [vmem:[#allocation40_spill] sm:$0xff] %v5226_v31  ;;  %6637 = vst [vmem:[#allocation52_spill] sm:$0xff] %v5229_v17  ;;  %v1367_v57 = vsel %vm1302_vm2, %v6640_v12, %v1366_v44  ;;  %v5244_v31 = vrot.slane %v801_v48, 7  ;;  %v1704_v12 = vmul.f32 %v6580_v60, %v6605_v2  ;;  %v1705_v44 = vmul.f32 %v6580_v60, %v6608_v35 }
 0x1b4   : > { %6638 = vst [vmem:[#allocation73_spill] sm:$0xff] %v5232_v5  ;;  %6639 = vst [vmem:[#allocation45_spill] sm:$0xff] %v5237_v63  ;;  %v1440_v6 = vadd.f32 %v1367_v57, %v1163_v16  ;;  %v1612_v61 = vsel %vm1547_vm3, %v6409_v30, %v1611_v13  ;;  %v1776_v48 = vmul.f32 %v4111_v10, %v6605_v2  ;;  %v6642_v30 = vld [vmem:[#allocation59_spill] sm:$0xff]  ;;  %v6648_v17 = vrot.slane %v6647_v49, 2 }
 0x1b5   : > { %v5252_v58 = vsel %vm987_vm1, 0.0, %v5244_v31  ;;  %v1777_v32 = vmul.f32 %v4111_v10, %v6608_v35  ;;  %v2020_v56 = vmul.f32 %v4113_v11, %v6605_v2  ;;  %v1736_v57 = vadd.f32 %v1704_v12, %v1668_v42 }
 0x1b6   : > { %v5260_v16 = vadd.f32 %v1612_v61, %v1440_v6  ;;  %v5264_v13 = vmul.f32 %v4069_v34, %v5252_v58  ;;  %v1737_v50 = vadd.f32 %v1705_v44, %v6642_v30  ;;  %v1880_v47 = vrot.slane %v1776_v48, 1  ;;  %v6643_v61 = vld [vmem:[#allocation58_spill] sm:$0xff]  ;;  %v6645_v30 = vld [vmem:[#allocation43_spill] sm:$0xff] }
 0x1b7   : > { %v2021_v55 = vmul.f32 %v4113_v11, %v6608_v35  ;;  %v1881_v15 = vrot.slane %v1777_v32, 1  ;;  %v2124_v6 = vrot.slane %v2020_v56, 2  ;;  %v2261_v20 = vmul.f32 %v4122_v23, %v6644_v0 }
 0x1b8   : > { %6641 = vst [vmem:[#allocation46_spill] sm:$0xff] %v5260_v16  ;;  %v2260_v16 = vmul.f32 %v4122_v23, %v6643_v61  ;;  %v2332_v4 = vmul.f32 %v4117_v18, %v6643_v61  ;;  %v2333_v2 = vmul.f32 %v4117_v18, %v6644_v0  ;;  %v2576_v42 = vmul.f32 %v5197_v33, %v6643_v61 }
 0x1b9   : > { %v2125_v40 = vrot.slane %v2021_v55, 2  ;;  %v1882_v35 = vsel %vm1302_vm2, %v1880_v47, %v1881_v15  ;;  %v6646_v12 = vrot.slane %v6645_v30, 1  ;;  %v2577_v48 = vmul.f32 %v5197_v33, %v6644_v0 }
 0x1ba   : > { %v741_v55 = vadd.f32 %v5055_v1, %v4621_v62  ;;  %v1980_v32 = vadd.f32 %v1882_v35, %v1736_v57  ;;  %v2436_v37 = vrot.slane %v2332_v4, 1  ;;  %v2437_v47 = vrot.slane %v2333_v2, 1  ;;  %v6656_v2 = vld [vmem:[#allocation42_spill] sm:$0xff] }
 0x1bb   : > { %v1884_v44 = vsel %vm1302_vm2, %v1881_v15, %v6646_v12  ;;  %v2126_v29 = vsel %vm1547_vm3, %v2124_v6, %v2125_v40  ;;  %v2128_v7 = vsel %vm1547_vm3, %v2125_v40, %v6648_v17  ;;  %v2680_v63 = vrot.slane %v2576_v42, 2 }
 0x1bc   : > { %v1981_v56 = vadd.f32 %v1884_v44, %v1737_v50  ;;  %v2681_v30 = vrot.slane %v2577_v48, 2  ;;  %v2224_v5 = vadd.f32 %v2126_v29, %v1980_v32  ;;  %v799_v12 = vmax.f32 %v741_v55, 0.0  ;;  %v6663_v32 = vld [vmem:[#allocation47_spill] sm:$0xff] }
 0x1bd   : > { %v6650_v19 = vrot.slane %v6649_v46, 1  ;;  %v2438_v50 = vsel %vm1302_vm2, %v2436_v37, %v2437_v47  ;;  %v6653_v57 = vrot.slane %v4601_v38, 1  ;;  %v6654_v4 = vrot.slane %v4614_v59, 2  ;;  %v6655_v46 = vld [vmem:[#allocation33_spill] sm:$0xff] }
 0x1be   : > { %v2225_v15 = vadd.f32 %v2128_v7, %v1981_v56  ;;  %v2682_v40 = vsel %vm1547_vm3, %v2680_v63, %v2681_v30  ;;  %v2292_v7 = vadd.f32 %v2260_v16, %v2224_v5  ;;  %v5308_v6 = vrot.slane %v799_v12, 7 }
 0x1bf   : > { %v1330_v62 = vsel %vm1302_vm2, %v6652_v51, %v6650_v19  ;;  %v2440_v49 = vsel %vm1302_vm2, %v2437_v47, %v6653_v57  ;;  %v2684_v29 = vsel %vm1547_vm3, %v2681_v30, %v6654_v4  ;;  %v6657_v51 = vrot.slane %v6656_v2, 2  ;;  %v6658_v19 = vld [vmem:[#allocation35_spill] sm:$0xff] }
 0x1c0   : > { %v2293_v17 = vadd.f32 %v2261_v20, %v2225_v15  ;;  %v1425_v26 = vadd.f32 %v1330_v62, %v6655_v46  ;;  %v6659_v37 = vrot.slane %v6658_v19, 2  ;;  %v1706_v42 = vmul.f32 %v6580_v60, %v6643_v61  ;;  %v6664_v46 = vld [vmem:[#allocation53_spill] sm:$0xff]  ;;  %v6665_v2 = vld [vmem:[#allocation63_spill] sm:$0xff] }
 0x1c1   : > { %v1707_v59 = vmul.f32 %v6580_v60, %v6644_v0  ;;  %v1779_v63 = vmul.f32 %v4111_v10, %v6643_v61  ;;  %v2536_v20 = vadd.f32 %v2438_v50, %v2292_v7  ;;  %v5324_v16 = vsel %vm987_vm1, 0.0, %v5308_v6  ;;  %v6673_v50 = vld [vmem:[#allocation87_spill] sm:$0xff] }
 0x1c2   : > { %v1575_v38 = vsel %vm1547_vm3, %v6659_v37, %v6657_v51  ;;  %v2537_v5 = vadd.f32 %v2440_v49, %v2293_v17  ;;  %v5328_v44 = vmul.f32 %v4087_v43, %v5324_v16  ;;  %v5332_v48 = vmul.f32 %v4069_v34, %v5324_v16 }
 0x1c3   : > { %v1670_v35 = vadd.f32 %v1575_v38, %v1425_v26  ;;  %v5336_v55 = vmul.f32 %v4083_v41, %v5324_v16  ;;  %v1739_v56 = vadd.f32 %v1707_v59, %v6663_v32  ;;  %v2780_v47 = vadd.f32 %v2682_v40, %v2536_v20 }
 0x1c4   : > { %6660 = vst [vmem:[#allocation49_spill] sm:$0xff] %v5328_v44  ;;  %6661 = vst [vmem:[#allocation38_spill] sm:$0xff] %v5332_v48  ;;  %v2781_v30 = vadd.f32 %v2684_v29, %v2537_v5  ;;  %v1780_v12 = vmul.f32 %v4111_v10, %v6644_v0  ;;  %v1885_v57 = vrot.slane %v1779_v63, 1  ;;  %v2023_v49 = vmul.f32 %v4113_v11, %v6643_v61 }
 0x1c5   : > { %6662 = vst [vmem:[#allocation37_spill] sm:$0xff] %v5336_v55  ;;  %v1738_v15 = vadd.f32 %v1706_v42, %v1670_v35  ;;  %v2819_v4 = vadd.f32 %v4758_v53, %v2780_v47  ;;  %v2024_v40 = vmul.f32 %v4113_v11, %v6644_v0  ;;  %v2262_v26 = vmul.f32 %v4122_v23, %v6664_v46  ;;  %v6666_v42 = vld [vmem:[#allocation74_spill] sm:$0xff] }
 0x1c6   : > { %v2820_v7 = vadd.f32 %v4758_v53, %v2781_v30  ;;  %v1886_v17 = vrot.slane %v1780_v12, 1  ;;  %v2129_v29 = vrot.slane %v2023_v49, 2  ;;  %v2263_v51 = vmul.f32 %v4122_v23, %v6665_v2  ;;  %v6668_v49 = vld [vmem:[#allocation75_spill] sm:$0xff] }
 0x1c7   : > { %v2335_v19 = vmul.f32 %v4117_v18, %v6664_v46  ;;  %v2851_v37 = vmax.f32 %v2819_v4, 0.0  ;;  %v6667_v59 = vrot.slane %v6666_v42, 1  ;;  %v2130_v5 = vrot.slane %v2024_v40, 2  ;;  %v6671_v42 = vld [vmem:[#allocation68_spill] sm:$0xff] }
 0x1c8   : > { %v2852_v61 = vmax.f32 %v2820_v7, 0.0  ;;  %v1887_v38 = vsel %vm1302_vm2, %v1885_v57, %v1886_v17  ;;  %v2336_v35 = vmul.f32 %v4117_v18, %v6665_v2  ;;  %v2579_v30 = vmul.f32 %v5197_v33, %v6664_v46 }
 0x1c9   : > { %v1889_v63 = vsel %vm1302_vm2, %v1886_v17, %v6667_v59  ;;  %v1982_v20 = vadd.f32 %v1887_v38, %v1738_v15  ;;  %v2441_v47 = vrot.slane %v2335_v19, 1  ;;  %v2580_v12 = vmul.f32 %v5197_v33, %v6665_v2 }
 0x1ca   : > { %v1983_v0 = vadd.f32 %v1889_v63, %v1739_v56  ;;  %v2879_v32 = vpack.c.bf16 %v2852_v61, %v2851_v37  ;;  %v2131_v57 = vsel %vm1547_vm3, %v2129_v29, %v2130_v5  ;;  %v6669_v4 = vrot.slane %v6668_v49, 2  ;;  %v6670_v56 = vld [vmem:[#allocation83_spill] sm:$0xff] }
 0x1cb   : > { %v2442_v15 = vrot.slane %v2336_v35, 1  ;;  %v752_v17 = vadd.f32 %v5055_v1, %v6670_v56  ;;  %v2226_v40 = vadd.f32 %v2131_v57, %v1982_v20  ;;  %v2685_v19 = vrot.slane %v2579_v30, 2  ;;  %v6674_v56 = vld [vmem:[#allocation69_spill] sm:$0xff] }
 0x1cc   : > { %v2133_v7 = vsel %vm1547_vm3, %v2130_v5, %v6669_v4  ;;  %3524 = vmatprep.mubr.bf16.mxu1 %v2879_v32  ;;  %v2686_v61 = vrot.slane %v2580_v12, 2  ;;  %v6672_v59 = vrot.slane %v6671_v42, 1  ;;  %v744_v49 = vadd.f32 %v5055_v1, %v6673_v50  ;;  %v6676_v12 = vld [vmem:[#allocation71_spill] sm:$0xff]  ;;  %v6678_v57 = vld [vmem:[#allocation61_spill] sm:$0xff] }
 0x1cd   : > { %v2227_v37 = vadd.f32 %v2133_v7, %v1983_v0  ;;  %v2443_v38 = vsel %vm1302_vm2, %v2441_v47, %v2442_v15  ;;  %v802_v29 = vmax.f32 %v752_v17, 0.0  ;;  %v2294_v5 = vadd.f32 %v2262_v26, %v2226_v40  ;;  %v6680_v17 = vld [vmem:[#allocation72_spill] sm:$0xff] }
 0x1ce   : > { %v2445_v63 = vsel %vm1302_vm2, %v2442_v15, %v6672_v59  ;;  %v2687_v4 = vsel %vm1547_vm3, %v2685_v19, %v2686_v61  ;;  %v6675_v32 = vrot.slane %v6674_v56, 2  ;;  %v800_v30 = vmax.f32 %v744_v49, 0.0  ;;  %v6682_v59 = vld [vmem:[#allocation62_spill] sm:$0xff] }
 0x1cf   : > { %v2295_v35 = vadd.f32 %v2263_v51, %v2227_v37  ;;  %v1034_v0 = vrot.slane %v802_v29, 7  ;;  %v6677_v47 = vrot.slane %v6676_v12, 1  ;;  %v6679_v7 = vrot.slane %v6678_v57, 1  ;;  %v6684_v37 = vld [vmem:[#allocation60_spill] sm:$0xff] }
 0x1d0   : > { %v2689_v20 = vsel %vm1547_vm3, %v2686_v61, %v6675_v32  ;;  %v6681_v42 = vrot.slane %v6680_v17, 2  ;;  %v6683_v50 = vrot.slane %v6682_v59, 2  ;;  %v2538_v51 = vadd.f32 %v2443_v38, %v2294_v5 }
 0x1d1   : > { %v1335_v15 = vsel %vm1302_vm2, %v6679_v7, %v6677_v47  ;;  %v2539_v40 = vadd.f32 %v2445_v63, %v2295_v35  ;;  %v1708_v61 = vmul.f32 %v6580_v60, %v6664_v46  ;;  %v5396_v29 = vsel %vm987_vm1, %v5244_v31, %v1034_v0 }
 0x1d2   : > { %v1580_v26 = vsel %vm1547_vm3, %v6683_v50, %v6681_v42  ;;  %v1427_v19 = vadd.f32 %v1335_v15, %v6684_v37  ;;  %v1129_v49 = vsel %vm987_vm1, %v1034_v0, 0.0  ;;  %v1031_v56 = vrot.slane %v800_v30, 7 }
 0x1d3   : > { %v1709_v32 = vmul.f32 %v6580_v60, %v6665_v2  ;;  %v2782_v12 = vadd.f32 %v2687_v4, %v2538_v51  ;;  %v2783_v47 = vadd.f32 %v2689_v20, %v2539_v40  ;;  %v1169_v38 = vmul.f32 %v4087_v43, %v5396_v29 }
 0x1d4   : > { %v5405_v63 = vmul.f32 %v4069_v34, %v5396_v29  ;;  %v1253_v5 = vmul.f32 %v4069_v34, %v1129_v49  ;;  %v5410_v31 = vmul.f32 %v4083_v41, %v5396_v29  ;;  %v1498_v35 = vmul.f32 %v4083_v41, %v1129_v49 }
 0x1d5   : > { %v5414_v0 = vmul.f32 %v4111_v10, %v1129_v49  ;;  %v2821_v4 = vadd.f32 %v4758_v53, %v2782_v12  ;;  %v2822_v20 = vadd.f32 %v4758_v53, %v2783_v47  ;;  %v5420_v57 = vmul.f32 %v4113_v11, %v1129_v49 }
 0x1d6   : > { %v6429_v30 = vrot.slane %v5405_v63, 1  ;;  %v1381_v7 = vrot.slane %v1253_v5, 1  ;;  %v6428_v15 = vrot.slane %v5410_v31, 2  ;;  %v1626_v17 = vrot.slane %v1498_v35, 2 }
 0x1d7   : > { %6685 = vst [vmem:[#allocation50_spill] sm:$0xff] %v5414_v0  ;;  %6686 = vst [vmem:[#allocation39_spill] sm:$0xff] %v5420_v57  ;;  %v2853_v59 = vmax.f32 %v2821_v4, 0.0  ;;  %v2854_v50 = vmax.f32 %v2822_v20, 0.0  ;;  %v5426_v40 = vmul.f32 %v4117_v18, %v1129_v49  ;;  %v5437_v12 = vmul.f32 %v5197_v33, %v1129_v49 }
 0x1d8   : > { %v1382_v53 = vsel %vm1302_vm2, %v6429_v30, %v1381_v7  ;;  %v5434_v37 = vsel %vm1547_vm3, %v6428_v15, %v1626_v17  ;;  %v5441_v47 = vsel %vm987_vm1, %v5308_v6, %v1031_v56  ;;  %v1128_v20 = vsel %vm987_vm1, %v1031_v56, 0.0 }
 0x1d9   : > { %6687 = vst [vmem:[#allocation59_spill] sm:$0xff] %v5426_v40  ;;  %6688 = vst [vmem:[#allocation58_spill] sm:$0xff] %v5437_v12  ;;  %v2880_v5 = vpack.c.bf16 %v2854_v50, %v2853_v59  ;;  %v5443_v35 = vadd.f32 %v1382_v53, %v1169_v38  ;;  %v1167_v17 = vmul.f32 %v4087_v43, %v5441_v47  ;;  %v6693_v12 = vld [vmem:[#allocation81_spill] sm:$0xff] }
 0x1da   : > { %v5452_v49 = vmul.f32 %v4069_v34, %v5441_v47  ;;  %v1250_v51 = vmul.f32 %v4069_v34, %v1128_v20  ;;  %v5457_v6 = vmul.f32 %v4083_v41, %v5441_v47  ;;  %v1495_v38 = vmul.f32 %v4083_v41, %v1128_v20 }
 0x1db   : > { %3525 = vmatmul.mubr.bf16.gmra.mxu1 %v2880_v5  ;;  %v5461_v56 = vmul.f32 %v4111_v10, %v1128_v20  ;;  %v5464_v59 = vmul.f32 %v4113_v11, %v1128_v20  ;;  %v5468_v42 = vmul.f32 %v4117_v18, %v1128_v20  ;;  %v5471_v34 = vmul.f32 %v5197_v33, %v1128_v20 }
 0x1dc   : > { %6689 = vst [vmem:[#allocation70_spill] sm:$0xff] %v5452_v49  ;;  %6690 = vst [vmem:[#allocation43_spill] sm:$0xff] %v5457_v6  ;;  %v6435_v50 = vrot.slane %v5452_v49, 1  ;;  %v1376_v53 = vrot.slane %v1250_v51, 1  ;;  %v6434_v5 = vrot.slane %v5457_v6, 2  ;;  %v1621_v7 = vrot.slane %v1495_v38, 2 }
 0x1dd   : > { %6691 = vst [vmem:[#allocation44_spill] sm:$0xff] %v5461_v56  ;;  %6692 = vst [vmem:[#allocation41_spill] sm:$0xff] %v5464_v59  ;;  %v1672_v57 = vadd.f32 %v1580_v26, %v1427_v19  ;;  %v1741_v38 = vadd.f32 %v1709_v32, %v6693_v12  ;;  %v1782_v62 = vmul.f32 %v4111_v10, %v6664_v46  ;;  %v6698_v51 = vld [vmem:[#allocation67_spill] sm:$0xff] }
 0x1de   : > { %v1377_v15 = vsel %vm1302_vm2, %v6435_v50, %v1376_v53  ;;  %v1622_v20 = vsel %vm1547_vm3, %v6434_v5, %v1621_v7  ;;  %v1783_v55 = vmul.f32 %v4111_v10, %v6665_v2  ;;  %v2026_v53 = vmul.f32 %v4113_v11, %v6664_v46 }
 0x1df   : > { %v1444_v0 = vadd.f32 %v1377_v15, %v1167_v17  ;;  %v1740_v4 = vadd.f32 %v1708_v61, %v1672_v57  ;;  %v2027_v26 = vmul.f32 %v4113_v11, %v6665_v2  ;;  %v1890_v15 = vrot.slane %v1782_v62, 1  ;;  %v6695_v17 = vld [vmem:[#allocation82_spill] sm:$0xff] }
 0x1e0   : > { %v2264_v7 = vmul.f32 %v4122_v23, %v6695_v17  ;;  %v2265_v32 = vmul.f32 %v4122_v23, %v4776_v8  ;;  %v1891_v12 = vrot.slane %v1783_v55, 1  ;;  %v2134_v61 = vrot.slane %v2026_v53, 2  ;;  %v6696_v55 = vld [vmem:[#allocation66_spill] sm:$0xff] }
 0x1e1   : > { %v5493_v19 = vadd.f32 %v1622_v20, %v1444_v0  ;;  %v2135_v57 = vrot.slane %v2027_v26, 2  ;;  %v2338_v5 = vmul.f32 %v4117_v18, %v6695_v17  ;;  %v2339_v46 = vmul.f32 %v4117_v18, %v4776_v8 }
 0x1e2   : > { %v2582_v2 = vmul.f32 %v5197_v33, %v6695_v17  ;;  %v2583_v62 = vmul.f32 %v5197_v33, %v4776_v8  ;;  %v757_v0 = vadd.f32 %v5055_v1, %v4845_v52  ;;  %v1892_v20 = vsel %vm1302_vm2, %v1890_v15, %v1891_v12 }
 0x1e3   : > { %6694 = vst [vmem:[#allocation34_spill] sm:$0xff] %v5493_v19  ;;  %v6697_v53 = vrot.slane %v6696_v55, 1  ;;  %v2136_v50 = vsel %vm1547_vm3, %v2134_v61, %v2135_v57  ;;  %v6699_v30 = vrot.slane %v6698_v51, 2  ;;  %v1984_v6 = vadd.f32 %v1892_v20, %v1740_v4 }
 0x1e4   : > { %v2446_v48 = vrot.slane %v2338_v5, 1  ;;  %v2447_v49 = vrot.slane %v2339_v46, 1  ;;  %v2690_v40 = vrot.slane %v2582_v2, 2  ;;  %v2691_v59 = vrot.slane %v2583_v62, 2 }
 0x1e5   : > { %v1894_v26 = vsel %vm1302_vm2, %v1891_v12, %v6697_v53  ;;  %v2138_v19 = vsel %vm1547_vm3, %v2135_v57, %v6699_v30  ;;  %v803_v56 = vmax.f32 %v757_v0, 0.0  ;;  %v1168_v52 = vmul.f32 %v4087_v43, %v5252_v58 }
 0x1e6   : > { %v1985_v44 = vadd.f32 %v1894_v26, %v1741_v38  ;;  %v2228_v15 = vadd.f32 %v2136_v50, %v1984_v6  ;;  %v2448_v12 = vsel %vm1302_vm2, %v2446_v48, %v2447_v49  ;;  %v6700_v61 = vrot.slane %v4801_v14, 1  ;;  %v6702_v48 = vld [vmem:[#allocation64_spill] sm:$0xff]  ;;  %v6704_v14 = vld [vmem:[#allocation55_spill] sm:$0xff] }
 0x1e7   : > { %v2692_v30 = vsel %vm1547_vm3, %v2690_v40, %v2691_v59  ;;  %v6701_v4 = vrot.slane %v4808_v28, 2  ;;  %v5527_v38 = vrot.slane %v803_v56, 7  ;;  %v1378_v57 = vrot.slane %v5264_v13, 1 }
 0x1e8   : > { %v2229_v55 = vadd.f32 %v2138_v19, %v1985_v44  ;;  %v2450_v51 = vsel %vm1302_vm2, %v2447_v49, %v6700_v61  ;;  %v2296_v46 = vadd.f32 %v2264_v7, %v2228_v15  ;;  %v1496_v44 = vmul.f32 %v4083_v41, %v5252_v58  ;;  %v6708_v19 = vld [vmem:[#allocation65_spill] sm:$0xff] }
 0x1e9   : > { %v2694_v5 = vsel %vm1547_vm3, %v2691_v59, %v6701_v4  ;;  %v6703_v6 = vrot.slane %v6702_v48, 1  ;;  %v6705_v50 = vrot.slane %v6704_v14, 1  ;;  %v1112_v28 = vsel %vm987_vm1, 0.0, %v5527_v38  ;;  %v6707_v59 = vld [vmem:[#allocation54_spill] sm:$0xff] }
 0x1ea   : > { %v2297_v43 = vadd.f32 %v2265_v32, %v2229_v55  ;;  %v6706_v40 = vrot.slane %v5405_v63, 1  ;;  %v6709_v7 = vrot.slane %v6708_v19, 2  ;;  %v6710_v32 = vld [vmem:[#allocation57_spill] sm:$0xff]  ;;  %v2540_v62 = vadd.f32 %v2448_v12, %v2296_v46 }
 0x1eb   : > { %v1340_v49 = vsel %vm1302_vm2, %v6705_v50, %v6703_v6  ;;  %v6711_v2 = vrot.slane %v6710_v32, 2  ;;  %v1623_v53 = vrot.slane %v1496_v44, 2  ;;  %v1726_v26 = vmul.f32 %v6580_v60, %v1112_v28 }
 0x1ec   : > { %v1380_v56 = vsel %vm1302_vm2, %v1378_v57, %v6706_v40  ;;  %v1429_v13 = vadd.f32 %v1340_v49, %v6707_v59  ;;  %v2541_v0 = vadd.f32 %v2450_v51, %v2297_v43  ;;  %v5550_v15 = vmul.f32 %v4111_v10, %v1112_v28 }
 0x1ed   : > { %v1585_v41 = vsel %vm1547_vm3, %v6711_v2, %v6709_v7  ;;  %v1445_v20 = vadd.f32 %v1380_v56, %v1168_v52  ;;  %v5553_v63 = vmul.f32 %v4113_v11, %v1112_v28  ;;  %v5556_v55 = vmul.f32 %v4122_v23, %v1112_v28 }
 0x1ee   : > { %v2784_v61 = vadd.f32 %v2692_v30, %v2540_v62  ;;  %v2785_v4 = vadd.f32 %v2694_v5, %v2541_v0  ;;  %v6712_v57 = vrot.slane %v5410_v31, 2  ;;  %v5562_v52 = vmul.f32 %v4117_v18, %v1112_v28  ;;  %v5572_v30 = vld [vmem:[%s6280_s4] ss:$0 sm:$0xff] }
 0x1ef   : > { %v1935_v46 = vrot.slane %v5550_v15, 1  ;;  %v2179_v43 = vrot.slane %v5553_v63, 2  ;;  %v5567_v44 = vmul.f32 %v5197_v33, %v1112_v28  ;;  %v1674_v6 = vadd.f32 %v1585_v41, %v1429_v13  ;;  %v6713_v13 = vld [vmem:[#allocation76_spill] sm:$0xff] }
 0x1f0   : > { %v1625_v12 = vsel %vm1547_vm3, %v1623_v53, %v6712_v57  ;;  %v2823_v31 = vadd.f32 %v5572_v30, %v2784_v61  ;;  %v2824_v5 = vadd.f32 %v5572_v30, %v2785_v4  ;;  %v2486_v48 = vrot.slane %v5562_v52, 1  ;;  %v6714_v53 = vld [vmem:[#allocation77_spill] sm:$0xff]  ;;  %v6715_v57 = vld [vmem:[#allocation88_spill] sm:$0xff] }
 0x1f1   : > { %v1690_v51 = vadd.f32 %v1625_v12, %v1445_v20  ;;  %v1710_v49 = vmul.f32 %v6580_v60, %v6695_v17  ;;  %v1711_v28 = vmul.f32 %v6580_v60, %v4776_v8  ;;  %v1785_v59 = vmul.f32 %v4111_v10, %v6695_v17 }
 0x1f2   : > { %v2855_v40 = vmax.f32 %v2823_v31, 0.0  ;;  %v2856_v56 = vmax.f32 %v2824_v5, 0.0  ;;  %v1786_v19 = vmul.f32 %v4111_v10, %v4776_v8  ;;  %v2029_v2 = vmul.f32 %v4113_v11, %v6695_v17 }
 0x1f3   : > { %v5577_v14 = vadd.f32 %v1726_v26, %v1690_v51  ;;  %v1742_v7 = vadd.f32 %v1710_v49, %v1674_v6  ;;  %v1743_v32 = vadd.f32 %v1711_v28, %v6713_v13  ;;  %v2030_v41 = vmul.f32 %v4113_v11, %v4776_v8  ;;  %v759_v49 = vpop.f32.mrf.mxu0 }
 0x1f4   : > { %v2881_v62 = vpack.c.bf16 %v2856_v56, %v2855_v40  ;;  %v1895_v0 = vrot.slane %v1785_v59, 1  ;;  %v1896_v20 = vrot.slane %v1786_v19, 1  ;;  %v2266_v26 = vmul.f32 %v4122_v23, %v6714_v53 }
 0x1f5   : > { %v2139_v61 = vrot.slane %v2029_v2, 2  ;;  %v2140_v4 = vrot.slane %v2030_v41, 2  ;;  %v2267_v12 = vmul.f32 %v4122_v23, %v6715_v57  ;;  %v2341_v51 = vmul.f32 %v4117_v18, %v6714_v53 }
 0x1f6   : > { %3528 = vmatprep.mubr.bf16.mxu1 %v2881_v62  ;;  %v1897_v17 = vsel %vm1302_vm2, %v1895_v0, %v1896_v20  ;;  %v6716_v31 = vrot.slane %v4792_v36, 1  ;;  %v2342_v5 = vmul.f32 %v4117_v18, %v6715_v57  ;;  %v2585_v6 = vmul.f32 %v5197_v33, %v6714_v53 }
 0x1f7   : > { %v1986_v28 = vadd.f32 %v1897_v17, %v1742_v7  ;;  %v2141_v56 = vsel %vm1547_vm3, %v2139_v61, %v2140_v4  ;;  %v6717_v59 = vrot.slane %v4797_v24, 2  ;;  %v2451_v13 = vrot.slane %v2341_v51, 1  ;;  %v6720_v17 = vld [vmem:[#allocation85_spill] sm:$0xff] }
 0x1f8   : > { %v1899_v8 = vsel %vm1302_vm2, %v1896_v20, %v6716_v31  ;;  %v2452_v2 = vrot.slane %v2342_v5, 1  ;;  %v2586_v36 = vmul.f32 %v5197_v33, %v6715_v57  ;;  %v2695_v41 = vrot.slane %v2585_v6, 2 }
 0x1f9   : > { %v1987_v40 = vadd.f32 %v1899_v8, %v1743_v32  ;;  %v2143_v19 = vsel %vm1547_vm3, %v2140_v4, %v6717_v59  ;;  %v2230_v62 = vadd.f32 %v2141_v56, %v1986_v28  ;;  %v760_v20 = vadd.f32 %v5055_v1, %v759_v49  ;;  %v6722_v1 = vld [vmem:[#allocation84_spill] sm:$0xff]  ;;  %v6725_v56 = vld [vmem:[#allocation86_spill] sm:$0xff] }
 0x1fa   : > { %v1691_v7 = vadd.f32 %v5434_v37, %v5443_v35  ;;  %v2453_v32 = vsel %vm1302_vm2, %v2451_v13, %v2452_v2  ;;  %v6718_v61 = vrot.slane %v4715_v25, 1  ;;  %v2696_v4 = vrot.slane %v2586_v36, 2 }
 0x1fb   : > { %v2231_v0 = vadd.f32 %v2143_v19, %v1987_v40  ;;  %v6719_v51 = vrot.slane %v4783_v27, 1  ;;  %v6721_v31 = vrot.slane %v6720_v17, 1  ;;  %v2298_v5 = vadd.f32 %v2266_v26, %v2230_v62 }
 0x1fc   : > { %v2455_v24 = vsel %vm1302_vm2, %v2452_v2, %v6718_v61  ;;  %v804_v28 = vmax.f32 %v760_v20, 0.0  ;;  %v2697_v37 = vsel %vm1547_vm3, %v2695_v41, %v2696_v4  ;;  %v6723_v35 = vrot.slane %v4720_v9, 2 }
 0x1fd   : > { %v1345_v8 = vsel %vm1302_vm2, %v6721_v31, %v6719_v51  ;;  %v2299_v6 = vadd.f32 %v2267_v12, %v2231_v0  ;;  %v6724_v40 = vrot.slane %v4788_v3, 2  ;;  %v6726_v59 = vrot.slane %v6725_v56, 2 }
 0x1fe   : > { %v1431_v49 = vadd.f32 %v1345_v8, %v6722_v1  ;;  %v2699_v25 = vsel %vm1547_vm3, %v2696_v4, %v6723_v35  ;;  %v1712_v19 = vmul.f32 %v6580_v60, %v6714_v53  ;;  %v2542_v26 = vadd.f32 %v2453_v32, %v2298_v5 }
 0x1ff   : > { %v1590_v27 = vsel %vm1547_vm3, %v6726_v59, %v6724_v40  ;;  %v2543_v12 = vadd.f32 %v2455_v24, %v2299_v6  ;;  %v1037_v13 = vrot.slane %v804_v28, 7  ;;  %v1713_v36 = vmul.f32 %v6580_v60, %v6715_v57 }
 0x200   : > { %v1676_v2 = vadd.f32 %v1590_v27, %v1431_v49  ;;  %v1788_v9 = vmul.f32 %v4111_v10, %v6714_v53  ;;  %v1789_v3 = vmul.f32 %v4111_v10, %v6715_v57  ;;  %v2032_v41 = vmul.f32 %v4113_v11, %v6714_v53 }
 0x201   : > { %v2786_v62 = vadd.f32 %v2697_v37, %v2542_v26  ;;  %v2787_v0 = vadd.f32 %v2699_v25, %v2543_v12  ;;  %v5647_v20 = vsel %vm987_vm1, %v5527_v38, %v1037_v13  ;;  %v1130_v32 = vsel %vm987_vm1, %v1037_v13, 0.0 }
 0x202   : > { %v1727_v61 = vmul.f32 %v6580_v60, %v5647_v20  ;;  %v5654_v24 = vmul.f32 %v4111_v10, %v5647_v20  ;;  %v1811_v4 = vmul.f32 %v4111_v10, %v1130_v32  ;;  %v5659_v53 = vmul.f32 %v4113_v11, %v5647_v20 }
 0x203   : > { %v2825_v51 = vadd.f32 %v5572_v30, %v2786_v62  ;;  %v2826_v38 = vadd.f32 %v5572_v30, %v2787_v0  ;;  %v2055_v17 = vmul.f32 %v4113_v11, %v1130_v32  ;;  %v5666_v31 = vmul.f32 %v4117_v18, %v5647_v20 }
 0x204   : > { %v1759_v8 = vadd.f32 %v1727_v61, %v1691_v7  ;;  %v1936_v5 = vrot.slane %v5654_v24, 1  ;;  %v1938_v6 = vrot.slane %v1811_v4, 1  ;;  %v2180_v28 = vrot.slane %v5659_v53, 2 }
 0x205   : > { %v2857_v1 = vmax.f32 %v2825_v51, 0.0  ;;  %v2858_v49 = vmax.f32 %v2826_v38, 0.0  ;;  %v2182_v37 = vrot.slane %v2055_v17, 2  ;;  %v5671_v35 = vmul.f32 %v4117_v18, %v1130_v32 }
 0x206   : > { %v1939_v25 = vsel %vm1302_vm2, %v1936_v5, %v1938_v6  ;;  %v2487_v40 = vrot.slane %v5666_v31, 1  ;;  %v5678_v56 = vmul.f32 %v5197_v33, %v1130_v32  ;;  %v1744_v7 = vadd.f32 %v1712_v19, %v1676_v2 }
 0x207   : > { %v2882_v59 = vpack.c.bf16 %v2858_v49, %v2857_v1  ;;  %v2003_v27 = vadd.f32 %v1939_v25, %v1759_v8  ;;  %v2183_v26 = vsel %vm1547_vm3, %v2180_v28, %v2182_v37  ;;  %v2489_v12 = vrot.slane %v5671_v35, 1  ;;  %v6729_v49 = vld [vmem:[#allocation79_spill] sm:$0xff] }
 0x208   : > { %v1745_v62 = vadd.f32 %v1713_v36, %v4833_v45  ;;  %v1900_v0 = vrot.slane %v1788_v9, 1  ;;  %v1901_v61 = vrot.slane %v1789_v3, 1  ;;  %v2033_v19 = vmul.f32 %v4113_v11, %v6715_v57  ;;  %v6839_v35 = vld [vmem:[#allocation39_spill] sm:$0xff] }
 0x209   : > { %3529 = vmatmul.mubr.bf16.gmra.mxu1 %v2882_v59  ;;  %v5686_v4 = vadd.f32 %v2183_v26, %v2003_v27  ;;  %v2144_v2 = vrot.slane %v2032_v41, 2  ;;  %v2268_v32 = vmul.f32 %v4122_v23, %v4841_v21  ;;  %v6727_v38 = vrot.slane %v4709_v39, 1  ;;  %v6731_v59 = vld [vmem:[#allocation90_spill] sm:$0xff] }
 0x20a   : > { %v1902_v51 = vsel %vm1302_vm2, %v1900_v0, %v1901_v61  ;;  %v2269_v45 = vmul.f32 %v4122_v23, %v4941_v54  ;;  %v2344_v36 = vmul.f32 %v4117_v18, %v4841_v21  ;;  %v2145_v8 = vrot.slane %v2033_v19, 2  ;;  %v6733_v0 = vld [vmem:[#allocation78_spill] sm:$0xff] }
 0x20b   : > { %v1904_v17 = vsel %vm1302_vm2, %v1901_v61, %v6727_v38  ;;  %v1988_v9 = vadd.f32 %v1902_v51, %v1744_v7  ;;  %v2345_v57 = vmul.f32 %v4117_v18, %v4941_v54  ;;  %v2588_v6 = vmul.f32 %v5197_v33, %v4841_v21 }
 0x20c   : > { %v1989_v3 = vadd.f32 %v1904_v17, %v1745_v62  ;;  %v2456_v41 = vrot.slane %v2344_v36, 1  ;;  %v2589_v39 = vmul.f32 %v5197_v33, %v4941_v54  ;;  %v6728_v1 = vrot.slane %v4700_v22, 1  ;;  %v6734_v22 = vld [vmem:[#allocation108_spill] sm:$0xff] }
 0x20d   : > { %v6730_v37 = vrot.slane %v6729_v49, 1  ;;  %v2146_v7 = vsel %vm1547_vm3, %v2144_v2, %v2145_v8  ;;  %v6732_v27 = vrot.slane %v6731_v59, 2  ;;  %v2457_v62 = vrot.slane %v2345_v57, 1  ;;  %v6738_v2 = vld [vmem:[#allocation80_spill] sm:$0xff] }
 0x20e   : > { %v2232_v19 = vadd.f32 %v2146_v7, %v1988_v9  ;;  %v2700_v38 = vrot.slane %v2588_v6, 2  ;;  %v2701_v17 = vrot.slane %v2589_v39, 2  ;;  %v6735_v13 = vrot.slane %v6734_v22, 1  ;;  %v6740_v6 = vld [vmem:[#allocation109_spill] sm:$0xff] }
 0x20f   : > { %v1350_v25 = vsel %vm1302_vm2, %v6730_v37, %v6728_v1  ;;  %v2148_v26 = vsel %vm1547_vm3, %v2145_v8, %v6732_v27  ;;  %v2458_v36 = vsel %vm1302_vm2, %v2456_v41, %v2457_v62  ;;  %v6736_v1 = vld [vmem:[#allocation89_spill] sm:$0xff]  ;;  %v6739_v50 = vrot.slane %v6738_v2, 2  ;;  %v6743_v2 = vld [vmem:[#allocation106_spill] sm:$0xff] }
 0x210   : > { %v1433_v61 = vadd.f32 %v1350_v25, %v6733_v0  ;;  %v2233_v51 = vadd.f32 %v2148_v26, %v1989_v3  ;;  %v2460_v49 = vsel %vm1302_vm2, %v2457_v62, %v6735_v13  ;;  %v6737_v37 = vrot.slane %v6736_v1, 2  ;;  %v6742_v0 = vld [vmem:[#allocation91_spill] sm:$0xff] }
 0x211   : > { %v1714_v8 = vmul.f32 %v6580_v60, %v4841_v21  ;;  %v2300_v57 = vadd.f32 %v2268_v32, %v2232_v19  ;;  %v2702_v3 = vsel %vm1547_vm3, %v2700_v38, %v2701_v17  ;;  %v6741_v39 = vrot.slane %v6740_v6, 2 }
 0x212   : > { %v1595_v59 = vsel %vm1547_vm3, %v6739_v50, %v6737_v37  ;;  %v2301_v9 = vadd.f32 %v2269_v45, %v2233_v51  ;;  %v1715_v13 = vmul.f32 %v6580_v60, %v4941_v54  ;;  %v1791_v7 = vmul.f32 %v4111_v10, %v4841_v21 }
 0x213   : > { %v2704_v41 = vsel %vm1547_vm3, %v2701_v17, %v6741_v39  ;;  %v1678_v25 = vadd.f32 %v1595_v59, %v1433_v61  ;;  %v1792_v50 = vmul.f32 %v4111_v10, %v4941_v54  ;;  %v2544_v27 = vadd.f32 %v2458_v36, %v2300_v57  ;;  %v6745_v59 = vld [vmem:[#allocation92_spill] sm:$0xff]  ;;  %v6746_v57 = vld [vmem:[#allocation27_spill] sm:$0xff] }
 0x214   : > { %v2545_v26 = vadd.f32 %v2460_v49, %v2301_v9  ;;  %v2035_v32 = vmul.f32 %v4113_v11, %v4841_v21  ;;  %v2036_v45 = vmul.f32 %v4113_v11, %v4941_v54  ;;  %v1747_v61 = vadd.f32 %v1715_v13, %v6742_v0 }
 0x215   : > { %v1746_v62 = vadd.f32 %v1714_v8, %v1678_v25  ;;  %v1905_v19 = vrot.slane %v1791_v7, 1  ;;  %v1906_v51 = vrot.slane %v1792_v50, 1  ;;  %v2788_v38 = vadd.f32 %v2702_v3, %v2544_v27 }
 0x216   : > { %v2789_v17 = vadd.f32 %v2704_v41, %v2545_v26  ;;  %v2149_v22 = vrot.slane %v2035_v32, 2  ;;  %v2150_v1 = vrot.slane %v2036_v45, 2  ;;  %v6744_v36 = vrot.slane %v6743_v2, 1  ;;  %v6747_v41 = vld [vmem:[#allocation107_spill] sm:$0xff] }
 0x217   : > { %v1907_v37 = vsel %vm1302_vm2, %v1905_v19, %v1906_v51  ;;  %v2270_v21 = vmul.f32 %v4122_v23, %v6745_v59  ;;  %v2271_v54 = vmul.f32 %v4122_v23, %v6746_v57  ;;  %v2827_v8 = vadd.f32 %v5572_v30, %v2788_v38 }
 0x218   : > { %v1909_v49 = vsel %vm1302_vm2, %v1906_v51, %v6744_v36  ;;  %v2828_v9 = vadd.f32 %v5572_v30, %v2789_v17  ;;  %v1990_v3 = vadd.f32 %v1907_v37, %v1746_v62  ;;  %v2151_v39 = vsel %vm1547_vm3, %v2149_v22, %v2150_v1  ;;  %v6749_v22 = vld [vmem:[#allocation103_spill] sm:$0xff]  ;;  %v6751_v37 = vld [vmem:[#allocation97_spill] sm:$0xff] }
 0x219   : > { %v1991_v6 = vadd.f32 %v1909_v49, %v1747_v61  ;;  %v6748_v25 = vrot.slane %v6747_v41, 2  ;;  %v2347_v7 = vmul.f32 %v4117_v18, %v6745_v59  ;;  %v2348_v50 = vmul.f32 %v4117_v18, %v6746_v57 }
 0x21a   : > { %v2859_v27 = vmax.f32 %v2827_v8, 0.0  ;;  %v2860_v26 = vmax.f32 %v2828_v9, 0.0  ;;  %v2234_v32 = vadd.f32 %v2151_v39, %v1990_v3  ;;  %v2591_v62 = vmul.f32 %v5197_v33, %v6745_v59  ;;  %v6753_v8 = vld [vmem:[#allocation101_spill] sm:$0xff] }
 0x21b   : > { %v2153_v13 = vsel %vm1547_vm3, %v2150_v1, %v6748_v25  ;;  %v2461_v0 = vrot.slane %v2347_v7, 1  ;;  %v2462_v19 = vrot.slane %v2348_v50, 1  ;;  %v2592_v61 = vmul.f32 %v5197_v33, %v6746_v57  ;;  %v6758_v50 = vld [vmem:[#allocation98_spill] sm:$0xff] }
 0x21c   : > { %v2235_v45 = vadd.f32 %v2153_v13, %v1991_v6  ;;  %v2883_v51 = vpack.c.bf16 %v2860_v26, %v2859_v27  ;;  %v2302_v38 = vadd.f32 %v2270_v21, %v2234_v32  ;;  %v6750_v1 = vrot.slane %v6749_v22, 1  ;;  %v6755_v13 = vld [vmem:[#allocation96_spill] sm:$0xff] }
 0x21d   : > { %v6752_v2 = vrot.slane %v6751_v37, 1  ;;  %v2463_v49 = vsel %vm1302_vm2, %v2461_v0, %v2462_v19  ;;  %v6754_v9 = vrot.slane %v6753_v8, 1  ;;  %v2705_v6 = vrot.slane %v2591_v62, 2 }
 0x21e   : > { %v2303_v17 = vadd.f32 %v2271_v54, %v2235_v45  ;;  %v2706_v39 = vrot.slane %v2592_v61, 2  ;;  %3532 = vmatprep.mubr.bf16.mxu1 %v2883_v51  ;;  %v2546_v41 = vadd.f32 %v2463_v49, %v2302_v38  ;;  %v6756_v54 = vld [vmem:[#allocation105_spill] sm:$0xff]  ;;  %v6759_v27 = vrot.slane %v6758_v50, 2  ;;  %v6760_v45 = vld [vmem:[#allocation102_spill] sm:$0xff] }
 0x21f   : > { %v1355_v36 = vsel %vm1302_vm2, %v6752_v2, %v6750_v1  ;;  %v2465_v3 = vsel %vm1302_vm2, %v2462_v19, %v6754_v9  ;;  %v6757_v7 = vrot.slane %v6756_v54, 2  ;;  %v6761_v0 = vrot.slane %v6760_v45, 2  ;;  %v6762_v1 = vld [vmem:[#allocation114_spill] sm:$0xff] }
 0x220   : > { %v2547_v25 = vadd.f32 %v2465_v3, %v2303_v17  ;;  %v1435_v21 = vadd.f32 %v1355_v36, %v6755_v13  ;;  %v2707_v32 = vsel %vm1547_vm3, %v2705_v6, %v2706_v39  ;;  %v1716_v19 = vmul.f32 %v6580_v60, %v6745_v59  ;;  %v6763_v13 = vld [vmem:[#allocation19_spill] sm:$0xff]  ;;  %v6764_v50 = vld [vmem:[#allocation26_spill] sm:$0xff] }
 0x221   : > { %v1600_v26 = vsel %vm1547_vm3, %v6759_v27, %v6757_v7  ;;  %v2709_v22 = vsel %vm1547_vm3, %v2706_v39, %v6761_v0  ;;  %v1717_v62 = vmul.f32 %v6580_v60, %v6746_v57  ;;  %v2790_v61 = vadd.f32 %v2707_v32, %v2546_v41 }
 0x222   : > { %v2791_v51 = vadd.f32 %v2709_v22, %v2547_v25  ;;  %v1680_v38 = vadd.f32 %v1600_v26, %v1435_v21  ;;  %v1794_v17 = vmul.f32 %v4111_v10, %v6745_v59  ;;  %v1795_v2 = vmul.f32 %v4111_v10, %v6746_v57  ;;  %v6765_v26 = vld [vmem:[#allocation99_spill] sm:$0xff]  ;;  %v6767_v22 = vld [vmem:[#allocation100_spill] sm:$0xff] }
 0x223   : > { %v1749_v37 = vadd.f32 %v1717_v62, %v6762_v1  ;;  %v2038_v36 = vmul.f32 %v4113_v11, %v6745_v59  ;;  %v2039_v49 = vmul.f32 %v4113_v11, %v6746_v57  ;;  %v2829_v8 = vadd.f32 %v5572_v30, %v2790_v61 }
 0x224   : > { %v2830_v9 = vadd.f32 %v5572_v30, %v2791_v51  ;;  %v1748_v3 = vadd.f32 %v1716_v19, %v1680_v38  ;;  %v1910_v6 = vrot.slane %v1794_v17, 1  ;;  %v1911_v39 = vrot.slane %v1795_v2, 1 }
 0x225   : > { %v2154_v41 = vrot.slane %v2038_v36, 2  ;;  %v2155_v25 = vrot.slane %v2039_v49, 2  ;;  %v2272_v21 = vmul.f32 %v4122_v23, %v6763_v13  ;;  %v2861_v54 = vmax.f32 %v2829_v8, 0.0  ;;  %v6769_v49 = vld [vmem:[#allocation31_spill] sm:$0xff] }
 0x226   : > { %v2862_v7 = vmax.f32 %v2830_v9, 0.0  ;;  %v2273_v59 = vmul.f32 %v4122_v23, %v6764_v50  ;;  %v2350_v57 = vmul.f32 %v4117_v18, %v6763_v13  ;;  %v1912_v27 = vsel %vm1302_vm2, %v1910_v6, %v1911_v39  ;;  %v6771_v9 = vld [vmem:[#allocation94_spill] sm:$0xff] }
 0x227   : > { %v6766_v32 = vrot.slane %v6765_v26, 1  ;;  %v2156_v0 = vsel %vm1547_vm3, %v2154_v41, %v2155_v25  ;;  %v6768_v19 = vrot.slane %v6767_v22, 2  ;;  %v1992_v51 = vadd.f32 %v1912_v27, %v1748_v3  ;;  %v6774_v27 = vld [vmem:[#allocation28_spill] sm:$0xff] }
 0x228   : > { %v2884_v61 = vpack.c.bf16 %v2862_v7, %v2861_v54  ;;  %v2351_v17 = vmul.f32 %v4117_v18, %v6764_v50  ;;  %v2466_v1 = vrot.slane %v2350_v57, 1  ;;  %v2594_v2 = vmul.f32 %v5197_v33, %v6763_v13 }
 0x229   : > { %v1914_v45 = vsel %vm1302_vm2, %v1911_v39, %v6766_v32  ;;  %v2158_v62 = vsel %vm1547_vm3, %v2155_v25, %v6768_v19  ;;  %v2595_v36 = vmul.f32 %v5197_v33, %v6764_v50  ;;  %v6770_v8 = vrot.slane %v6769_v49, 1  ;;  %v6773_v25 = vld [vmem:[#allocation93_spill] sm:$0xff]  ;;  %v6776_v32 = vld [vmem:[#allocation95_spill] sm:$0xff] }
 0x22a   : > { %v1993_v38 = vadd.f32 %v1914_v45, %v1749_v37  ;;  %v6772_v6 = vrot.slane %v6771_v9, 1  ;;  %3533 = vmatmul.mubr.bf16.gmra.mxu1 %v2884_v61  ;;  %v2236_v41 = vadd.f32 %v2156_v0, %v1992_v51  ;;  %v2467_v37 = vrot.slane %v2351_v17, 1  ;;  %v6778_v0 = vld [vmem:[#allocation73_spill] sm:$0xff] }
 0x22b   : > { %v2710_v7 = vrot.slane %v2594_v2, 2  ;;  %v2711_v57 = vrot.slane %v2595_v36, 2  ;;  %v6775_v26 = vrot.slane %v6774_v27, 2  ;;  %v6777_v45 = vrot.slane %v6776_v32, 2  ;;  %v6780_v17 = vld [vmem:[#allocation45_spill] sm:$0xff] }
 0x22c   : > { %v1360_v39 = vsel %vm1302_vm2, %v6772_v6, %v6770_v8  ;;  %v2237_v3 = vadd.f32 %v2158_v62, %v1993_v38  ;;  %v1718_v22 = vmul.f32 %v6580_v60, %v6763_v13  ;;  %v2304_v19 = vadd.f32 %v2272_v21, %v2236_v41  ;;  %v6782_v41 = vld [vmem:[#allocation104_spill] sm:$0xff] }
 0x22d   : > { %v1437_v54 = vadd.f32 %v1360_v39, %v6773_v25  ;;  %v1605_v33 = vsel %vm1547_vm3, %v6777_v45, %v6775_v26  ;;  %v2468_v61 = vsel %vm1302_vm2, %v2466_v1, %v2467_v37  ;;  %v6779_v62 = vrot.slane %v6778_v0, 1  ;;  %v6783_v45 = vld [vmem:[#allocation110_spill] sm:$0xff]  ;;  %v6785_v0 = vld [vmem:[#allocation51_spill] sm:$0xff] }
 0x22e   : > { %v2305_v49 = vadd.f32 %v2273_v59, %v2237_v3  ;;  %v2712_v38 = vsel %vm1547_vm3, %v2710_v7, %v2711_v57  ;;  %v6781_v2 = vrot.slane %v6780_v17, 2  ;;  %v1719_v9 = vmul.f32 %v6580_v60, %v6764_v50 }
 0x22f   : > { %v2470_v51 = vsel %vm1302_vm2, %v2467_v37, %v6779_v62  ;;  %v1682_v8 = vadd.f32 %v1605_v33, %v1437_v54  ;;  %v2548_v6 = vadd.f32 %v2468_v61, %v2304_v19  ;;  %v1797_v21 = vmul.f32 %v4111_v10, %v6763_v13  ;;  %v6784_v19 = vld [vmem:[#allocation25_spill] sm:$0xff] }
 0x230   : > { %v2714_v36 = vsel %vm1547_vm3, %v2711_v57, %v6781_v2  ;;  %v2549_v39 = vadd.f32 %v2470_v51, %v2305_v49  ;;  %v1798_v59 = vmul.f32 %v4111_v10, %v6764_v50  ;;  %v1751_v3 = vadd.f32 %v1719_v9, %v6782_v41  ;;  %v6787_v2 = vld [vmem:[#allocation52_spill] sm:$0xff] }
 0x231   : > { %v1750_v1 = vadd.f32 %v1718_v22, %v1682_v8  ;;  %v2041_v37 = vmul.f32 %v4113_v11, %v6763_v13  ;;  %v2042_v25 = vmul.f32 %v4113_v11, %v6764_v50  ;;  %v2792_v54 = vadd.f32 %v2712_v38, %v2548_v6 }
 0x232   : > { %v2793_v7 = vadd.f32 %v2714_v36, %v2549_v39  ;;  %v1915_v57 = vrot.slane %v1797_v21, 1  ;;  %v1916_v27 = vrot.slane %v1798_v59, 1  ;;  %v2274_v33 = vmul.f32 %v4122_v23, %v6783_v45 }
 0x233   : > { %v2159_v26 = vrot.slane %v2041_v37, 2  ;;  %v2160_v32 = vrot.slane %v2042_v25, 2  ;;  %v2275_v22 = vmul.f32 %v4122_v23, %v6784_v19  ;;  %v2831_v49 = vadd.f32 %v5572_v30, %v2792_v54 }
 0x234   : > { %v2832_v61 = vadd.f32 %v5572_v30, %v2793_v7  ;;  %v1917_v13 = vsel %vm1302_vm2, %v1915_v57, %v1916_v27  ;;  %v6786_v50 = vrot.slane %v6785_v0, 1  ;;  %v6788_v36 = vrot.slane %v6787_v2, 2  ;;  %v6789_v57 = vld [vmem:[#allocation29_spill] sm:$0xff]  ;;  %v6795_v2 = vld [vmem:[#allocation30_spill] sm:$0xff] }
 0x235   : > { %v1994_v51 = vadd.f32 %v1917_v13, %v1750_v1  ;;  %v2161_v17 = vsel %vm1547_vm3, %v2159_v26, %v2160_v32  ;;  %v2863_v9 = vmax.f32 %v2831_v49, 0.0  ;;  %v2353_v39 = vmul.f32 %v4117_v18, %v6783_v45  ;;  %v5871_v1 = vld [vmem:[%s6279_s3 + $0x8] ss:$0 sm:$0xff]  ;;  %v6791_v26 = vld [vmem:[#allocation36_spill] sm:$0xff] }
 0x236   : > { %v1919_v62 = vsel %vm1302_vm2, %v1916_v27, %v6786_v50  ;;  %v2163_v8 = vsel %vm1547_vm3, %v2160_v32, %v6788_v36  ;;  %v2864_v6 = vmax.f32 %v2832_v61, 0.0  ;;  %v2354_v21 = vmul.f32 %v4117_v18, %v6784_v19 }
 0x237   : > { %v1995_v38 = vadd.f32 %v1919_v62, %v1751_v3  ;;  %v2238_v59 = vadd.f32 %v2161_v17, %v1994_v51  ;;  %v2597_v3 = vmul.f32 %v5871_v1, %v6783_v45  ;;  %v2598_v37 = vmul.f32 %v5871_v1, %v6784_v19  ;;  %v6793_v51 = vld [vmem:[#allocation24_spill] sm:$0xff] }
 0x238   : > { %v2885_v25 = vpack.c.bf16 %v2864_v6, %v2863_v9  ;;  %v2471_v54 = vrot.slane %v2353_v39, 1  ;;  %v2472_v7 = vrot.slane %v2354_v21, 1  ;;  %v6790_v27 = vrot.slane %v6789_v57, 1  ;;  %v6798_v6 = vld [vmem:[#allocation48_spill] sm:$0xff] }
 0x239   : > { %v2239_v41 = vadd.f32 %v2163_v8, %v1995_v38  ;;  %v6792_v32 = vrot.slane %v6791_v26, 1  ;;  %v2306_v61 = vadd.f32 %v2274_v33, %v2238_v59  ;;  %v2715_v0 = vrot.slane %v2597_v3, 2  ;;  %v6796_v8 = vld [vmem:[#allocation32_spill] sm:$0xff]  ;;  %v6800_v59 = vld [vmem:[#allocation22_spill] sm:$0xff] }
 0x23a   : > { %v2716_v50 = vrot.slane %v2598_v37, 2  ;;  %3536 = vmatprep.mubr.bf16.mxu1 %v2885_v25  ;;  %v2473_v62 = vsel %vm1302_vm2, %v2471_v54, %v2472_v7  ;;  %v6794_v38 = vrot.slane %v6793_v51, 1  ;;  %v6797_v9 = vrot.slane %v6796_v8, 2 }
 0x23b   : > { %v1365_v49 = vsel %vm1302_vm2, %v6792_v32, %v6790_v27  ;;  %v2307_v13 = vadd.f32 %v2275_v22, %v2239_v41  ;;  %v6799_v39 = vrot.slane %v6798_v6, 2  ;;  %v2550_v57 = vadd.f32 %v2473_v62, %v2306_v61 }
 0x23c   : > { %v2475_v17 = vsel %vm1302_vm2, %v2472_v7, %v6794_v38  ;;  %v1439_v36 = vadd.f32 %v1365_v49, %v6795_v2  ;;  %v2717_v22 = vsel %vm1547_vm3, %v2715_v0, %v2716_v50  ;;  %v6801_v41 = vrot.slane %v6800_v59, 2 }
 0x23d   : > { %v1610_v21 = vsel %vm1547_vm3, %v6799_v39, %v6797_v9  ;;  %v2551_v33 = vadd.f32 %v2475_v17, %v2307_v13  ;;  %v1720_v25 = vmul.f32 %v6580_v60, %v6783_v45  ;;  %v1721_v54 = vmul.f32 %v6580_v60, %v6784_v19  ;;  %v6802_v13 = vld [vmem:[#allocation46_spill] sm:$0xff] }
 0x23e   : > { %v2719_v3 = vsel %vm1547_vm3, %v2716_v50, %v6801_v41  ;;  %v1684_v37 = vadd.f32 %v1610_v21, %v1439_v36  ;;  %v1800_v7 = vmul.f32 %v4111_v10, %v6783_v45  ;;  %v2794_v27 = vadd.f32 %v2717_v22, %v2550_v57  ;;  %v6803_v21 = vld [vmem:[#allocation21_spill] sm:$0xff] }
 0x23f   : > { %v2795_v26 = vadd.f32 %v2719_v3, %v2551_v33  ;;  %v1801_v32 = vmul.f32 %v4111_v10, %v6784_v19  ;;  %v2044_v49 = vmul.f32 %v4113_v11, %v6783_v45  ;;  %v1753_v0 = vadd.f32 %v1721_v54, %v6802_v13  ;;  %v6805_v3 = vld [vmem:[#allocation20_spill] sm:$0xff] }
 0x240   : > { %v1752_v61 = vadd.f32 %v1720_v25, %v1684_v37  ;;  %v1920_v50 = vrot.slane %v1800_v7, 1  ;;  %v2045_v62 = vmul.f32 %v4113_v11, %v6784_v19  ;;  %v2833_v51 = vadd.f32 %v5572_v30, %v2794_v27  ;;  %v6807_v13 = vld [vmem:[#allocation56_spill] sm:$0xff] }
 0x241   : > { %v2834_v38 = vadd.f32 %v5572_v30, %v2795_v26  ;;  %v1921_v17 = vrot.slane %v1801_v32, 1  ;;  %v2164_v2 = vrot.slane %v2044_v49, 2  ;;  %v2276_v8 = vmul.f32 %v4122_v23, %v5324_v16 }
 0x242   : > { %v2165_v36 = vrot.slane %v2045_v62, 2  ;;  %v2277_v45 = vmul.f32 %v4122_v23, %v5441_v47  ;;  %v2356_v9 = vmul.f32 %v4117_v18, %v5324_v16  ;;  %v2865_v6 = vmax.f32 %v2833_v51, 0.0 }
 0x243   : > { %v2866_v39 = vmax.f32 %v2834_v38, 0.0  ;;  %v1922_v19 = vsel %vm1302_vm2, %v1920_v50, %v1921_v17  ;;  %v6804_v57 = vrot.slane %v6803_v21, 1  ;;  %v6806_v37 = vrot.slane %v6805_v3, 2  ;;  %v6809_v50 = vld [vmem:[#allocation112_spill] sm:$0xff] }
 0x244   : > { %v1996_v22 = vadd.f32 %v1922_v19, %v1752_v61  ;;  %v2166_v41 = vsel %vm1547_vm3, %v2164_v2, %v2165_v36  ;;  %v2357_v7 = vmul.f32 %v4117_v18, %v5441_v47  ;;  %v2476_v27 = vrot.slane %v2356_v9, 1  ;;  %v6811_v2 = vld [vmem:[#allocation111_spill] sm:$0xff] }
 0x245   : > { %v1924_v33 = vsel %vm1302_vm2, %v1921_v17, %v6804_v57  ;;  %v2168_v25 = vsel %vm1547_vm3, %v2165_v36, %v6806_v37  ;;  %v2886_v54 = vpack.c.bf16 %v2866_v39, %v2865_v6  ;;  %v2600_v26 = vmul.f32 %v5871_v1, %v5324_v16  ;;  %v6812_v9 = vld [vmem:[#allocation23_spill] sm:$0xff]  ;;  %v6814_v39 = vld [vmem:[#allocation113_spill] sm:$0xff] }
 0x246   : > { %v1997_v59 = vadd.f32 %v1924_v33, %v1753_v0  ;;  %v2240_v32 = vadd.f32 %v2166_v41, %v1996_v22  ;;  %v2601_v61 = vmul.f32 %v5871_v1, %v5441_v47  ;;  %v6808_v0 = vrot.slane %v6807_v13, 1 }
 0x247   : > { %v6810_v62 = vrot.slane %v6809_v50, 1  ;;  %3537 = vmatmul.mubr.bf16.gmra.mxu1 %v2886_v54  ;;  %v2477_v38 = vrot.slane %v2357_v7, 1  ;;  %v2720_v17 = vrot.slane %v2600_v26, 2  ;;  %v6813_v6 = vrot.slane %v6812_v9, 2 }
 0x248   : > { %v2241_v49 = vadd.f32 %v2168_v25, %v1997_v59  ;;  %v6815_v19 = vrot.slane %v6814_v39, 2  ;;  %v2308_v57 = vadd.f32 %v2276_v8, %v2240_v32  ;;  %v2721_v22 = vrot.slane %v2601_v61, 2 }
 0x249   : > { %v1370_v51 = vsel %vm1302_vm2, %v6810_v62, %v6808_v0  ;;  %v1722_v59 = vmul.f32 %v6580_v60, %v5324_v16  ;;  %v2478_v41 = vsel %vm1302_vm2, %v2476_v27, %v2477_v38  ;;  %v6816_v3 = vrot.slane %v5468_v42, 1 }
 0x24a   : > { %v1441_v36 = vadd.f32 %v1370_v51, %v6811_v2  ;;  %v1615_v21 = vsel %vm1547_vm3, %v6815_v19, %v6813_v6  ;;  %v2309_v33 = vadd.f32 %v2277_v45, %v2241_v49  ;;  %v1723_v54 = vmul.f32 %v6580_v60, %v5441_v47  ;;  %v6818_v49 = vld [vmem:[#allocation40_spill] sm:$0xff] }
 0x24b   : > { %v2480_v37 = vsel %vm1302_vm2, %v2477_v38, %v6816_v3  ;;  %v2552_v7 = vadd.f32 %v2478_v41, %v2308_v57  ;;  %v2722_v13 = vsel %vm1547_vm3, %v2720_v17, %v2721_v22  ;;  %v6817_v8 = vrot.slane %v5471_v34, 2 }
 0x24c   : > { %v1686_v25 = vadd.f32 %v1615_v21, %v1441_v36  ;;  %v2553_v26 = vadd.f32 %v2480_v37, %v2309_v33  ;;  %v1755_v61 = vadd.f32 %v1723_v54, %v6818_v49  ;;  %v1803_v42 = vmul.f32 %v4111_v10, %v5324_v16 }
 0x24d   : > { %v2724_v45 = vsel %vm1547_vm3, %v2721_v22, %v6817_v8  ;;  %v1804_v27 = vmul.f32 %v4111_v10, %v5441_v47  ;;  %v2796_v0 = vadd.f32 %v2722_v13, %v2552_v7  ;;  %v2047_v62 = vmul.f32 %v4113_v11, %v5324_v16  ;;  %v6819_v16 = vld [vmem:[#allocation44_spill] sm:$0xff] }
 0x24e   : > { %v1754_v32 = vadd.f32 %v1722_v59, %v1686_v25  ;;  %v2797_v50 = vadd.f32 %v2724_v45, %v2553_v26  ;;  %v2048_v51 = vmul.f32 %v4113_v11, %v5441_v47  ;;  %v1925_v34 = vrot.slane %v1803_v42, 1  ;;  %v6821_v25 = vld [vmem:[#allocation41_spill] sm:$0xff] }
 0x24f   : > { %v1926_v38 = vrot.slane %v1804_v27, 1  ;;  %v2278_v17 = vmul.f32 %v4122_v23, %v5252_v58  ;;  %v2279_v2 = vmul.f32 %v4122_v23, %v5396_v29  ;;  %v2835_v36 = vadd.f32 %v5572_v30, %v2796_v0  ;;  %v6823_v0 = vld [vmem:[#allocation59_spill] sm:$0xff] }
 0x250   : > { %v2836_v9 = vadd.f32 %v5572_v30, %v2797_v50  ;;  %v2169_v6 = vrot.slane %v2047_v62, 2  ;;  %v2170_v39 = vrot.slane %v2048_v51, 2  ;;  %v6820_v21 = vrot.slane %v6819_v16, 1  ;;  %v6825_v62 = vld [vmem:[#allocation70_spill] sm:$0xff] }
 0x251   : > { %v1927_v19 = vsel %vm1302_vm2, %v1925_v34, %v1926_v38  ;;  %v2359_v57 = vmul.f32 %v4117_v18, %v5252_v58  ;;  %v2360_v33 = vmul.f32 %v4117_v18, %v5396_v29  ;;  %v2867_v22 = vmax.f32 %v2835_v36, 0.0  ;;  %v6827_v34 = vld [vmem:[#allocation38_spill] sm:$0xff] }
 0x252   : > { %v1929_v47 = vsel %vm1302_vm2, %v1926_v38, %v6820_v21  ;;  %v2868_v59 = vmax.f32 %v2836_v9, 0.0  ;;  %v1998_v41 = vadd.f32 %v1927_v19, %v1754_v32  ;;  %v2171_v37 = vsel %vm1547_vm3, %v2169_v6, %v2170_v39  ;;  %v6829_v19 = vld [vmem:[#allocation49_spill] sm:$0xff] }
 0x253   : > { %v1999_v3 = vadd.f32 %v1929_v47, %v1755_v61  ;;  %v6822_v54 = vrot.slane %v6821_v25, 2  ;;  %v2481_v26 = vrot.slane %v2359_v57, 1  ;;  %v2482_v13 = vrot.slane %v2360_v33, 1  ;;  %v6830_v47 = vld [vmem:[#allocation43_spill] sm:$0xff]  ;;  %v6832_v33 = vld [vmem:[#allocation37_spill] sm:$0xff] }
 0x254   : > { %v2887_v8 = vpack.c.bf16 %v2868_v59, %v2867_v22  ;;  %v2242_v45 = vadd.f32 %v2171_v37, %v1998_v41  ;;  %v2603_v42 = vmul.f32 %v5871_v1, %v5252_v58  ;;  %v6824_v50 = vrot.slane %v6823_v0, 1 }
 0x255   : > { %v2173_v7 = vsel %vm1547_vm3, %v2170_v39, %v6822_v54  ;;  %v2483_v27 = vsel %vm1302_vm2, %v2481_v26, %v2482_v13  ;;  %v2604_v61 = vmul.f32 %v5871_v1, %v5396_v29  ;;  %v6826_v51 = vrot.slane %v6825_v62, 1 }
 0x256   : > { %v2243_v49 = vadd.f32 %v2173_v7, %v1999_v3  ;;  %v2485_v32 = vsel %vm1302_vm2, %v2482_v13, %v6824_v50  ;;  %v6828_v38 = vrot.slane %v6827_v34, 1  ;;  %3540 = vmatprep.mubr.bf16.mxu1 %v2887_v8  ;;  %v2310_v9 = vadd.f32 %v2278_v17, %v2242_v45  ;;  %v6834_v7 = vld [vmem:[#allocation58_spill] sm:$0xff] }
 0x257   : > { %v2725_v39 = vrot.slane %v2603_v42, 2  ;;  %v2726_v21 = vrot.slane %v2604_v61, 2  ;;  %v6831_v57 = vrot.slane %v6830_v47, 2  ;;  %v6833_v22 = vrot.slane %v6832_v33, 2  ;;  %v6836_v8 = vld [vmem:[#allocation34_spill] sm:$0xff] }
 0x258   : > { %v1375_v36 = vsel %vm1302_vm2, %v6828_v38, %v6826_v51  ;;  %v2311_v6 = vadd.f32 %v2279_v2, %v2243_v49  ;;  %v1724_v41 = vmul.f32 %v6580_v60, %v5252_v58  ;;  %v1725_v3 = vmul.f32 %v6580_v60, %v5396_v29  ;;  %v6837_v38 = vld [vmem:[#allocation50_spill] sm:$0xff] }
 0x259   : > { %v1443_v16 = vadd.f32 %v1375_v36, %v6829_v19  ;;  %v1620_v59 = vsel %vm1547_vm3, %v6833_v22, %v6831_v57  ;;  %v2554_v37 = vadd.f32 %v2483_v27, %v2310_v9  ;;  %v1806_v2 = vmul.f32 %v4111_v10, %v5252_v58 }
 0x25a   : > { %v2555_v25 = vadd.f32 %v2485_v32, %v2311_v6  ;;  %v2727_v54 = vsel %vm1547_vm3, %v2725_v39, %v2726_v21  ;;  %v6835_v26 = vrot.slane %v6834_v7, 2  ;;  %v1757_v45 = vadd.f32 %v1725_v3, %v6836_v8 }
 0x25b   : > { %v1688_v17 = vadd.f32 %v1620_v59, %v1443_v16  ;;  %v1807_v49 = vmul.f32 %v4111_v10, %v5396_v29  ;;  %v2798_v42 = vadd.f32 %v2727_v54, %v2554_v37  ;;  %v1930_v27 = vrot.slane %v1806_v2, 1 }
 0x25c   : > { %v2729_v13 = vsel %vm1547_vm3, %v2726_v21, %v6835_v26  ;;  %v2050_v32 = vmul.f32 %v4113_v11, %v5252_v58  ;;  %v2051_v61 = vmul.f32 %v4113_v11, %v5396_v29  ;;  %v2281_v62 = vmul.f32 %v4122_v23, %v5647_v20  ;;  %v3518_v11 = vpop.f32.mrf.mxu0  ;;  %v6845_v26 = vld [vmem:[#allocation18_spill] sm:$0xff] }
 0x25d   : > { %v2799_v0 = vadd.f32 %v2729_v13, %v2555_v25  ;;  %v1756_v60 = vadd.f32 %v1724_v41, %v1688_v17  ;;  %v1931_v50 = vrot.slane %v1807_v49, 1  ;;  %v2837_v51 = vadd.f32 %v5572_v30, %v2798_v42  ;;  %v6842_v25 = vld [vmem:[#allocation16_spill] sm:$0xff] }
 0x25e   : > { %v2488_v10 = vsel %vm1302_vm2, %v2486_v48, %v2487_v40  ;;  %v2490_v58 = vsel %vm1302_vm2, %v2487_v40, %v2489_v12  ;;  %v6838_v36 = vrot.slane %v6837_v38, 1  ;;  %v2174_v6 = vrot.slane %v2050_v32, 2  ;;  %v2996_v41 = vpop.f32.mrf.mxu0 }
 0x25f   : > { %v2838_v34 = vadd.f32 %v5572_v30, %v2799_v0  ;;  %v1932_v29 = vsel %vm1302_vm2, %v1930_v27, %v1931_v50  ;;  %v2175_v39 = vrot.slane %v2051_v61, 2  ;;  %v2869_v19 = vmax.f32 %v2837_v51, 0.0  ;;  %v3125_v27 = vld [vmem:[%s3992_s24 + $0x10] sm:$0xff] }
 0x260   : > { %v1934_v9 = vsel %vm1302_vm2, %v1931_v50, %v6838_v36  ;;  %v2000_v52 = vadd.f32 %v1932_v29, %v1756_v60  ;;  %v6840_v47 = vrot.slane %v6839_v35, 2  ;;  %v2607_v40 = vmul.f32 %v5871_v1, %v5647_v20  ;;  %v6841_v20 = vld [vmem:[#allocation17_spill] sm:$0xff] }
 0x261   : > { %v2870_v16 = vmax.f32 %v2838_v34, 0.0  ;;  %v2001_v21 = vadd.f32 %v1934_v9, %v1757_v45  ;;  %v2176_v48 = vsel %vm1547_vm3, %v2174_v6, %v2175_v39  ;;  %v1937_v12 = vsel %vm1302_vm2, %v1935_v46, %v1936_v5  ;;  %v3123_v6 = vld [vmem:[%s3992_s24] sm:$0xff] }
 0x262   : > { %v2178_v31 = vsel %vm1547_vm3, %v2175_v39, %v6840_v47  ;;  %v2244_v33 = vadd.f32 %v2176_v48, %v2000_v52  ;;  %v2002_v59 = vadd.f32 %v1937_v12, %v5577_v14  ;;  %v2731_v3 = vrot.slane %v2607_v40, 2  ;;  %v3126_v52 = vld [vmem:[%s3992_s24 + $0x18] sm:$0xff] }
 0x263   : > { %v2888_v57 = vpack.c.bf16 %v2870_v16, %v2869_v19  ;;  %v2245_v22 = vadd.f32 %v2178_v31, %v2001_v21  ;;  %v2181_v37 = vsel %vm1547_vm3, %v2179_v43, %v2180_v28  ;;  %v2282_v24 = vmul.f32 %v4122_v23, %v6841_v20  ;;  %v3124_v21 = vld [vmem:[%s3992_s24 + $0x8] sm:$0xff] }
 0x264   : > { %v2283_v15 = vmul.f32 %v4122_v23, %v6842_v25  ;;  %v2312_v46 = vadd.f32 %v5556_v55, %v2244_v33  ;;  %v2246_v17 = vadd.f32 %v2181_v37, %v2002_v59  ;;  %v2365_v14 = vmul.f32 %v4117_v18, %v6841_v20 }
 0x265   : > { %3541 = vmatmul.mubr.bf16.gmra.mxu1 %v2888_v57  ;;  %v2313_v5 = vadd.f32 %v2281_v62, %v2245_v22  ;;  %v6843_v53 = vrot.slane %v5567_v44, 2  ;;  %v6844_v43 = vrot.slane %v5678_v56, 2  ;;  %v2366_v23 = vmul.f32 %v4117_v18, %v6842_v25  ;;  %v6073_v44 = vld [vmem:[%s6282_s6] ss:$0 sm:$0xff]  ;;  %v3519_v56 = vpop.f32.mrf.mxu0 }
 0x266   : > { %v2315_v2 = vadd.f32 %v2283_v15, %v5686_v4  ;;  %v2556_v55 = vadd.f32 %v2488_v10, %v2312_v46  ;;  %v2314_v7 = vadd.f32 %v2282_v24, %v2246_v17  ;;  %v2367_v13 = vmul.f32 %v4117_v18, %v6845_v26  ;;  %v3129_v24 = vld [vmem:[%s3992_s24 + $0x30] sm:$0xff]  ;;  %v3127_v15 = vld [vmem:[%s3992_s24 + $0x20] sm:$0xff] }
 0x267   : > { %v2732_v63 = vsel %vm1547_vm3, %v6843_v53, %v2731_v3  ;;  %v2734_v28 = vsel %vm1547_vm3, %v2731_v3, %v6844_v43  ;;  %v2557_v54 = vadd.f32 %v2490_v58, %v2313_v5  ;;  %v2491_v8 = vrot.slane %v2365_v14, 1  ;;  %v2999_v29 = vpop.f32.mrf.mxu0  ;;  %v3130_v14 = vld [vmem:[%s3992_s24 + $0x38] sm:$0xff] }
 0x268   : > { %v2492_v45 = vrot.slane %v2366_v23, 1  ;;  %v2609_v4 = vmul.f32 %v5871_v1, %v6841_v20  ;;  %v2610_v49 = vmul.f32 %v5871_v1, %v6842_v25  ;;  %v2800_v42 = vadd.f32 %v2732_v63, %v2556_v55 }
 0x269   : > { %v2801_v0 = vadd.f32 %v2734_v28, %v2557_v54  ;;  %v2494_v60 = vrot.slane %v2367_v13, 1  ;;  %v2611_v18 = vmul.f32 %v5871_v1, %v6845_v26  ;;  %v3005_v62 = vadd.f32 %v3518_v11, %v6073_v44  ;;  %v3128_v28 = vld [vmem:[%s3992_s24 + $0x28] sm:$0xff] }
 0x26a   : > { %v2493_v50 = vsel %vm1302_vm2, %v2491_v8, %v2492_v45  ;;  %v2735_v32 = vrot.slane %v2609_v4, 2  ;;  %v2736_v61 = vrot.slane %v2610_v49, 2  ;;  %v2839_v51 = vadd.f32 %v5572_v30, %v2800_v42  ;;  %v3134_v49 = vld [vmem:[%s3992_s24 + $0x58] sm:$0xff] }
 0x26b   : > { %v2840_v34 = vadd.f32 %v5572_v30, %v2801_v0  ;;  %v2495_v10 = vsel %vm1302_vm2, %v2492_v45, %v2494_v60  ;;  %v2558_v58 = vadd.f32 %v2493_v50, %v2314_v7  ;;  %v2738_v36 = vrot.slane %v2611_v18, 2  ;;  %v3133_v7 = vld [vmem:[%s3992_s24 + $0x50] sm:$0xff]  ;;  %v3132_v18 = vld [vmem:[%s3992_s24 + $0x48] sm:$0xff] }
 0x26c   : > { %v2559_v38 = vadd.f32 %v2495_v10, %v2315_v2  ;;  %v2737_v1 = vsel %vm1547_vm3, %v2735_v32, %v2736_v61  ;;  %v3157_v9 = vadd.f32 %v3125_v27, %v3005_v62  ;;  %v2871_v39 = vmax.f32 %v2839_v51, 0.0  ;;  %v3137_v62 = vld [vmem:[%s3992_s24 + $0x70] sm:$0xff]  ;;  %v3135_v10 = vld [vmem:[%s3992_s24 + $0x60] sm:$0xff] }
 0x26d   : > { %v2872_v19 = vmax.f32 %v2840_v34, 0.0  ;;  %v2802_v16 = vadd.f32 %v2737_v1, %v2558_v58  ;;  %v2997_v11 = vadd.f32 %v6073_v44, %v2996_v41  ;;  %v2739_v48 = vsel %vm1547_vm3, %v2736_v61, %v2738_v36  ;;  %v3138_v1 = vld [vmem:[%s3992_s24 + $0x78] sm:$0xff] }
 0x26e   : > { %3189 = vst.msk [vmem:[%s6095_s16 + $0x10] sm:$0xff] %vm539_vm0, %v3157_v9  ;;  %v3008_v35 = vadd.f32 %v3519_v56, %v6073_v44  ;;  %v3000_v47 = vadd.f32 %v6073_v44, %v2999_v29  ;;  %v2803_v40 = vadd.f32 %v2739_v48, %v2559_v38  ;;  %v3131_v56 = vld [vmem:[%s3992_s24 + $0x40] sm:$0xff] }
 0x26f   : > { %v2889_v31 = vpack.c.bf16 %v2872_v19, %v2871_v39  ;;  %v2841_v12 = vadd.f32 %v5572_v30, %v2802_v16  ;;  %v3155_v57 = vadd.f32 %v3123_v6, %v2997_v11  ;;  %v3136_v39 = vld [vmem:[%s3992_s24 + $0x68] sm:$0xff] }
 0x270   : > { %v3158_v33 = vadd.f32 %v3126_v52, %v3008_v35  ;;  %v3156_v22 = vadd.f32 %v3124_v21, %v3000_v47  ;;  %v2842_v59 = vadd.f32 %v5572_v30, %v2803_v40  ;;  %v3522_v20 = vpop.f32.mrf.mxu1  ;;  %v3141_v21 = vld [vmem:[%s3992_s24 + $0x90] sm:$0xff]  ;;  %v3139_v47 = vld [vmem:[%s3992_s24 + $0x80] sm:$0xff] }
 0x271   : > { %3544 = vmatprep.mubr.bf16.mxu1 %v2889_v31  ;;  %v2873_v41 = vmax.f32 %v2841_v12, 0.0  ;;  %3187 = vst.msk [vmem:[%s6095_s16] sm:$0xff] %vm539_vm0, %v3155_v57  ;;  %v3021_v25 = vadd.f32 %v3522_v20, %v6073_v44  ;;  %v3142_v57 = vld [vmem:[%s3992_s24 + $0x98] sm:$0xff] }
 0x272   : > { %3190 = vst.msk [vmem:[%s6095_s16 + $0x18] sm:$0xff] %vm539_vm0, %v3158_v33  ;;  %3188 = vst.msk [vmem:[%s6095_s16 + $0x8] sm:$0xff] %vm539_vm0, %v3156_v22  ;;  %v2874_v3 = vmax.f32 %v2842_v59, 0.0  ;;  %v3012_v30 = vpop.f32.mrf.mxu1 }
 0x273   : > { %v3161_v46 = vadd.f32 %v3129_v24, %v3021_v25  ;;  %v3013_v5 = vadd.f32 %v6073_v44, %v3012_v30  ;;  %v3145_v25 = vld [vmem:[%s3992_s24 + $0xb0] sm:$0xff] }
 0x274   : > { %v2890_v37 = vpack.c.bf16 %v2874_v3, %v2873_v41  ;;  %v3523_v17 = vpop.f32.mrf.mxu1  ;;  %v3140_v41 = vld [vmem:[%s3992_s24 + $0x88] sm:$0xff] }
 0x275   : > { %3193 = vst.msk [vmem:[%s6095_s16 + $0x30] sm:$0xff] %vm539_vm0, %v3161_v46  ;;  %v3159_v53 = vadd.f32 %v3127_v15, %v3013_v5  ;;  %v3024_v63 = vadd.f32 %v3523_v17, %v6073_v44  ;;  %v3143_v46 = vld [vmem:[%s3992_s24 + $0xa0] sm:$0xff] }
 0x276   : > { %3545 = vmatmul.mubr.bf16.gmra.mxu1 %v2890_v37  ;;  %v3015_v43 = vpop.f32.mrf.mxu1 }
 0x277   : > { %3191 = vst.msk [vmem:[%s6095_s16 + $0x20] sm:$0xff] %vm539_vm0, %v3159_v53  ;;  %v3162_v2 = vadd.f32 %v3130_v14, %v3024_v63  ;;  %v3016_v23 = vadd.f32 %v6073_v44, %v3015_v43  ;;  %v3146_v53 = vld [vmem:[%s3992_s24 + $0xb8] sm:$0xff] }
 0x279   : > { %3194 = vst.msk [vmem:[%s6095_s16 + $0x38] sm:$0xff] %vm539_vm0, %v3162_v2  ;;  %v3160_v55 = vadd.f32 %v3128_v28, %v3016_v23  ;;  %v3144_v2 = vld [vmem:[%s3992_s24 + $0xa8] sm:$0xff] }
 0x27b   : > { %3192 = vst.msk [vmem:[%s6095_s16 + $0x28] sm:$0xff] %vm539_vm0, %v3160_v55 }
 0x29b   : > { %v3526_v54 = vpop.f32.mrf.mxu1 }
 0x29c   : > { %v3037_v26 = vadd.f32 %v3526_v54, %v6073_v44 }
 0x29d   : > { %v3028_v13 = vpop.f32.mrf.mxu1 }
 0x29e   : > { %v3165_v8 = vadd.f32 %v3133_v7, %v3037_v26  ;;  %v3029_v45 = vadd.f32 %v6073_v44, %v3028_v13  ;;  %v3149_v26 = vld [vmem:[%s3992_s24 + $0xd0] sm:$0xff] }
 0x29f   : > { %v3527_v4 = vpop.f32.mrf.mxu1 }
 0x2a0   : > { %3197 = vst.msk [vmem:[%s6095_s16 + $0x50] sm:$0xff] %vm539_vm0, %v3165_v8  ;;  %v3163_v42 = vadd.f32 %v3131_v56, %v3029_v45  ;;  %v3040_v0 = vadd.f32 %v3527_v4, %v6073_v44  ;;  %v3147_v8 = vld [vmem:[%s3992_s24 + $0xc0] sm:$0xff] }
 0x2a1   : > { %v3031_v60 = vpop.f32.mrf.mxu1 }
 0x2a2   : > { %3195 = vst.msk [vmem:[%s6095_s16 + $0x40] sm:$0xff] %vm539_vm0, %v3163_v42  ;;  %v3166_v27 = vadd.f32 %v3134_v49, %v3040_v0  ;;  %v3032_v50 = vadd.f32 %v6073_v44, %v3031_v60  ;;  %v3150_v42 = vld [vmem:[%s3992_s24 + $0xd8] sm:$0xff] }
 0x2a4   : > { %3198 = vst.msk [vmem:[%s6095_s16 + $0x58] sm:$0xff] %vm539_vm0, %v3166_v27  ;;  %v3164_v32 = vadd.f32 %v3132_v18, %v3032_v50  ;;  %v3148_v27 = vld [vmem:[%s3992_s24 + $0xc8] sm:$0xff] }
 0x2a6   : > { %3196 = vst.msk [vmem:[%s6095_s16 + $0x48] sm:$0xff] %vm539_vm0, %v3164_v32 }
 0x2c9   : > { %v3530_v61 = vpop.f32.mrf.mxu1 }
 0x2ca   : > { %v3053_v51 = vadd.f32 %v3530_v61, %v6073_v44 }
 0x2cb   : > { %v3044_v34 = vpop.f32.mrf.mxu1 }
 0x2cc   : > { %v3169_v58 = vadd.f32 %v3137_v62, %v3053_v51  ;;  %v3045_v29 = vadd.f32 %v6073_v44, %v3044_v34  ;;  %v3153_v51 = vld [vmem:[%s3992_s24 + $0xf0] sm:$0xff] }
 0x2cd   : > { %v3531_v38 = vpop.f32.mrf.mxu1 }
 0x2ce   : > { %3201 = vst.msk [vmem:[%s6095_s16 + $0x70] sm:$0xff] %vm539_vm0, %v3169_v58  ;;  %v3167_v36 = vadd.f32 %v3135_v10, %v3045_v29  ;;  %v3056_v9 = vadd.f32 %v3531_v38, %v6073_v44  ;;  %v3151_v58 = vld [vmem:[%s3992_s24 + $0xe0] sm:$0xff] }
 0x2cf   : > { %v3047_v6 = vpop.f32.mrf.mxu1 }
 0x2d0   : > { %3199 = vst.msk [vmem:[%s6095_s16 + $0x60] sm:$0xff] %vm539_vm0, %v3167_v36  ;;  %v3170_v19 = vadd.f32 %v3138_v1, %v3056_v9  ;;  %v3048_v16 = vadd.f32 %v6073_v44, %v3047_v6  ;;  %v3154_v36 = vld [vmem:[%s3992_s24 + $0xf8] sm:$0xff] }
 0x2d2   : > { %3202 = vst.msk [vmem:[%s6095_s16 + $0x78] sm:$0xff] %vm539_vm0, %v3170_v19  ;;  %v3168_v11 = vadd.f32 %v3136_v39, %v3048_v16  ;;  %v3152_v19 = vld [vmem:[%s3992_s24 + $0xe8] sm:$0xff]  ;;  %s3729_s24 = scalar_lea.vmem %s6224_s22, 4096 }
 0x2d3   : > { %p3730_p8 = scmp.ne.s32.totalorder %s6224_s22, %s3729_s24  ;;  %p3737_p5 = scmp.lt.s32.totalorder %s3735_s12, %s3729_s24 }
 0x2d4   : > { %3200 = vst.msk [vmem:[%s6095_s16 + $0x68] sm:$0xff] %vm539_vm0, %v3168_v11 }
 0x2d5   : > { %p3731_p0 = pnand %p3730_p8, %p3921_p9  ;;  %p3738_p6 = por %p3737_p5, %p3736_p4 }
 0x2d7   : > { %p3732_p2 = pneg %p3731_p0 }
 0x2d9   : > { %p3739_p7 = pnand %p3738_p6, %p3732_p2 }
 0x2ea   : > { %v3534_v52 = vpop.f32.mrf.mxu1 }
 0x2eb   : > { %v3069_v48 = vadd.f32 %v3534_v52, %v6073_v44 }
 0x2ec   : > { %v3060_v35 = vpop.f32.mrf.mxu1 }
 0x2ed   : > { %v3173_v31 = vadd.f32 %v3141_v21, %v3069_v48  ;;  %v3061_v40 = vadd.f32 %v6073_v44, %v3060_v35 }
 0x2ee   : > { %v3535_v12 = vpop.f32.mrf.mxu1 }
 0x2ef   : > { %3205 = vst.msk [vmem:[%s6095_s16 + $0x90] sm:$0xff] %vm539_vm0, %v3173_v31  ;;  %v3171_v33 = vadd.f32 %v3139_v47, %v3061_v40  ;;  %v3072_v22 = vadd.f32 %v3535_v12, %v6073_v44 }
 0x2f0   : > { %v3063_v59 = vpop.f32.mrf.mxu1 }
 0x2f1   : > { %3203 = vst.msk [vmem:[%s6095_s16 + $0x80] sm:$0xff] %vm539_vm0, %v3171_v33  ;;  %v3174_v3 = vadd.f32 %v3142_v57, %v3072_v22  ;;  %v3064_v37 = vadd.f32 %v6073_v44, %v3063_v59 }
 0x2f3   : > { %3206 = vst.msk [vmem:[%s6095_s16 + $0x98] sm:$0xff] %vm539_vm0, %v3174_v3  ;;  %v3172_v20 = vadd.f32 %v3140_v41, %v3064_v37 }
 0x2f5   : > { %3204 = vst.msk [vmem:[%s6095_s16 + $0x88] sm:$0xff] %vm539_vm0, %v3172_v20 }
 0x307   : > { %v3538_v24 = vpop.f32.mrf.mxu1 }
 0x308   : > { %v3085_v30 = vadd.f32 %v3538_v24, %v6073_v44 }
 0x309   : > { %v3076_v15 = vpop.f32.mrf.mxu1 }
 0x30a   : > { %v3177_v5 = vadd.f32 %v3145_v25, %v3085_v30  ;;  %v3077_v17 = vadd.f32 %v6073_v44, %v3076_v15 }
 0x30b   : > { %v3539_v14 = vpop.f32.mrf.mxu1 }
 0x30c   : > { %3209 = vst.msk [vmem:[%s6095_s16 + $0xb0] sm:$0xff] %vm539_vm0, %v3177_v5  ;;  %v3175_v63 = vadd.f32 %v3143_v46, %v3077_v17  ;;  %v3088_v43 = vadd.f32 %v3539_v14, %v6073_v44 }
 0x30d   : > { %v3079_v28 = vpop.f32.mrf.mxu1 }
 0x30e   : > { %3207 = vst.msk [vmem:[%s6095_s16 + $0xa0] sm:$0xff] %vm539_vm0, %v3175_v63  ;;  %v3178_v23 = vadd.f32 %v3146_v53, %v3088_v43  ;;  %v3080_v55 = vadd.f32 %v6073_v44, %v3079_v28 }
 0x310   : > { %3210 = vst.msk [vmem:[%s6095_s16 + $0xb8] sm:$0xff] %vm539_vm0, %v3178_v23  ;;  %v3176_v54 = vadd.f32 %v3144_v2, %v3080_v55 }
 0x312   : > { %3208 = vst.msk [vmem:[%s6095_s16 + $0xa8] sm:$0xff] %vm539_vm0, %v3176_v54 }
 0x325   : > { %v3542_v7 = vpop.f32.mrf.mxu1 }
 0x326   : > { %v3101_v13 = vadd.f32 %v3542_v7, %v6073_v44 }
 0x327   : > { %v3092_v56 = vpop.f32.mrf.mxu1 }
 0x328   : > { %v3181_v45 = vadd.f32 %v3149_v26, %v3101_v13  ;;  %v3093_v4 = vadd.f32 %v6073_v44, %v3092_v56 }
 0x329   : > { %v3543_v49 = vpop.f32.mrf.mxu1 }
 0x32a   : > { %3213 = vst.msk [vmem:[%s6095_s16 + $0xd0] sm:$0xff] %vm539_vm0, %v3181_v45  ;;  %v3179_v0 = vadd.f32 %v3147_v8, %v3093_v4  ;;  %v3104_v60 = vadd.f32 %v3543_v49, %v6073_v44 }
 0x32b   : > { %v3095_v18 = vpop.f32.mrf.mxu1 }
 0x32c   : > { %3211 = vst.msk [vmem:[%s6095_s16 + $0xc0] sm:$0xff] %vm539_vm0, %v3179_v0  ;;  %v3182_v50 = vadd.f32 %v3150_v42, %v3104_v60  ;;  %v3096_v32 = vadd.f32 %v6073_v44, %v3095_v18 }
 0x32e   : > { %3214 = vst.msk [vmem:[%s6095_s16 + $0xd8] sm:$0xff] %vm539_vm0, %v3182_v50  ;;  %v3180_v61 = vadd.f32 %v3148_v27, %v3096_v32 }
 0x330   : > { %3212 = vst.msk [vmem:[%s6095_s16 + $0xc8] sm:$0xff] %vm539_vm0, %v3180_v61 }
 0x336   : > { %v3546_v62 = vpop.f32.mrf.mxu1 }
 0x337   : > { %v3117_v34 = vadd.f32 %v3546_v62, %v6073_v44 }
 0x338   : > { %v3108_v10 = vpop.f32.mrf.mxu1 }
 0x339   : > { %v3185_v29 = vadd.f32 %v3153_v51, %v3117_v34  ;;  %v3109_v38 = vadd.f32 %v6073_v44, %v3108_v10 }
 0x33a   : > { %v3547_v1 = vpop.f32.mrf.mxu1 }
 0x33b   : > { %3217 = vst.msk [vmem:[%s6095_s16 + $0xf0] sm:$0xff] %vm539_vm0, %v3185_v29  ;;  %v3183_v9 = vadd.f32 %v3151_v58, %v3109_v38  ;;  %v3120_v6 = vadd.f32 %v3547_v1, %v6073_v44 }
 0x33c   : > { %v3111_v39 = vpop.f32.mrf.mxu1 }
 0x33d   : > { %3215 = vst.msk [vmem:[%s6095_s16 + $0xe0] sm:$0xff] %vm539_vm0, %v3183_v9  ;;  %v3186_v16 = vadd.f32 %v3154_v36, %v3120_v6  ;;  %v3112_v11 = vadd.f32 %v6073_v44, %v3111_v39 }
 0x33f   : > { %3218 = vst.msk [vmem:[%s6095_s16 + $0xf8] sm:$0xff] %vm539_vm0, %v3186_v16  ;;  %v3184_v52 = vadd.f32 %v3152_v19, %v3112_v11 }
 0x341   : > { %3216 = vst.msk [vmem:[%s6095_s16 + $0xe8] sm:$0xff] %vm539_vm0, %v3184_v52 }
 0x342   : > { %3742 = shalt.err (!%p3739_p7)
}
 0x343   : > { %s3743_s13 = scalar_lea.hbm %s6222_s26, 4096  ;;  %s3747_s17 = scalar_lea.hbm %s6284_s8, 8192 }
 0x344   : > { %p3744_p1 = scmp.ne.s32.totalorder %s6222_s26, %s3743_s13  ;;  %p3748_p3 = scmp.lt.s32.totalorder %s6222_s26, %s6284_s8 }
 0x345   : > { %p3749_p8 = scmp.lt.s32.totalorder %s3747_s17, %s3743_s13 }
 0x346   : > { %p3745_p10 = pnand %p3744_p1, %p3921_p9 }
 0x347   : > { %p3750_p0 = por %p3749_p8, %p3748_p3 }
 0x348   : > { %p3746_p13 = pneg %p3745_p10 }
 0x34a   : > { %p3751_p2 = pnand %p3750_p0, %p3746_p13 }
 0x34c   : > { %3754 = shalt.err (!%p3751_p2)
}
 0x34d   : > { %s3823_s14 = smov 128   ;;  %s3824_s16 = smov 8  }
 0x34e   : > { %3571 = dma.vmem_to_hbm [thread:$0]  (%p3921_p9), %s6224_s22, 4096, %s6222_s26, %s3220_s30, %s3823_s14, %s3823_s14, %s3824_s16  }
 0x34f PF: > { %s6846_s29 = sld [smem:[#allocation11_spill]]  ;;  %p3581_p4 = pnand %p3351_p12, %p3928_p11 }
 0x351   : > { %p3582_p5 = pneg %p3581_p4 }
 0x355   : > { %s3251_s23 = sand.u32 1, %s6846_s29  }
 0x356   : > { %s3252_s24 = scalar_lea.sflag [#allocation4], %s3251_s23 }
 0x357   : > { %3788 = dma.done.wait (%p3582_p5), %s3252_s24, 4096  }
 0x358   : > { %3790 = vsyncadd (%p3582_p5), %s3252_s24, 4294963200  ;;  %s27_s10 = sadd.s32 1, %s3813_s10   ;;  %s6848_s20 = sld [smem:[#allocation12_spill]] }
 0x359   : > { %p24_p6 = scmp.ge.s32.totalorder %s27_s10, 4   ;;  %s6849_s29 = sld [smem:[#allocation14_spill]] }
 0x35a   : > { %s6850_s18 = sld [smem:[#allocation13_spill]]  ;;  %s6851_s27 = smov %s3797_s28 }
 0x35b   : > { %s6853_s30 = smov %s3809_s9 }
 0x35c   :  { %26 = sbr.rel (!%p24_p6) target bundleno = 10 (0xa), region = 111 }
 0x35e   : > { %s6852_s28 = smov %s6848_s20 }
 0x360   : > { %s6854_s9 = smov %s6850_s18 }
 0x361   :  { %3257 = vsyncpa [#allocation3], 1 }
 0x362   :  { %3259 = vsyncpa [#allocation3 + $0x1], 1 }
 0x363   :  { %3260 = vsyncpa [#allocation6], 1 }
 0x364   :  { %3262 = vsyncpa [#allocation6 + $0x1], 1 }
 0x365   :  { %3263 = vsyncpa [#allocation4], 1 }
 0x366   :  { %3265 = vsyncpa [#allocation4 + $0x1], 1 }

</bundles_post_ra>
